<compile_context>
chip_gen: v5e
topology: v5e:2x2
jax: 0.10.0
libtpu: 0.0.40
codegen_flags: <defaults>
</compile_context>

<pallas_src>
import jax
import jax.numpy as jnp
from jax import lax
from jax.experimental import pallas as pl
from jax.experimental.pallas import tpu as pltpu

EPS = 1e-5    # InstanceNorm3d default eps
LEAK = 0.01   # F.leaky_relu default negative slope


def _make_kernel(Nb, D, H, W, Cin, Cout):
    HW = H * W
    M = Nb * D
    inv_dhw = 1.0 / (D * HW)

    def kernel(x_ref, g0_ref, b0_ref, g1_ref, b1_ref, g2_ref, b2_ref,
               rin_ref, rtin_ref, rout_ref, rtout_ref,
               w0_ref, c0b_ref, w1_ref, c1b_ref, w2_ref, c2b_ref, o_ref):
        # Rows are (sample, depth) stacked; per-row depth index for boundary masking.
        row = lax.broadcasted_iota(jnp.int32, (M, 1), 0)
        d_idx = row % D
        first_row = d_idx == 0            # depth 0 of each sample
        last_row = d_idx == (D - 1)       # depth D-1 of each sample

        def in_lrelu(x, g_ref, b_ref, r_ref, rt_ref):
            # x: (M, HW*C) f32, channel fastest along lanes.
            # Per-sample per-channel stats: reduce D on sublanes first, then one small
            # selector dot folds the HW lane-groups; scale/shift computed on tiny (Nb, C)
            # vectors, broadcast back to lanes with one selector dot.
            hwc = x.shape[1]
            x3 = x.reshape(Nb, D, hwc)
            srows = jnp.concatenate(
                [jnp.sum(x3, axis=1), jnp.sum(x3 * x3, axis=1)], axis=0)        # (2Nb, HW*C)
            s = jnp.dot(srows, r_ref[...], preferred_element_type=jnp.float32)  # (2Nb, C)
            mean = s[:Nb] * inv_dhw                                             # (Nb, C)
            var = jnp.maximum(s[Nb:] * inv_dhw - mean * mean, 0.0)              # clamp >= 0
            scale = g_ref[...] * lax.rsqrt(var + EPS)                           # (Nb, C)
            shift = b_ref[...] - mean * scale
            ss = jnp.dot(jnp.concatenate([scale, shift], axis=0), rt_ref[...],
                         preferred_element_type=jnp.float32)                    # (2Nb, HW*C)
            y = x3 * ss[:Nb].reshape(Nb, 1, hwc) + ss[Nb:].reshape(Nb, 1, hwc)
            y = y.reshape(M, hwc)
            return jnp.maximum(y, LEAK * y)                                     # leaky_relu

        def conv3d(y, w_ref, bias_ref):
            # y: (M, HW*Cin_stage) f32.  w_ref: (3*HW*Cin_stage, HW*Cout) bf16 block-banded:
            # (kh, kw, ci) taps, channel mixing and H/W zero padding are baked in; the three
            # depth taps live along K via the lane-concat of depth-shifted activations.
            # Register-only accumulation: no VMEM scratch, no masked partial stores.
            k = y.shape[1]
            zero = jnp.zeros((1, k), jnp.float32)
            prev = jnp.where(first_row, 0.0,
                             jnp.concatenate([zero, y[:-1, :]], axis=0))   # y[d-1], 0 at d=0
            nxt = jnp.where(last_row, 0.0,
                            jnp.concatenate([y[1:, :], zero], axis=0))     # y[d+1], 0 at d=D-1
            lhs = jnp.concatenate(
                [prev.astype(jnp.bfloat16), y.astype(jnp.bfloat16),
                 nxt.astype(jnp.bfloat16)], axis=1)                        # (M, 3*HW*Cin)
            out = jnp.dot(lhs, w_ref[...], preferred_element_type=jnp.float32)
            return out + bias_ref[...]                                     # (M, HW*Cout)

        x = x_ref[...]                                               # (M, HW*Cin), lane-dense
        y0 = in_lrelu(x, g0_ref, b0_ref, rin_ref, rtin_ref)          # in_0 + lrelu
        skip = conv3d(y0, w0_ref, c0b_ref)                           # conv0 (residual source)
        y1 = in_lrelu(skip, g1_ref, b1_ref, rout_ref, rtout_ref)     # in_1 + lrelu
        z = conv3d(y1, w1_ref, c1b_ref)                              # conv1
        y2 = in_lrelu(z, g2_ref, b2_ref, rout_ref, rtout_ref)        # in_2 + lrelu
        o_ref[...] = conv3d(y2, w2_ref, c2b_ref) + skip              # conv2 + skip (res=True)

    return kernel


def _band_conv_weights(w_oidhw, H, W):
    """PyTorch Conv3d weight (Cout, Cin, 3, 3, 3) -> (3*H*W*Cin, H*W*Cout) bf16 banded weight.

    Row block kd (of 3) holds B[(hi*W+wi)*Cin+ci, (h*W+w)*Cout+co] = w[co,ci,kd,hi-h+1,wi-w+1]
    for in-range taps and 0 otherwise, so the 3x3 (kh, kw) taps, channel mixing and the H/W
    zero padding collapse into one matmul; the depth taps are stacked along K in the order
    [d-1 | d | d+1] to match the lane-concatenated LHS built in the kernel.
    """
    w = w_oidhw.astype(jnp.float32)
    Cout, Cin = w.shape[0], w.shape[1]
    ih = ((jnp.arange(H)[:, None, None] + jnp.arange(3)[None, None, :] - 1)
          == jnp.arange(H)[None, :, None]).astype(jnp.float32)          # (h, hi, kh)
    iw = ((jnp.arange(W)[:, None, None] + jnp.arange(3)[None, None, :] - 1)
          == jnp.arange(W)[None, :, None]).astype(jnp.float32)          # (w, wi, kw)
    b = jnp.einsum("hpy,wqx,oizyx->zpqihwo", ih, iw, w)                 # (kd,hi,wi,ci,h,w,co)
    return b.reshape(3 * H * W * Cin, H * W * Cout).astype(jnp.bfloat16)


def prepare_params(params, H, W):
    """One-time parameter packing (hoisted out of the per-call path)."""
    HW = H * W
    Cin = params["in0_w"].shape[0]
    Cout = params["conv0_w"].shape[0]

    def lane_tile(v):   # per-channel vector -> (1, HW*C) matching (h, w, c) lane packing
        return jnp.tile(v.astype(jnp.float32), HW).reshape(1, -1)

    def vec(v):         # per-channel vector kept tiny: (1, C)
        return v.astype(jnp.float32).reshape(1, -1)

    r_in = jnp.tile(jnp.eye(Cin, dtype=jnp.float32), (HW, 1))     # (HW*Cin, Cin)
    r_out = jnp.tile(jnp.eye(Cout, dtype=jnp.float32), (HW, 1))   # (HW*Cout, Cout)

    return dict(
        w0=_band_conv_weights(params["conv0_w"], H, W),
        w1=_band_conv_weights(params["conv1_w"], H, W),
        w2=_band_conv_weights(params["conv2_w"], H, W),
        c0b=lane_tile(params["conv0_b"]),
        c1b=lane_tile(params["conv1_b"]),
        c2b=lane_tile(params["conv2_b"]),
        g0=vec(params["in0_w"]), b0=vec(params["in0_b"]),
        g1=vec(params["in1_w"]), b1=vec(params["in1_b"]),
        g2=vec(params["in2_w"]), b2=vec(params["in2_b"]),
        r_in=r_in, rt_in=r_in.T, r_out=r_out, rt_out=r_out.T,
    )


def _decoding_module_forward(x1, x2, prepared):
    """x1: (N, C1, D, H, W), x2: (N, C2, D, H, W) float32 -> (N, Cout, D, H, W)."""
    N, C1, D, H, W = x1.shape
    C2 = x2.shape[1]
    Cin = C1 + C2
    HW = H * W
    Cout = prepared["r_out"].shape[1]

    # Samples per grid step: raises the MXU M (= Nb*D rows per banded-weight stream) and
    # divides per-step grid overhead, while keeping grid length >= 2 for v7x megacore split.
    Nb = 2 if (N % 2 == 0 and N >= 4) else 1
    M = Nb * D

    # ---- layout glue (inside this jit) ----------------------------------------------------
    # TODO(synk): keep the model channels-last (NDHWC) end-to-end to drop these transposes.
    x = jnp.concatenate([jnp.transpose(x1, (0, 2, 3, 4, 1)),
                         jnp.transpose(x2, (0, 2, 3, 4, 1))], axis=-1)   # == cat(dim=1)
    x = x.reshape(N * D, HW * Cin).astype(jnp.float32)                   # lane-dense packing

    def const_spec(a):
        zeros = (0,) * a.ndim
        return pl.BlockSpec(a.shape, lambda n, _z=zeros: _z)

    p = prepared
    out = pl.pallas_call(
        _make_kernel(Nb, D, H, W, Cin, Cout),
        out_shape=jax.ShapeDtypeStruct((N * D, HW * Cout), jnp.float32),
        grid=(N // Nb,),
        in_specs=[
            pl.BlockSpec((M, HW * Cin), lambda n: (n, 0)),   # Nb samples per grid step
            const_spec(p["g0"]), const_spec(p["b0"]),
            const_spec(p["g1"]), const_spec(p["b1"]),
            const_spec(p["g2"]), const_spec(p["b2"]),
            const_spec(p["r_in"]), const_spec(p["rt_in"]),
            const_spec(p["r_out"]), const_spec(p["rt_out"]),
            const_spec(p["w0"]), const_spec(p["c0b"]),
            const_spec(p["w1"]), const_spec(p["c1b"]),
            const_spec(p["w2"]), const_spec(p["c2b"]),
        ],
        out_specs=pl.BlockSpec((M, HW * Cout), lambda n: (n, 0)),
        compiler_params=pltpu.CompilerParams(
            dimension_semantics=("parallel",),               # independent sample groups
            vmem_limit_bytes=32 * 1024 * 1024),
    )(x, p["g0"], p["b0"], p["g1"], p["b1"], p["g2"], p["b2"],
      p["r_in"], p["rt_in"], p["r_out"], p["rt_out"],
      p["w0"], p["c0b"], p["w1"], p["c1b"], p["w2"], p["c2b"])

    return jnp.transpose(out.reshape(N, D, H, W, Cout), (0, 4, 1, 2, 3))


decoding_module_forward = jax.jit(_decoding_module_forward)


def reference_forward(x1, x2, params):
    """Pure-JAX f32 reference (NCDHW), same semantics as DecodingModule.forward."""
    def inst_norm(y, g, b):
        mean = jnp.mean(y, axis=(2, 3, 4), keepdims=True)
        var = jnp.mean((y - mean) ** 2, axis=(2, 3, 4), keepdims=True)
        yn = (y - mean) * lax.rsqrt(var + EPS)
        return yn * g[None, :, None, None, None] + b[None, :, None, None, None]

    def lrelu(y):
        return jnp.where(y > 0, y, LEAK * y)

    def conv(y, w, b):
        o = lax.conv_general_dilated(
            y, w, window_strides=(1, 1, 1), padding=[(1, 1)] * 3,
            dimension_numbers=("NCDHW", "OIDHW", "NCDHW"))
        return o + b[None, :, None, None, None]

    x = jnp.concatenate([x1, x2], axis=1)
    h = conv(lrelu(inst_norm(x, params["in0_w"], params["in0_b"])),
             params["conv0_w"], params["conv0_b"])
    skip = h
    h = lrelu(inst_norm(h, params["in1_w"], params["in1_b"]))
    h = conv(h, params["conv1_w"], params["conv1_b"])
    h = lrelu(inst_norm(h, params["in2_w"], params["in2_b"]))
    h = conv(h, params["conv2_w"], params["conv2_b"])
    return h + skip


if __name__ == "__main__":
    # Decoder-style shapes: two 4-channel inputs concatenated -> input_channels=8,
    # output_channels=4, spatial volume 8x8x8, batch=4 (2 samples per grid step, grid=2).
    N, C1, C2, D, H, W = 4, 4, 4, 8, 8, 8
    Cin, Cout = C1 + C2, 4

    key = jax.random.PRNGKey(0)
    ks = jax.random.split(key, 14)
    params = {
        "in0_w": 1.0 + 0.1 * jax.random.normal(ks[0], (Cin,), jnp.float32),
        "in0_b": 0.1 * jax.random.normal(ks[1], (Cin,), jnp.float32),
        "in1_w": 1.0 + 0.1 * jax.random.normal(ks[2], (Cout,), jnp.float32),
        "in1_b": 0.1 * jax.random.normal(ks[3], (Cout,), jnp.float32),
        "in2_w": 1.0 + 0.1 * jax.random.normal(ks[4], (Cout,), jnp.float32),
        "in2_b": 0.1 * jax.random.normal(ks[5], (Cout,), jnp.float32),
        "conv0_w": 0.1 * jax.random.normal(ks[6], (Cout, Cin, 3, 3, 3), jnp.float32),
        "conv0_b": 0.1 * jax.random.normal(ks[7], (Cout,), jnp.float32),
        "conv1_w": 0.1 * jax.random.normal(ks[8], (Cout, Cout, 3, 3, 3), jnp.float32),
        "conv1_b": 0.1 * jax.random.normal(ks[9], (Cout,), jnp.float32),
        "conv2_w": 0.1 * jax.random.normal(ks[10], (Cout, Cout, 3, 3, 3), jnp.float32),
        "conv2_b": 0.1 * jax.random.normal(ks[11], (Cout,), jnp.float32),
    }
    x1 = jax.random.normal(ks[12], (N, C1, D, H, W), jnp.float32)
    x2 = jax.random.normal(ks[13], (N, C2, D, H, W), jnp.float32)

    # One-time parameter packing (banded weights, selectors, lane-tiled biases) — hoisted
    # out of the per-call path per the perf review.
    prepared = prepare_params(params, H, W)

    y_kernel = jax.block_until_ready(decoding_module_forward(x1, x2, prepared))
    y_ref = jax.block_until_ready(reference_forward(x1, x2, params))

    assert y_kernel.shape == (N, Cout, D, H, W)
    max_err = float(jnp.max(jnp.abs(y_kernel - y_ref)))
    # Conv matmuls run in bf16 on the MXU (f32 accumulation); 2e-2 covers bf16 rounding
    # through the three chained convs.
    assert jnp.allclose(y_kernel, y_ref, rtol=2e-2, atol=2e-2), max_err

    print("KERNEL_OK")
</pallas_src>

<mosaic_0001>
module attributes {stable_mosaic.version = 11 : i64} {
  func.func @kernel(%arg0: i32, %arg1: memref<16x512xf32, #tpu.memory_space<vmem>>, %arg2: memref<1x8xf32, #tpu.memory_space<vmem>>, %arg3: memref<1x8xf32, #tpu.memory_space<vmem>>, %arg4: memref<1x4xf32, #tpu.memory_space<vmem>>, %arg5: memref<1x4xf32, #tpu.memory_space<vmem>>, %arg6: memref<1x4xf32, #tpu.memory_space<vmem>>, %arg7: memref<1x4xf32, #tpu.memory_space<vmem>>, %arg8: memref<512x8xf32, #tpu.memory_space<vmem>>, %arg9: memref<8x512xf32, #tpu.memory_space<vmem>>, %arg10: memref<256x4xf32, #tpu.memory_space<vmem>>, %arg11: memref<4x256xf32, #tpu.memory_space<vmem>>, %arg12: memref<1536x256xbf16, #tpu.memory_space<vmem>>, %arg13: memref<1x256xf32, #tpu.memory_space<vmem>>, %arg14: memref<768x256xbf16, #tpu.memory_space<vmem>>, %arg15: memref<1x256xf32, #tpu.memory_space<vmem>>, %arg16: memref<768x256xbf16, #tpu.memory_space<vmem>>, %arg17: memref<1x256xf32, #tpu.memory_space<vmem>>, %arg18: memref<16x256xf32, #tpu.memory_space<vmem>>) attributes {dimension_semantics = [#tpu.dimension_semantics<parallel>], iteration_bounds = array<i64: 2>, scalar_prefetch = 0 : i64, scratch_operands = 0 : i64, tpu.core_type = #tpu.core_type<tc>, window_params = [{transform_indices = @transform_0, window_bounds = array<i64: 16, 512>}, {pipeline_mode = #tpu.pipeline_mode<synchronous>, transform_indices = @transform_1, window_bounds = array<i64: 1, 8>}, {pipeline_mode = #tpu.pipeline_mode<synchronous>, transform_indices = @transform_2, window_bounds = array<i64: 1, 8>}, {pipeline_mode = #tpu.pipeline_mode<synchronous>, transform_indices = @transform_3, window_bounds = array<i64: 1, 4>}, {pipeline_mode = #tpu.pipeline_mode<synchronous>, transform_indices = @transform_4, window_bounds = array<i64: 1, 4>}, {pipeline_mode = #tpu.pipeline_mode<synchronous>, transform_indices = @transform_5, window_bounds = array<i64: 1, 4>}, {pipeline_mode = #tpu.pipeline_mode<synchronous>, transform_indices = @transform_6, window_bounds = array<i64: 1, 4>}, {pipeline_mode = #tpu.pipeline_mode<synchronous>, transform_indices = @transform_7, window_bounds = array<i64: 512, 8>}, {pipeline_mode = #tpu.pipeline_mode<synchronous>, transform_indices = @transform_8, window_bounds = array<i64: 8, 512>}, {pipeline_mode = #tpu.pipeline_mode<synchronous>, transform_indices = @transform_9, window_bounds = array<i64: 256, 4>}, {pipeline_mode = #tpu.pipeline_mode<synchronous>, transform_indices = @transform_10, window_bounds = array<i64: 4, 256>}, {pipeline_mode = #tpu.pipeline_mode<synchronous>, transform_indices = @transform_11, window_bounds = array<i64: 1536, 256>}, {pipeline_mode = #tpu.pipeline_mode<synchronous>, transform_indices = @transform_12, window_bounds = array<i64: 1, 256>}, {pipeline_mode = #tpu.pipeline_mode<synchronous>, transform_indices = @transform_13, window_bounds = array<i64: 768, 256>}, {pipeline_mode = #tpu.pipeline_mode<synchronous>, transform_indices = @transform_14, window_bounds = array<i64: 1, 256>}, {pipeline_mode = #tpu.pipeline_mode<synchronous>, transform_indices = @transform_15, window_bounds = array<i64: 768, 256>}, {pipeline_mode = #tpu.pipeline_mode<synchronous>, transform_indices = @transform_16, window_bounds = array<i64: 1, 256>}, {transform_indices = @transform_17, window_bounds = array<i64: 16, 256>}]} {
    %0 = tpu.iota {dimensions = array<i32: 0>} : vector<16x1xi32>
    %c8_i32 = arith.constant 8 : i32
    %c0_i32 = arith.constant 0 : i32
    %1 = arith.cmpi eq, %c8_i32, %c0_i32 : i32
    %c1_i32 = arith.constant 1 : i32
    %2 = arith.select %1, %c1_i32, %c8_i32 : i32
    %3 = vector.broadcast %2 : i32 to vector<16x1xi32>
    %4 = arith.remsi %0, %3 : vector<16x1xi32>
    %c0_i32_0 = arith.constant 0 : i32
    %5 = vector.broadcast %c0_i32_0 : i32 to vector<16x1xi32>
    %6 = arith.cmpi ne, %4, %5 : vector<16x1xi32>
    %c0_i32_1 = arith.constant 0 : i32
    %7 = vector.broadcast %c0_i32_1 : i32 to vector<16x1xi32>
    %8 = arith.cmpi slt, %4, %7 : vector<16x1xi32>
    %c0_i32_2 = arith.constant 0 : i32
    %9 = arith.cmpi slt, %2, %c0_i32_2 : i32
    %10 = vector.broadcast %9 : i1 to vector<16x1xi1>
    %11 = vector.broadcast %10 : vector<16x1xi1> to vector<16x1xi1>
    %12 = arith.xori %8, %11 : vector<16x1xi1>
    %13 = arith.andi %12, %6 : vector<16x1xi1>
    %14 = vector.broadcast %2 : i32 to vector<16x1xi32>
    %15 = arith.addi %4, %14 : vector<16x1xi32>
    %16 = arith.select %13, %15, %4 : vector<16x1xi1>, vector<16x1xi32>
    %c0_i32_3 = arith.constant 0 : i32
    %17 = vector.broadcast %c0_i32_3 : i32 to vector<16x1xi32>
    %18 = arith.cmpi eq, %16, %17 : vector<16x1xi32>
    %c7_i32 = arith.constant 7 : i32
    %19 = vector.broadcast %c7_i32 : i32 to vector<16x1xi32>
    %20 = arith.cmpi eq, %16, %19 : vector<16x1xi32>
    %c0 = arith.constant 0 : index
    %c0_4 = arith.constant 0 : index
    %21 = vector.load %arg1[%c0, %c0_4] : memref<16x512xf32, #tpu.memory_space<vmem>>, vector<16x512xf32>
    %22 = vector.shape_cast %21 : vector<16x512xf32> to vector<2x8x512xf32>
    %cst = arith.constant dense<0.000000e+00> : vector<2x512xf32>
    %23 = vector.multi_reduction <add>, %22, %cst [1] : vector<2x8x512xf32> to vector<2x512xf32>
    %24 = arith.mulf %22, %22 : vector<2x8x512xf32>
    %cst_5 = arith.constant dense<0.000000e+00> : vector<2x512xf32>
    %25 = vector.multi_reduction <add>, %24, %cst_5 [1] : vector<2x8x512xf32> to vector<2x512xf32>
    %26 = tpu.concatenate %23, %25 in 0 : vector<2x512xf32>, vector<2x512xf32> -> vector<4x512xf32>
    %c0_6 = arith.constant 0 : index
    %c0_7 = arith.constant 0 : index
    %27 = vector.load %arg8[%c0_6, %c0_7] : memref<512x8xf32, #tpu.memory_space<vmem>>, vector<512x8xf32>
    %cst_8 = arith.constant dense<0.000000e+00> : vector<4x8xf32>
    %28 = tpu.matmul %26, %27, %cst_8 {dimension_numbers = #tpu.dot_dimension_numbers<[1], [0], [0], [1], [0, 0, 1, 1], [], []>} : vector<4x512xf32>, vector<512x8xf32>, vector<4x8xf32> -> vector<4x8xf32>
    %29 = vector.extract_strided_slice %28 {offsets = [0, 0], sizes = [2, 8], strides = [1, 1]} : vector<4x8xf32> to vector<2x8xf32>
    %cst_9 = arith.constant 0.001953125 : f32
    %30 = vector.broadcast %cst_9 : f32 to vector<2x8xf32>
    %31 = arith.mulf %29, %30 : vector<2x8xf32>
    %32 = vector.extract_strided_slice %28 {offsets = [2, 0], sizes = [2, 8], strides = [1, 1]} : vector<4x8xf32> to vector<2x8xf32>
    %cst_10 = arith.constant 0.001953125 : f32
    %33 = vector.broadcast %cst_10 : f32 to vector<2x8xf32>
    %34 = arith.mulf %32, %33 : vector<2x8xf32>
    %35 = arith.mulf %31, %31 : vector<2x8xf32>
    %36 = arith.subf %34, %35 : vector<2x8xf32>
    %cst_11 = arith.constant 0.000000e+00 : f32
    %37 = vector.broadcast %cst_11 : f32 to vector<2x8xf32>
    %38 = arith.maximumf %36, %37 : vector<2x8xf32>
    %c0_12 = arith.constant 0 : index
    %c0_13 = arith.constant 0 : index
    %39 = vector.load %arg2[%c0_12, %c0_13] : memref<1x8xf32, #tpu.memory_space<vmem>>, vector<1x8xf32>
    %cst_14 = arith.constant 9.99999974E-6 : f32
    %40 = vector.broadcast %cst_14 : f32 to vector<2x8xf32>
    %41 = arith.addf %38, %40 : vector<2x8xf32>
    %42 = math.rsqrt %41 : vector<2x8xf32>
    %43 = vector.broadcast %39 : vector<1x8xf32> to vector<2x8xf32>
    %44 = arith.mulf %43, %42 : vector<2x8xf32>
    %c0_15 = arith.constant 0 : index
    %c0_16 = arith.constant 0 : index
    %45 = vector.load %arg3[%c0_15, %c0_16] : memref<1x8xf32, #tpu.memory_space<vmem>>, vector<1x8xf32>
    %46 = arith.mulf %31, %44 : vector<2x8xf32>
    %47 = vector.broadcast %45 : vector<1x8xf32> to vector<2x8xf32>
    %48 = arith.subf %47, %46 : vector<2x8xf32>
    %49 = tpu.concatenate %44, %48 in 0 : vector<2x8xf32>, vector<2x8xf32> -> vector<4x8xf32>
    %c0_17 = arith.constant 0 : index
    %c0_18 = arith.constant 0 : index
    %50 = vector.load %arg9[%c0_17, %c0_18] : memref<8x512xf32, #tpu.memory_space<vmem>>, vector<8x512xf32>
    %cst_19 = arith.constant dense<0.000000e+00> : vector<4x512xf32>
    %51 = tpu.matmul %49, %50, %cst_19 {dimension_numbers = #tpu.dot_dimension_numbers<[1], [0], [0], [1], [0, 0, 1, 1], [], []>} : vector<4x8xf32>, vector<8x512xf32>, vector<4x512xf32> -> vector<4x512xf32>
    %52 = vector.extract_strided_slice %51 {offsets = [0, 0], sizes = [2, 512], strides = [1, 1]} : vector<4x512xf32> to vector<2x512xf32>
    %53 = vector.shape_cast %52 : vector<2x512xf32> to vector<2x1x512xf32>
    %54 = vector.broadcast %53 : vector<2x1x512xf32> to vector<2x8x512xf32>
    %55 = arith.mulf %22, %54 : vector<2x8x512xf32>
    %56 = vector.extract_strided_slice %51 {offsets = [2, 0], sizes = [2, 512], strides = [1, 1]} : vector<4x512xf32> to vector<2x512xf32>
    %57 = vector.shape_cast %56 : vector<2x512xf32> to vector<2x1x512xf32>
    %58 = vector.broadcast %57 : vector<2x1x512xf32> to vector<2x8x512xf32>
    %59 = arith.addf %55, %58 : vector<2x8x512xf32>
    %60 = vector.shape_cast %59 : vector<2x8x512xf32> to vector<16x512xf32>
    %cst_20 = arith.constant 0.00999999977 : f32
    %61 = vector.broadcast %cst_20 : f32 to vector<16x512xf32>
    %62 = arith.mulf %61, %60 : vector<16x512xf32>
    %63 = arith.maximumf %60, %62 : vector<16x512xf32>
    %cst_21 = arith.constant 0.000000e+00 : f32
    %64 = vector.broadcast %cst_21 : f32 to vector<1x512xf32>
    %65 = vector.extract_strided_slice %63 {offsets = [0, 0], sizes = [15, 512], strides = [1, 1]} : vector<16x512xf32> to vector<15x512xf32>
    %66 = tpu.concatenate %64, %65 in 0 : vector<1x512xf32>, vector<15x512xf32> -> vector<16x512xf32>
    %cst_22 = arith.constant 0.000000e+00 : f32
    %67 = vector.shape_cast %18 : vector<16x1xi1> to vector<16x1xi1>
    %68 = vector.broadcast %67 : vector<16x1xi1> to vector<16x512xi1>
    %69 = vector.broadcast %cst_22 : f32 to vector<16x512xf32>
    %70 = arith.select %68, %69, %66 : vector<16x512xi1>, vector<16x512xf32>
    %71 = vector.extract_strided_slice %63 {offsets = [1, 0], sizes = [15, 512], strides = [1, 1]} : vector<16x512xf32> to vector<15x512xf32>
    %72 = tpu.concatenate %71, %64 in 0 : vector<15x512xf32>, vector<1x512xf32> -> vector<16x512xf32>
    %cst_23 = arith.constant 0.000000e+00 : f32
    %73 = vector.shape_cast %20 : vector<16x1xi1> to vector<16x1xi1>
    %74 = vector.broadcast %73 : vector<16x1xi1> to vector<16x512xi1>
    %75 = vector.broadcast %cst_23 : f32 to vector<16x512xf32>
    %76 = arith.select %74, %75, %72 : vector<16x512xi1>, vector<16x512xf32>
    %77 = arith.truncf %70 : vector<16x512xf32> to vector<16x512xbf16>
    %78 = arith.truncf %63 : vector<16x512xf32> to vector<16x512xbf16>
    %79 = arith.truncf %76 : vector<16x512xf32> to vector<16x512xbf16>
    %80 = tpu.concatenate %77, %78, %79 in 1 : vector<16x512xbf16>, vector<16x512xbf16>, vector<16x512xbf16> -> vector<16x1536xbf16>
    %c0_24 = arith.constant 0 : index
    %c0_25 = arith.constant 0 : index
    %81 = vector.load %arg12[%c0_24, %c0_25] : memref<1536x256xbf16, #tpu.memory_space<vmem>>, vector<1536x256xbf16>
    %cst_26 = arith.constant dense<0.000000e+00> : vector<16x256xf32>
    %82 = tpu.matmul %80, %81, %cst_26 {dimension_numbers = #tpu.dot_dimension_numbers<[1], [0], [0], [1], [0, 0, 1, 1], [], []>} : vector<16x1536xbf16>, vector<1536x256xbf16>, vector<16x256xf32> -> vector<16x256xf32>
    %c0_27 = arith.constant 0 : index
    %c0_28 = arith.constant 0 : index
    %83 = vector.load %arg13[%c0_27, %c0_28] : memref<1x256xf32, #tpu.memory_space<vmem>>, vector<1x256xf32>
    %84 = vector.broadcast %83 : vector<1x256xf32> to vector<16x256xf32>
    %85 = arith.addf %82, %84 : vector<16x256xf32>
    %86 = vector.shape_cast %85 : vector<16x256xf32> to vector<2x8x256xf32>
    %cst_29 = arith.constant dense<0.000000e+00> : vector<2x256xf32>
    %87 = vector.multi_reduction <add>, %86, %cst_29 [1] : vector<2x8x256xf32> to vector<2x256xf32>
    %88 = arith.mulf %86, %86 : vector<2x8x256xf32>
    %cst_30 = arith.constant dense<0.000000e+00> : vector<2x256xf32>
    %89 = vector.multi_reduction <add>, %88, %cst_30 [1] : vector<2x8x256xf32> to vector<2x256xf32>
    %90 = tpu.concatenate %87, %89 in 0 : vector<2x256xf32>, vector<2x256xf32> -> vector<4x256xf32>
    %c0_31 = arith.constant 0 : index
    %c0_32 = arith.constant 0 : index
    %91 = vector.load %arg10[%c0_31, %c0_32] : memref<256x4xf32, #tpu.memory_space<vmem>>, vector<256x4xf32>
    %cst_33 = arith.constant dense<0.000000e+00> : vector<4x4xf32>
    %92 = tpu.matmul %90, %91, %cst_33 {dimension_numbers = #tpu.dot_dimension_numbers<[1], [0], [0], [1], [0, 0, 1, 1], [], []>} : vector<4x256xf32>, vector<256x4xf32>, vector<4x4xf32> -> vector<4x4xf32>
    %93 = vector.extract_strided_slice %92 {offsets = [0, 0], sizes = [2, 4], strides = [1, 1]} : vector<4x4xf32> to vector<2x4xf32>
    %cst_34 = arith.constant 0.001953125 : f32
    %94 = vector.broadcast %cst_34 : f32 to vector<2x4xf32>
    %95 = arith.mulf %93, %94 : vector<2x4xf32>
    %96 = vector.extract_strided_slice %92 {offsets = [2, 0], sizes = [2, 4], strides = [1, 1]} : vector<4x4xf32> to vector<2x4xf32>
    %cst_35 = arith.constant 0.001953125 : f32
    %97 = vector.broadcast %cst_35 : f32 to vector<2x4xf32>
    %98 = arith.mulf %96, %97 : vector<2x4xf32>
    %99 = arith.mulf %95, %95 : vector<2x4xf32>
    %100 = arith.subf %98, %99 : vector<2x4xf32>
    %cst_36 = arith.constant 0.000000e+00 : f32
    %101 = vector.broadcast %cst_36 : f32 to vector<2x4xf32>
    %102 = arith.maximumf %100, %101 : vector<2x4xf32>
    %c0_37 = arith.constant 0 : index
    %c0_38 = arith.constant 0 : index
    %103 = vector.load %arg4[%c0_37, %c0_38] : memref<1x4xf32, #tpu.memory_space<vmem>>, vector<1x4xf32>
    %cst_39 = arith.constant 9.99999974E-6 : f32
    %104 = vector.broadcast %cst_39 : f32 to vector<2x4xf32>
    %105 = arith.addf %102, %104 : vector<2x4xf32>
    %106 = math.rsqrt %105 : vector<2x4xf32>
    %107 = vector.broadcast %103 : vector<1x4xf32> to vector<2x4xf32>
    %108 = arith.mulf %107, %106 : vector<2x4xf32>
    %c0_40 = arith.constant 0 : index
    %c0_41 = arith.constant 0 : index
    %109 = vector.load %arg5[%c0_40, %c0_41] : memref<1x4xf32, #tpu.memory_space<vmem>>, vector<1x4xf32>
    %110 = arith.mulf %95, %108 : vector<2x4xf32>
    %111 = vector.broadcast %109 : vector<1x4xf32> to vector<2x4xf32>
    %112 = arith.subf %111, %110 : vector<2x4xf32>
    %113 = tpu.concatenate %108, %112 in 0 : vector<2x4xf32>, vector<2x4xf32> -> vector<4x4xf32>
    %c0_42 = arith.constant 0 : index
    %c0_43 = arith.constant 0 : index
    %114 = vector.load %arg11[%c0_42, %c0_43] : memref<4x256xf32, #tpu.memory_space<vmem>>, vector<4x256xf32>
    %cst_44 = arith.constant dense<0.000000e+00> : vector<4x256xf32>
    %115 = tpu.matmul %113, %114, %cst_44 {dimension_numbers = #tpu.dot_dimension_numbers<[1], [0], [0], [1], [0, 0, 1, 1], [], []>} : vector<4x4xf32>, vector<4x256xf32>, vector<4x256xf32> -> vector<4x256xf32>
    %116 = vector.extract_strided_slice %115 {offsets = [0, 0], sizes = [2, 256], strides = [1, 1]} : vector<4x256xf32> to vector<2x256xf32>
    %117 = vector.shape_cast %116 : vector<2x256xf32> to vector<2x1x256xf32>
    %118 = vector.broadcast %117 : vector<2x1x256xf32> to vector<2x8x256xf32>
    %119 = arith.mulf %86, %118 : vector<2x8x256xf32>
    %120 = vector.extract_strided_slice %115 {offsets = [2, 0], sizes = [2, 256], strides = [1, 1]} : vector<4x256xf32> to vector<2x256xf32>
    %121 = vector.shape_cast %120 : vector<2x256xf32> to vector<2x1x256xf32>
    %122 = vector.broadcast %121 : vector<2x1x256xf32> to vector<2x8x256xf32>
    %123 = arith.addf %119, %122 : vector<2x8x256xf32>
    %124 = vector.shape_cast %123 : vector<2x8x256xf32> to vector<16x256xf32>
    %cst_45 = arith.constant 0.00999999977 : f32
    %125 = vector.broadcast %cst_45 : f32 to vector<16x256xf32>
    %126 = arith.mulf %125, %124 : vector<16x256xf32>
    %127 = arith.maximumf %124, %126 : vector<16x256xf32>
    %cst_46 = arith.constant 0.000000e+00 : f32
    %128 = vector.broadcast %cst_46 : f32 to vector<1x256xf32>
    %129 = vector.extract_strided_slice %127 {offsets = [0, 0], sizes = [15, 256], strides = [1, 1]} : vector<16x256xf32> to vector<15x256xf32>
    %130 = tpu.concatenate %128, %129 in 0 : vector<1x256xf32>, vector<15x256xf32> -> vector<16x256xf32>
    %cst_47 = arith.constant 0.000000e+00 : f32
    %131 = vector.shape_cast %18 : vector<16x1xi1> to vector<16x1xi1>
    %132 = vector.broadcast %131 : vector<16x1xi1> to vector<16x256xi1>
    %133 = vector.broadcast %cst_47 : f32 to vector<16x256xf32>
    %134 = arith.select %132, %133, %130 : vector<16x256xi1>, vector<16x256xf32>
    %135 = vector.extract_strided_slice %127 {offsets = [1, 0], sizes = [15, 256], strides = [1, 1]} : vector<16x256xf32> to vector<15x256xf32>
    %136 = tpu.concatenate %135, %128 in 0 : vector<15x256xf32>, vector<1x256xf32> -> vector<16x256xf32>
    %cst_48 = arith.constant 0.000000e+00 : f32
    %137 = vector.shape_cast %20 : vector<16x1xi1> to vector<16x1xi1>
    %138 = vector.broadcast %137 : vector<16x1xi1> to vector<16x256xi1>
    %139 = vector.broadcast %cst_48 : f32 to vector<16x256xf32>
    %140 = arith.select %138, %139, %136 : vector<16x256xi1>, vector<16x256xf32>
    %141 = arith.truncf %134 : vector<16x256xf32> to vector<16x256xbf16>
    %142 = arith.truncf %127 : vector<16x256xf32> to vector<16x256xbf16>
    %143 = arith.truncf %140 : vector<16x256xf32> to vector<16x256xbf16>
    %144 = tpu.concatenate %141, %142, %143 in 1 : vector<16x256xbf16>, vector<16x256xbf16>, vector<16x256xbf16> -> vector<16x768xbf16>
    %c0_49 = arith.constant 0 : index
    %c0_50 = arith.constant 0 : index
    %145 = vector.load %arg14[%c0_49, %c0_50] : memref<768x256xbf16, #tpu.memory_space<vmem>>, vector<768x256xbf16>
    %cst_51 = arith.constant dense<0.000000e+00> : vector<16x256xf32>
    %146 = tpu.matmul %144, %145, %cst_51 {dimension_numbers = #tpu.dot_dimension_numbers<[1], [0], [0], [1], [0, 0, 1, 1], [], []>} : vector<16x768xbf16>, vector<768x256xbf16>, vector<16x256xf32> -> vector<16x256xf32>
    %c0_52 = arith.constant 0 : index
    %c0_53 = arith.constant 0 : index
    %147 = vector.load %arg15[%c0_52, %c0_53] : memref<1x256xf32, #tpu.memory_space<vmem>>, vector<1x256xf32>
    %148 = vector.broadcast %147 : vector<1x256xf32> to vector<16x256xf32>
    %149 = arith.addf %146, %148 : vector<16x256xf32>
    %150 = vector.shape_cast %149 : vector<16x256xf32> to vector<2x8x256xf32>
    %cst_54 = arith.constant dense<0.000000e+00> : vector<2x256xf32>
    %151 = vector.multi_reduction <add>, %150, %cst_54 [1] : vector<2x8x256xf32> to vector<2x256xf32>
    %152 = arith.mulf %150, %150 : vector<2x8x256xf32>
    %cst_55 = arith.constant dense<0.000000e+00> : vector<2x256xf32>
    %153 = vector.multi_reduction <add>, %152, %cst_55 [1] : vector<2x8x256xf32> to vector<2x256xf32>
    %154 = tpu.concatenate %151, %153 in 0 : vector<2x256xf32>, vector<2x256xf32> -> vector<4x256xf32>
    %c0_56 = arith.constant 0 : index
    %c0_57 = arith.constant 0 : index
    %155 = vector.load %arg10[%c0_56, %c0_57] : memref<256x4xf32, #tpu.memory_space<vmem>>, vector<256x4xf32>
    %cst_58 = arith.constant dense<0.000000e+00> : vector<4x4xf32>
    %156 = tpu.matmul %154, %155, %cst_58 {dimension_numbers = #tpu.dot_dimension_numbers<[1], [0], [0], [1], [0, 0, 1, 1], [], []>} : vector<4x256xf32>, vector<256x4xf32>, vector<4x4xf32> -> vector<4x4xf32>
    %157 = vector.extract_strided_slice %156 {offsets = [0, 0], sizes = [2, 4], strides = [1, 1]} : vector<4x4xf32> to vector<2x4xf32>
    %cst_59 = arith.constant 0.001953125 : f32
    %158 = vector.broadcast %cst_59 : f32 to vector<2x4xf32>
    %159 = arith.mulf %157, %158 : vector<2x4xf32>
    %160 = vector.extract_strided_slice %156 {offsets = [2, 0], sizes = [2, 4], strides = [1, 1]} : vector<4x4xf32> to vector<2x4xf32>
    %cst_60 = arith.constant 0.001953125 : f32
    %161 = vector.broadcast %cst_60 : f32 to vector<2x4xf32>
    %162 = arith.mulf %160, %161 : vector<2x4xf32>
    %163 = arith.mulf %159, %159 : vector<2x4xf32>
    %164 = arith.subf %162, %163 : vector<2x4xf32>
    %cst_61 = arith.constant 0.000000e+00 : f32
    %165 = vector.broadcast %cst_61 : f32 to vector<2x4xf32>
    %166 = arith.maximumf %164, %165 : vector<2x4xf32>
    %c0_62 = arith.constant 0 : index
    %c0_63 = arith.constant 0 : index
    %167 = vector.load %arg6[%c0_62, %c0_63] : memref<1x4xf32, #tpu.memory_space<vmem>>, vector<1x4xf32>
    %cst_64 = arith.constant 9.99999974E-6 : f32
    %168 = vector.broadcast %cst_64 : f32 to vector<2x4xf32>
    %169 = arith.addf %166, %168 : vector<2x4xf32>
    %170 = math.rsqrt %169 : vector<2x4xf32>
    %171 = vector.broadcast %167 : vector<1x4xf32> to vector<2x4xf32>
    %172 = arith.mulf %171, %170 : vector<2x4xf32>
    %c0_65 = arith.constant 0 : index
    %c0_66 = arith.constant 0 : index
    %173 = vector.load %arg7[%c0_65, %c0_66] : memref<1x4xf32, #tpu.memory_space<vmem>>, vector<1x4xf32>
    %174 = arith.mulf %159, %172 : vector<2x4xf32>
    %175 = vector.broadcast %173 : vector<1x4xf32> to vector<2x4xf32>
    %176 = arith.subf %175, %174 : vector<2x4xf32>
    %177 = tpu.concatenate %172, %176 in 0 : vector<2x4xf32>, vector<2x4xf32> -> vector<4x4xf32>
    %c0_67 = arith.constant 0 : index
    %c0_68 = arith.constant 0 : index
    %178 = vector.load %arg11[%c0_67, %c0_68] : memref<4x256xf32, #tpu.memory_space<vmem>>, vector<4x256xf32>
    %cst_69 = arith.constant dense<0.000000e+00> : vector<4x256xf32>
    %179 = tpu.matmul %177, %178, %cst_69 {dimension_numbers = #tpu.dot_dimension_numbers<[1], [0], [0], [1], [0, 0, 1, 1], [], []>} : vector<4x4xf32>, vector<4x256xf32>, vector<4x256xf32> -> vector<4x256xf32>
    %180 = vector.extract_strided_slice %179 {offsets = [0, 0], sizes = [2, 256], strides = [1, 1]} : vector<4x256xf32> to vector<2x256xf32>
    %181 = vector.shape_cast %180 : vector<2x256xf32> to vector<2x1x256xf32>
    %182 = vector.broadcast %181 : vector<2x1x256xf32> to vector<2x8x256xf32>
    %183 = arith.mulf %150, %182 : vector<2x8x256xf32>
    %184 = vector.extract_strided_slice %179 {offsets = [2, 0], sizes = [2, 256], strides = [1, 1]} : vector<4x256xf32> to vector<2x256xf32>
    %185 = vector.shape_cast %184 : vector<2x256xf32> to vector<2x1x256xf32>
    %186 = vector.broadcast %185 : vector<2x1x256xf32> to vector<2x8x256xf32>
    %187 = arith.addf %183, %186 : vector<2x8x256xf32>
    %188 = vector.shape_cast %187 : vector<2x8x256xf32> to vector<16x256xf32>
    %cst_70 = arith.constant 0.00999999977 : f32
    %189 = vector.broadcast %cst_70 : f32 to vector<16x256xf32>
    %190 = arith.mulf %189, %188 : vector<16x256xf32>
    %191 = arith.maximumf %188, %190 : vector<16x256xf32>
    %cst_71 = arith.constant 0.000000e+00 : f32
    %192 = vector.broadcast %cst_71 : f32 to vector<1x256xf32>
    %193 = vector.extract_strided_slice %191 {offsets = [0, 0], sizes = [15, 256], strides = [1, 1]} : vector<16x256xf32> to vector<15x256xf32>
    %194 = tpu.concatenate %192, %193 in 0 : vector<1x256xf32>, vector<15x256xf32> -> vector<16x256xf32>
    %cst_72 = arith.constant 0.000000e+00 : f32
    %195 = vector.shape_cast %18 : vector<16x1xi1> to vector<16x1xi1>
    %196 = vector.broadcast %195 : vector<16x1xi1> to vector<16x256xi1>
    %197 = vector.broadcast %cst_72 : f32 to vector<16x256xf32>
    %198 = arith.select %196, %197, %194 : vector<16x256xi1>, vector<16x256xf32>
    %199 = vector.extract_strided_slice %191 {offsets = [1, 0], sizes = [15, 256], strides = [1, 1]} : vector<16x256xf32> to vector<15x256xf32>
    %200 = tpu.concatenate %199, %192 in 0 : vector<15x256xf32>, vector<1x256xf32> -> vector<16x256xf32>
    %cst_73 = arith.constant 0.000000e+00 : f32
    %201 = vector.shape_cast %20 : vector<16x1xi1> to vector<16x1xi1>
    %202 = vector.broadcast %201 : vector<16x1xi1> to vector<16x256xi1>
    %203 = vector.broadcast %cst_73 : f32 to vector<16x256xf32>
    %204 = arith.select %202, %203, %200 : vector<16x256xi1>, vector<16x256xf32>
    %205 = arith.truncf %198 : vector<16x256xf32> to vector<16x256xbf16>
    %206 = arith.truncf %191 : vector<16x256xf32> to vector<16x256xbf16>
    %207 = arith.truncf %204 : vector<16x256xf32> to vector<16x256xbf16>
    %208 = tpu.concatenate %205, %206, %207 in 1 : vector<16x256xbf16>, vector<16x256xbf16>, vector<16x256xbf16> -> vector<16x768xbf16>
    %c0_74 = arith.constant 0 : index
    %c0_75 = arith.constant 0 : index
    %209 = vector.load %arg16[%c0_74, %c0_75] : memref<768x256xbf16, #tpu.memory_space<vmem>>, vector<768x256xbf16>
    %cst_76 = arith.constant dense<0.000000e+00> : vector<16x256xf32>
    %210 = tpu.matmul %208, %209, %cst_76 {dimension_numbers = #tpu.dot_dimension_numbers<[1], [0], [0], [1], [0, 0, 1, 1], [], []>} : vector<16x768xbf16>, vector<768x256xbf16>, vector<16x256xf32> -> vector<16x256xf32>
    %c0_77 = arith.constant 0 : index
    %c0_78 = arith.constant 0 : index
    %211 = vector.load %arg17[%c0_77, %c0_78] : memref<1x256xf32, #tpu.memory_space<vmem>>, vector<1x256xf32>
    %212 = vector.broadcast %211 : vector<1x256xf32> to vector<16x256xf32>
    %213 = arith.addf %210, %212 : vector<16x256xf32>
    %214 = arith.addf %213, %85 : vector<16x256xf32>
    %c0_79 = arith.constant 0 : index
    %c0_80 = arith.constant 0 : index
    %215 = vector.load %arg18[%c0_79, %c0_80] : memref<16x256xf32, #tpu.memory_space<vmem>>, vector<16x256xf32>
    tpu.vector_store %arg18[%c0_79, %c0_80], %214 {strides = array<i32>} : memref<16x256xf32, #tpu.memory_space<vmem>>, vector<16x256xf32>,
    return
  }
  func.func @transform_0(%arg0: i32) -> (i32, i32) {
    %c0_i32 = arith.constant 0 : i32
    %c0_i32_0 = arith.constant 0 : i32
    return %arg0, %c0_i32 : i32, i32
  }
  func.func @transform_1(%arg0: i32) -> (i32, i32) {
    %c0_i32 = arith.constant 0 : i32
    %c0_i32_0 = arith.constant 0 : i32
    %c0_i32_1 = arith.constant 0 : i32
    return %c0_i32, %c0_i32_0 : i32, i32
  }
  func.func @transform_2(%arg0: i32) -> (i32, i32) {
    %c0_i32 = arith.constant 0 : i32
    %c0_i32_0 = arith.constant 0 : i32
    %c0_i32_1 = arith.constant 0 : i32
    return %c0_i32, %c0_i32_0 : i32, i32
  }
  func.func @transform_3(%arg0: i32) -> (i32, i32) {
    %c0_i32 = arith.constant 0 : i32
    %c0_i32_0 = arith.constant 0 : i32
    %c0_i32_1 = arith.constant 0 : i32
    return %c0_i32, %c0_i32_0 : i32, i32
  }
  func.func @transform_4(%arg0: i32) -> (i32, i32) {
    %c0_i32 = arith.constant 0 : i32
    %c0_i32_0 = arith.constant 0 : i32
    %c0_i32_1 = arith.constant 0 : i32
    return %c0_i32, %c0_i32_0 : i32, i32
  }
  func.func @transform_5(%arg0: i32) -> (i32, i32) {
    %c0_i32 = arith.constant 0 : i32
    %c0_i32_0 = arith.constant 0 : i32
    %c0_i32_1 = arith.constant 0 : i32
    return %c0_i32, %c0_i32_0 : i32, i32
  }
  func.func @transform_6(%arg0: i32) -> (i32, i32) {
    %c0_i32 = arith.constant 0 : i32
    %c0_i32_0 = arith.constant 0 : i32
    %c0_i32_1 = arith.constant 0 : i32
    return %c0_i32, %c0_i32_0 : i32, i32
  }
  func.func @transform_7(%arg0: i32) -> (i32, i32) {
    %c0_i32 = arith.constant 0 : i32
    %c0_i32_0 = arith.constant 0 : i32
    %c0_i32_1 = arith.constant 0 : i32
    return %c0_i32, %c0_i32_0 : i32, i32
  }
  func.func @transform_8(%arg0: i32) -> (i32, i32) {
    %c0_i32 = arith.constant 0 : i32
    %c0_i32_0 = arith.constant 0 : i32
    %c0_i32_1 = arith.constant 0 : i32
    return %c0_i32, %c0_i32_0 : i32, i32
  }
  func.func @transform_9(%arg0: i32) -> (i32, i32) {
    %c0_i32 = arith.constant 0 : i32
    %c0_i32_0 = arith.constant 0 : i32
    %c0_i32_1 = arith.constant 0 : i32
    return %c0_i32, %c0_i32_0 : i32, i32
  }
  func.func @transform_10(%arg0: i32) -> (i32, i32) {
    %c0_i32 = arith.constant 0 : i32
    %c0_i32_0 = arith.constant 0 : i32
    %c0_i32_1 = arith.constant 0 : i32
    return %c0_i32, %c0_i32_0 : i32, i32
  }
  func.func @transform_11(%arg0: i32) -> (i32, i32) {
    %c0_i32 = arith.constant 0 : i32
    %c0_i32_0 = arith.constant 0 : i32
    %c0_i32_1 = arith.constant 0 : i32
    return %c0_i32, %c0_i32_0 : i32, i32
  }
  func.func @transform_12(%arg0: i32) -> (i32, i32) {
    %c0_i32 = arith.constant 0 : i32
    %c0_i32_0 = arith.constant 0 : i32
    %c0_i32_1 = arith.constant 0 : i32
    return %c0_i32, %c0_i32_0 : i32, i32
  }
  func.func @transform_13(%arg0: i32) -> (i32, i32) {
    %c0_i32 = arith.constant 0 : i32
    %c0_i32_0 = arith.constant 0 : i32
    %c0_i32_1 = arith.constant 0 : i32
    return %c0_i32, %c0_i32_0 : i32, i32
  }
  func.func @transform_14(%arg0: i32) -> (i32, i32) {
    %c0_i32 = arith.constant 0 : i32
    %c0_i32_0 = arith.constant 0 : i32
    %c0_i32_1 = arith.constant 0 : i32
    return %c0_i32, %c0_i32_0 : i32, i32
  }
  func.func @transform_15(%arg0: i32) -> (i32, i32) {
    %c0_i32 = arith.constant 0 : i32
    %c0_i32_0 = arith.constant 0 : i32
    %c0_i32_1 = arith.constant 0 : i32
    return %c0_i32, %c0_i32_0 : i32, i32
  }
  func.func @transform_16(%arg0: i32) -> (i32, i32) {
    %c0_i32 = arith.constant 0 : i32
    %c0_i32_0 = arith.constant 0 : i32
    %c0_i32_1 = arith.constant 0 : i32
    return %c0_i32, %c0_i32_0 : i32, i32
  }
  func.func @transform_17(%arg0: i32) -> (i32, i32) {
    %c0_i32 = arith.constant 0 : i32
    %c0_i32_0 = arith.constant 0 : i32
    return %arg0, %c0_i32 : i32, i32
  }
}

</mosaic_0001>

<bundles_post_ra>
// kernel: _decoding_module_forward.1
= control target key start
LH: loop header
LB: loop body
LE: loop exit
PB: predicated region body
PF: predicated region fallthrough
CT: control target
= control target key end

     0   :  { %s7068_s24 = smov 0   ;;  %s10375_s0 = inlined_call_operand.vmem [shape: f32[32,512], index: 0, kind: input, shape index: {}]   ;;  %s10376_s1 = inlined_call_operand.vmem [shape: f32[1,8], index: 1, kind: input, shape index: {}]   ;;  %s10377_s2 = inlined_call_operand.vmem [shape: f32[1,8], index: 2, kind: input, shape index: {}]   ;;  %s10378_s3 = inlined_call_operand.vmem [shape: f32[1,4], index: 3, kind: input, shape index: {}]   ;;  %s10379_s4 = inlined_call_operand.vmem [shape: f32[1,4], index: 4, kind: input, shape index: {}]   ;;  %s10380_s5 = inlined_call_operand.vmem [shape: f32[1,4], index: 5, kind: input, shape index: {}]   ;;  %s10381_s6 = inlined_call_operand.vmem [shape: f32[1,4], index: 6, kind: input, shape index: {}]   ;;  %s10382_s7 = inlined_call_operand.vmem [shape: f32[512,8], index: 7, kind: input, shape index: {}]   ;;  %s10383_s8 = inlined_call_operand.vmem [shape: f32[8,512], index: 8, kind: input, shape index: {}]   ;;  %s10384_s9 = inlined_call_operand.vmem [shape: f32[256,4], index: 9, kind: input, shape index: {}]   ;;  %s10385_s10 = inlined_call_operand.vmem [shape: f32[4,256], index: 10, kind: input, shape index: {}]   ;;  %s10386_s11 = inlined_call_operand.vmem [shape: bf16[1536,256], index: 11, kind: input, shape index: {}]   ;;  %s10387_s12 = inlined_call_operand.vmem [shape: f32[1,256], index: 12, kind: input, shape index: {}]   ;;  %s10388_s13 = inlined_call_operand.vmem [shape: bf16[768,256], index: 13, kind: input, shape index: {}]   ;;  %s10389_s14 = inlined_call_operand.vmem [shape: f32[1,256], index: 14, kind: input, shape index: {}]   ;;  %s10390_s15 = inlined_call_operand.vmem [shape: bf16[768,256], index: 15, kind: input, shape index: {}]   ;;  %s10391_s16 = inlined_call_operand.vmem [shape: f32[1,256], index: 16, kind: input, shape index: {}]   ;;  %s10392_s17 = inlined_call_operand.vmem [shape: f32[32,256], index: 17, kind: output, shape index: {}]  }
   0x1   :  { %10393 = sst [smem:[#allocation2_spill]] %s10375_s0 }
   0x2   :  { %10394 = sst [smem:[#allocation3_spill]] %s10376_s1 }
   0x3 LB: > { %s4969_s25 = sadd.s32 4294967295, %s6976_s24   ;;  %p4973_p0 = scmp.ge.s32.totalorder %s6976_s24, 1  ;;  %s6976_s24 = sphi %s7068_s24, %s27_s24  }
   0x4   : > { %p489_p1 = scmp.lt.s32.totalorder %s6976_s24, 3 }
   0x6   : > { %p490_p2 = pnand %p4973_p0, %p489_p1 }
   0x7   : > { %s7103_s30 = sshll.u32 (!%p490_p2), %s4969_s25, 1  ;;  %s10395_s28 = sld [smem:[#allocation2_spill]] (!%p490_p2) }
   0x8   : > { %493 = sbr.rel (%p490_p2) target bundleno = 1722 (0x6ba), region = 88  ;;  %p544_p3 = scmp.lt.s32.totalorder (!%p490_p2), %s7103_s30, 3 }
   0x9   : > { %s10396_s27 = sld [smem:[#allocation3_spill]] (!%p490_p2) }
   0xd   : > { %v786_v0 = vld [vmem:[%s10382_s7 + $0x178] sm:$0xff]  ;;  %v785_v1 = vld [vmem:[%s10382_s7 + $0x170] sm:$0xff]  ;;  %v784_v5 = vld [vmem:[%s10382_s7 + $0x168] sm:$0xff]  ;;  %s10410_s30 = smov (!%p544_p3, %s7103_s30), 3  ;;  %vm708_vm0 = vcmask 1041409   ;;  %vm725_vm1 = vcmask 1043459  }
   0xe   : > { %v802_v2 = vld [vmem:[%s10382_s7 + $0x1f8] sm:$0xff]  ;;  %843 = vmatpush.msra.mxu2 %v786_v0  ;;  %v801_v6 = vld [vmem:[%s10382_s7 + $0x1f0] sm:$0xff]  ;;  %v800_v9 = vld [vmem:[%s10382_s7 + $0x1e8] sm:$0xff]  ;;  %s6530_s25 = sshll.u32 %s10410_s30, 5  ;;  %vm734_vm2 = vcmask 1041408   ;;  %vm923_vm6 = vcmask 64512  }
   0xf   : > { %863 = vmatpush.msra.mxu3 %v802_v2  ;;  %v754_v3 = vld [vmem:[%s10382_s7 + $0x78] sm:$0xff]  ;;  %v753_v7 = vld [vmem:[%s10382_s7 + $0x70] sm:$0xff]  ;;  %v752_v10 = vld [vmem:[%s10382_s7 + $0x68] sm:$0xff]  ;;  %s7202_s29 = scalar_lea.vmem %s10395_s28, %s6530_s25  ;;  %vm1014_vm7 = vcmask 1040384   ;;  %vm1016_vm8 = vcmask 1042434   ;;  %vm1021_vm9 = vcmask 1042433  }
  0x10   : > { %v770_v4 = vld [vmem:[%s10382_s7 + $0xf8] sm:$0xff]  ;;  %803 = vmatpush.msra.mxu0 %v754_v3  ;;  %v769_v8 = vld [vmem:[%s10382_s7 + $0xf0] sm:$0xff]  ;;  %844 = vmatpush.msra.mxu2 %v785_v1  ;;  %v783_v11 = vld [vmem:[%s10382_s7 + $0x160] sm:$0xff]  ;;  %vm1140_vm12 = vcmask 1046528   ;;  %vm2930_vm15 = vcmask 1043456   ;;  %s6531_s1 = sshll.u32 %s10410_s30, 4 }
  0x11   : > { %823 = vmatpush.msra.mxu1 %v770_v4  ;;  %864 = vmatpush.msra.mxu3 %v801_v6  ;;  %v768_v12 = vld [vmem:[%s10382_s7 + $0xe8] sm:$0xff]  ;;  %v799_v13 = vld [vmem:[%s10382_s7 + $0x1e0] sm:$0xff]  ;;  %v782_v16 = vld [vmem:[%s10382_s7 + $0x158] sm:$0xff]  ;;  %s10362_s25 = scalar_lea.vmem %s10392_s17, %s6531_s1 }
  0x12   : > { %804 = vmatpush.msra.mxu0 %v753_v7  ;;  %845 = vmatpush.msra.mxu2 %v784_v5  ;;  %v751_v14 = vld [vmem:[%s10382_s7 + $0x60] sm:$0xff]  ;;  %v798_v17 = vld [vmem:[%s10382_s7 + $0x1d8] sm:$0xff]  ;;  %v781_v20 = vld [vmem:[%s10382_s7 + $0x150] sm:$0xff] }
  0x13   : > { %824 = vmatpush.msra.mxu1 %v769_v8  ;;  %865 = vmatpush.msra.mxu3 %v800_v9  ;;  %v767_v15 = vld [vmem:[%s10382_s7 + $0xe0] sm:$0xff]  ;;  %v750_v18 = vld [vmem:[%s10382_s7 + $0x58] sm:$0xff]  ;;  %v797_v21 = vld [vmem:[%s10382_s7 + $0x1d0] sm:$0xff] }
  0x14   : > { %805 = vmatpush.msra.mxu0 %v752_v10  ;;  %846 = vmatpush.msra.mxu2 %v783_v11  ;;  %v766_v19 = vld [vmem:[%s10382_s7 + $0xd8] sm:$0xff]  ;;  %v749_v22 = vld [vmem:[%s10382_s7 + $0x50] sm:$0xff]  ;;  %v780_v24 = vld [vmem:[%s10382_s7 + $0x148] sm:$0xff] }
  0x15   : > { %825 = vmatpush.msra.mxu1 %v768_v12  ;;  %866 = vmatpush.msra.mxu3 %v799_v13  ;;  %v765_v23 = vld [vmem:[%s10382_s7 + $0xd0] sm:$0xff]  ;;  %v796_v25 = vld [vmem:[%s10382_s7 + $0x1c8] sm:$0xff]  ;;  %v779_v28 = vld [vmem:[%s10382_s7 + $0x140] sm:$0xff] }
  0x16   : > { %806 = vmatpush.msra.mxu0 %v751_v14  ;;  %847 = vmatpush.msra.mxu2 %v782_v16  ;;  %v748_v26 = vld [vmem:[%s10382_s7 + $0x48] sm:$0xff]  ;;  %v795_v29 = vld [vmem:[%s10382_s7 + $0x1c0] sm:$0xff]  ;;  %v778_v32 = vld [vmem:[%s10382_s7 + $0x138] sm:$0xff] }
  0x17   : > { %826 = vmatpush.msra.mxu1 %v767_v15  ;;  %867 = vmatpush.msra.mxu3 %v798_v17  ;;  %v764_v27 = vld [vmem:[%s10382_s7 + $0xc8] sm:$0xff]  ;;  %v747_v30 = vld [vmem:[%s10382_s7 + $0x40] sm:$0xff]  ;;  %v794_v33 = vld [vmem:[%s10382_s7 + $0x1b8] sm:$0xff] }
  0x18   : > { %807 = vmatpush.msra.mxu0 %v750_v18  ;;  %848 = vmatpush.msra.mxu2 %v781_v20  ;;  %v763_v31 = vld [vmem:[%s10382_s7 + $0xc0] sm:$0xff]  ;;  %v746_v34 = vld [vmem:[%s10382_s7 + $0x38] sm:$0xff]  ;;  %v777_v36 = vld [vmem:[%s10382_s7 + $0x130] sm:$0xff] }
  0x19   : > { %827 = vmatpush.msra.mxu1 %v766_v19  ;;  %868 = vmatpush.msra.mxu3 %v797_v21  ;;  %v762_v35 = vld [vmem:[%s10382_s7 + $0xb8] sm:$0xff]  ;;  %v793_v37 = vld [vmem:[%s10382_s7 + $0x1b0] sm:$0xff]  ;;  %v776_v40 = vld [vmem:[%s10382_s7 + $0x128] sm:$0xff] }
  0x1a   : > { %808 = vmatpush.msra.mxu0 %v749_v22  ;;  %849 = vmatpush.msra.mxu2 %v780_v24  ;;  %v745_v38 = vld [vmem:[%s10382_s7 + $0x30] sm:$0xff]  ;;  %v775_v41 = vld [vmem:[%s10382_s7 + $0x120] sm:$0xff]  ;;  %v792_v42 = vld [vmem:[%s10382_s7 + $0x1a8] sm:$0xff] }
  0x1b   : > { %828 = vmatpush.msra.mxu1 %v765_v23  ;;  %869 = vmatpush.msra.mxu3 %v796_v25  ;;  %v761_v39 = vld [vmem:[%s10382_s7 + $0xb0] sm:$0xff]  ;;  %v744_v43 = vld [vmem:[%s10382_s7 + $0x28] sm:$0xff]  ;;  %v774_v46 = vld [vmem:[%s10382_s7 + $0x118] sm:$0xff] }
  0x1c   : > { %809 = vmatpush.msra.mxu0 %v748_v26  ;;  %850 = vmatpush.msra.mxu2 %v779_v28  ;;  %v760_v44 = vld [vmem:[%s10382_s7 + $0xa8] sm:$0xff]  ;;  %v590_v45 = vld [vmem:[%s7202_s29 + $0x10] sm:$0xff]  ;;  %v791_v47 = vld [vmem:[%s10382_s7 + $0x1a0] sm:$0xff] }
  0x1d   : > { %829 = vmatpush.msra.mxu1 %v764_v27  ;;  %870 = vmatpush.msra.mxu3 %v795_v29  ;;  %v743_v48 = vld [vmem:[%s10382_s7 + $0x20] sm:$0xff]  ;;  %v594_v49 = vld [vmem:[%s7202_s29 + $0x30] sm:$0xff]  ;;  %v608_v50 = vrot.slane %v590_v45, 4  ;;  %v646_v51 = vmul.f32 %v590_v45, %v590_v45  ;;  %v7240_v55 = vld [vmem:[%s7202_s29 + $0x18] sm:$0xff] }
  0x1e   : > { %810 = vmatpush.msra.mxu0 %v747_v30  ;;  %851 = vmatpush.msra.mxu2 %v778_v32  ;;  %v759_v52 = vld [vmem:[%s10382_s7 + $0xa0] sm:$0xff]  ;;  %v632_v53 = vrot.slane %v594_v49, 4  ;;  %v650_v54 = vmul.f32 %v594_v49, %v594_v49  ;;  %v7243_v56 = vld [vmem:[%s7202_s29 + $0x38] sm:$0xff]  ;;  %v773_v57 = vld [vmem:[%s10382_s7 + $0x110] sm:$0xff]  ;;  %v614_v62 = vrot.slane %v7240_v55, 4  ;;  %v647_v5 = vmul.f32 %v7240_v55, %v7240_v55 }
  0x1f   : > { %830 = vmatpush.msra.mxu1 %v763_v31  ;;  %871 = vmatpush.msra.mxu3 %v794_v33  ;;  %v790_v58 = vld [vmem:[%s10382_s7 + $0x198] sm:$0xff]  ;;  %v609_v60 = vadd.f32 %v608_v50, %v590_v45  ;;  %v664_v61 = vrot.slane %v646_v51, 4  ;;  %v638_v63 = vrot.slane %v7243_v56, 4  ;;  %v789_v1 = vld [vmem:[%s10382_s7 + $0x190] sm:$0xff]  ;;  %v651_v6 = vmul.f32 %v7243_v56, %v7243_v56  ;;  %v772_v7 = vld [vmem:[%s10382_s7 + $0x108] sm:$0xff] }
  0x20   : > { %811 = vmatpush.msra.mxu0 %v746_v34  ;;  %852 = vmatpush.msra.mxu2 %v777_v36  ;;  %v742_v59 = vld [vmem:[%s10382_s7 + $0x18] sm:$0xff]  ;;  %v741_v2 = vld [vmem:[%s10382_s7 + $0x10] sm:$0xff]  ;;  %v633_v3 = vadd.f32 %v632_v53, %v594_v49  ;;  %v688_v4 = vrot.slane %v650_v54, 4  ;;  %v615_v11 = vadd.f32 %v614_v62, %v7240_v55  ;;  %v788_v13 = vld [vmem:[%s10382_s7 + $0x188] sm:$0xff]  ;;  %v670_v16 = vrot.slane %v647_v5, 4 }
  0x21   : > { %831 = vmatpush.msra.mxu1 %v762_v35  ;;  %872 = vmatpush.msra.mxu3 %v793_v37  ;;  %v758_v0 = vld [vmem:[%s10382_s7 + $0x98] sm:$0xff]  ;;  %v757_v8 = vld [vmem:[%s10382_s7 + $0x90] sm:$0xff]  ;;  %v610_v9 = vrot.slane %v609_v60, 2  ;;  %v665_v10 = vadd.f32 %v664_v61, %v646_v51  ;;  %v639_v12 = vadd.f32 %v638_v63, %v7243_v56  ;;  %v694_v17 = vrot.slane %v651_v6, 4  ;;  %v740_v20 = vld [vmem:[%s10382_s7 + $0x8] sm:$0xff] }
  0x22   : > { %812 = vmatpush.msra.mxu0 %v745_v38  ;;  %853 = vmatpush.msra.mxu2 %v776_v40  ;;  %v634_v14 = vrot.slane %v633_v3, 2  ;;  %v689_v15 = vadd.f32 %v688_v4, %v650_v54  ;;  %v616_v21 = vrot.slane %v615_v11, 2  ;;  %v756_v25 = vld [vmem:[%s10382_s7 + $0x88] sm:$0xff]  ;;  %v671_v26 = vadd.f32 %v670_v16, %v647_v5  ;;  %v771_v28 = vld [vmem:[%s10382_s7 + $0x100] sm:$0xff] }
  0x23   : > { %832 = vmatpush.msra.mxu1 %v761_v39  ;;  %873 = vmatpush.msra.mxu3 %v792_v42  ;;  %v611_v18 = vadd.f32 %v610_v9, %v609_v60  ;;  %v666_v19 = vrot.slane %v665_v10, 2  ;;  %v640_v22 = vrot.slane %v639_v12, 2  ;;  %v695_v27 = vadd.f32 %v694_v17, %v651_v6  ;;  %v787_v31 = vld [vmem:[%s10382_s7 + $0x180] sm:$0xff]  ;;  %v7320_v9 = vld [vmem:[%s7202_s29 + $0x28] sm:$0xff] }
  0x24   : > { %813 = vmatpush.msra.mxu0 %v744_v43  ;;  %854 = vmatpush.msra.mxu2 %v775_v41  ;;  %v635_v23 = vadd.f32 %v634_v14, %v633_v3  ;;  %v690_v24 = vrot.slane %v689_v15, 2  ;;  %v617_v32 = vadd.f32 %v616_v21, %v615_v11  ;;  %v672_v36 = vrot.slane %v671_v26, 2  ;;  %v739_v38 = vld [vmem:[%s10382_s7] sm:$0xff] }
  0x25   : > { %833 = vmatpush.msra.mxu1 %v760_v44  ;;  %874 = vmatpush.msra.mxu3 %v791_v47  ;;  %v612_v29 = vrot.slane %v611_v18, 1  ;;  %v667_v30 = vadd.f32 %v666_v19, %v665_v10  ;;  %v641_v33 = vadd.f32 %v640_v22, %v639_v12  ;;  %v696_v37 = vrot.slane %v695_v27, 2  ;;  %v755_v39 = vld [vmem:[%s10382_s7 + $0x80] sm:$0xff] }
  0x26   : > { %814 = vmatpush.msra.mxu0 %v743_v48  ;;  %855 = vmatpush.msra.mxu2 %v774_v46  ;;  %v636_v34 = vrot.slane %v635_v23, 1  ;;  %v691_v35 = vadd.f32 %v690_v24, %v689_v15  ;;  %v618_v42 = vrot.slane %v617_v32, 1  ;;  %v673_v46 = vadd.f32 %v672_v36, %v671_v26  ;;  %v7299_v48 = vld [vmem:[%s7202_s29] sm:$0xff] }
  0x27   : > { %834 = vmatpush.msra.mxu1 %v759_v52  ;;  %875 = vmatpush.msra.mxu3 %v790_v58  ;;  %v613_v40 = vadd.f32 %v612_v29, %v611_v18  ;;  %v668_v41 = vrot.slane %v667_v30, 1  ;;  %v642_v43 = vrot.slane %v641_v33, 1  ;;  %v697_v47 = vadd.f32 %v696_v37, %v695_v27  ;;  %v7302_v52 = vld [vmem:[%s7202_s29 + $0x20] sm:$0xff] }
  0x28   : > { %815 = vmatpush.msra.mxu0 %v742_v59  ;;  %856 = vmatpush.msra.mxu2 %v773_v57  ;;  %v637_v44 = vadd.f32 %v636_v34, %v635_v23  ;;  %v692_v45 = vrot.slane %v691_v35, 1  ;;  %v619_v50 = vadd.f32 %v618_v42, %v617_v32  ;;  %v596_v53 = vrot.slane %v7299_v48, 4 }
  0x29   : > { %835 = vmatpush.msra.mxu1 %v758_v0  ;;  %876 = vmatpush.msra.mxu3 %v789_v1  ;;  %v669_v49 = vadd.f32 %v668_v41, %v667_v30  ;;  %v643_v51 = vadd.f32 %v642_v43, %v641_v33  ;;  %v674_v58 = vrot.slane %v673_v46, 1  ;;  %v698_v59 = vrot.slane %v697_v47, 1 }
  0x2a   : > { %816 = vmatpush.msra.mxu0 %v741_v2  ;;  %857 = vmatpush.msra.mxu2 %v772_v7  ;;  %v693_v54 = vadd.f32 %v692_v45, %v691_v35  ;;  %v711_v57 = vsel %vm708_vm0, %v637_v44, %v613_v40  ;;  %v597_v61 = vadd.f32 %v596_v53, %v7299_v48  ;;  %v620_v62 = vrot.slane %v7302_v52, 4 }
  0x2b   : > { %836 = vmatpush.msra.mxu1 %v757_v8  ;;  %877 = vmatpush.msra.mxu3 %v788_v13  ;;  %v712_v60 = vsel %vm708_vm0, %v643_v51, %v619_v50  ;;  %v644_v63 = vmul.f32 %v7299_v48, %v7299_v48  ;;  %v675_v1 = vadd.f32 %v674_v58, %v673_v46  ;;  %v7317_v8 = vld [vmem:[%s7202_s29 + $0x8] sm:$0xff]  ;;  %v626_v13 = vrot.slane %v7320_v9, 4 }
  0x2c   : > { %817 = vmatpush.msra.mxu0 %v740_v20  ;;  %858 = vmatpush.msra.mxu2 %v771_v28  ;;  %v728_v0 = vsel %vm725_vm1, %v693_v54, %v669_v49  ;;  %v699_v2 = vadd.f32 %v698_v59, %v697_v47  ;;  %v648_v3 = vmul.f32 %v7302_v52, %v7302_v52  ;;  %v598_v5 = vrot.slane %v597_v61, 2 }
  0x2d   : > { %837 = vmatpush.msra.mxu1 %v756_v25  ;;  %878 = vmatpush.msra.mxu3 %v787_v31  ;;  %v737_v4 = vsel %vm734_vm2, %v711_v57, %v728_v0  ;;  %v621_v6 = vadd.f32 %v620_v62, %v7302_v52  ;;  %v652_v7 = vrot.slane %v644_v63, 4  ;;  %v602_v12 = vrot.slane %v7317_v8, 4 }
  0x2e   : > { %818 = vmatpush.msra.mxu0 %v739_v38  ;;  %859 = vmatmul.f32.vlgmr.msra.gmra.mxu2 %v737_v4  ;;  %v729_v10 = vsel %vm725_vm1, %v699_v2, %v675_v1  ;;  %v676_v11 = vrot.slane %v648_v3, 4  ;;  %v599_v15 = vadd.f32 %v598_v5, %v597_v61  ;;  %v627_v20 = vadd.f32 %v626_v13, %v7320_v9 }
  0x2f   : > { %838 = vmatpush.msra.mxu1 %v755_v39  ;;  %v738_v14 = vsel %vm734_vm2, %v712_v60, %v729_v10  ;;  %v622_v16 = vrot.slane %v621_v6, 2  ;;  %v653_v17 = vadd.f32 %v652_v7, %v644_v63  ;;  %v603_v19 = vadd.f32 %v602_v12, %v7317_v8 }
  0x30   : > { %879 = vmatmul.f32.vlgmr.msra.gmra.mxu3 %v738_v14  ;;  %v677_v18 = vadd.f32 %v676_v11, %v648_v3  ;;  %v645_v21 = vmul.f32 %v7317_v8, %v7317_v8  ;;  %v600_v22 = vrot.slane %v599_v15, 1  ;;  %v649_v25 = vmul.f32 %v7320_v9, %v7320_v9  ;;  %v919_v14 = vld [vmem:[%s10383_s8] sm:$0xff] }
  0x31   : > { %v623_v23 = vadd.f32 %v622_v16, %v621_v6  ;;  %v654_v24 = vrot.slane %v653_v17, 2  ;;  %v604_v27 = vrot.slane %v603_v19, 2  ;;  %v628_v28 = vrot.slane %v627_v20, 2  ;;  %v921_v16 = vld [vmem:[%s10383_s8 + $0x10] sm:$0xff]  ;;  %942 = vmatpush.msrb.mxu0 %v919_v14  ;;  %v6539_v14 = vld [vmem:[%s10386_s11 + $0x34] sm:$0xf0] }
  0x32   : > { %v678_v26 = vrot.slane %v677_v18, 2  ;;  %v658_v29 = vrot.slane %v645_v21, 4  ;;  %v601_v30 = vadd.f32 %v600_v22, %v599_v15  ;;  %v682_v33 = vrot.slane %v649_v25, 4  ;;  %v920_v15 = vld [vmem:[%s10383_s8 + $0x8] sm:$0xff]  ;;  %982 = vmatpush.msrb.mxu2 %v921_v16  ;;  %v6547_v22 = vld [vmem:[%s10386_s11 + $0x74] sm:$0xf0] }
  0x33   : > { %v624_v31 = vrot.slane %v623_v23, 1  ;;  %v655_v32 = vadd.f32 %v654_v24, %v653_v17  ;;  %v605_v35 = vadd.f32 %v604_v27, %v603_v19  ;;  %v629_v36 = vadd.f32 %v628_v28, %v627_v20  ;;  %962 = vmatpush.msrb.mxu1 %v920_v15  ;;  %v922_v17 = vld [vmem:[%s10383_s8 + $0x18] sm:$0xff]  ;;  %v5106_v24 = vld [vmem:[%s10386_s11 + $0xf0] sm:$0xf] }
  0x34   : > { %v679_v34 = vadd.f32 %v678_v26, %v677_v18  ;;  %v659_v37 = vadd.f32 %v658_v29, %v645_v21  ;;  %v683_v40 = vadd.f32 %v682_v33, %v649_v25  ;;  %1002 = vmatpush.msrb.mxu3 %v922_v17  ;;  %v5042_v21 = vld [vmem:[%s10386_s11 + $0x70] sm:$0xf]  ;;  %v6563_v25 = vld [vmem:[%s10386_s11 + $0xf4] sm:$0xf0]  ;;  %v5034_v33 = vld [vmem:[%s10386_s11 + $0x60] sm:$0xf] }
  0x35   : > { %v625_v38 = vadd.f32 %v624_v31, %v623_v23  ;;  %v656_v39 = vrot.slane %v655_v32, 1  ;;  %v606_v42 = vrot.slane %v605_v35, 1  ;;  %v630_v43 = vrot.slane %v629_v36, 1  ;;  %v5170_v26 = vld [vmem:[%s10386_s11 + $0x170] sm:$0xf] }
  0x36   : > { %v680_v41 = vrot.slane %v679_v34, 1  ;;  %v660_v44 = vrot.slane %v659_v37, 2  ;;  %v684_v46 = vrot.slane %v683_v40, 2  ;;  %v5043_v23 = vor.u32 %v6547_v22, %v5042_v21  ;;  %v6579_v28 = vld [vmem:[%s10386_s11 + $0x174] sm:$0xf0] }
  0x37   : > { %v657_v45 = vadd.f32 %v656_v39, %v655_v32  ;;  %v709_v49 = vsel %vm708_vm0, %v625_v38, %v601_v30  ;;  %v607_v51 = vadd.f32 %v606_v42, %v605_v35  ;;  %v631_v53 = vadd.f32 %v630_v43, %v629_v36  ;;  %v5234_v29 = vld [vmem:[%s10386_s11 + $0x1f0] sm:$0xf]  ;;  %v6595_v30 = vld [vmem:[%s10386_s11 + $0x1f4] sm:$0xf0]  ;;  %v5098_v35 = vld [vmem:[%s10386_s11 + $0xe0] sm:$0xf] }
  0x38   : > { %v681_v47 = vadd.f32 %v680_v41, %v679_v34  ;;  %v661_v50 = vadd.f32 %v660_v44, %v659_v37  ;;  %v685_v54 = vadd.f32 %v684_v46, %v683_v40  ;;  %v5107_v27 = vor.u32 %v6563_v25, %v5106_v24  ;;  %v6545_v34 = vld [vmem:[%s10386_s11 + $0x64] sm:$0xf0]  ;;  %v5162_v38 = vld [vmem:[%s10386_s11 + $0x160] sm:$0xf]  ;;  %v5026_v44 = vld [vmem:[%s10386_s11 + $0x50] sm:$0xf] }
  0x39   : > { %v710_v63 = vsel %vm708_vm0, %v631_v53, %v607_v51  ;;  %v5171_v31 = vor.u32 %v6579_v28, %v5170_v26  ;;  %v5235_v32 = vor.u32 %v6595_v30, %v5234_v29  ;;  %v5035_v36 = vor.u32 %v6545_v34, %v5034_v33  ;;  %v6561_v37 = vld [vmem:[%s10386_s11 + $0xe4] sm:$0xf0]  ;;  %v5226_v42 = vld [vmem:[%s10386_s11 + $0x1e0] sm:$0xf]  ;;  %v6543_v46 = vld [vmem:[%s10386_s11 + $0x54] sm:$0xf0] }
  0x3a   : > { %v726_v57 = vsel %vm725_vm1, %v681_v47, %v657_v45  ;;  %v662_v58 = vrot.slane %v661_v50, 1  ;;  %v686_v60 = vrot.slane %v685_v54, 1  ;;  %v6577_v39 = vld [vmem:[%s10386_s11 + $0x164] sm:$0xf0]  ;;  %v5099_v40 = vor.u32 %v6561_v37, %v5098_v35  ;;  %v5090_v47 = vld [vmem:[%s10386_s11 + $0xd0] sm:$0xf] }
  0x3b   : > { %v735_v59 = vsel %vm734_vm2, %v709_v49, %v726_v57  ;;  %2435 = vmatpush.bf16.msra.mxu2 %v5171_v31  ;;  %2449 = vmatpush.bf16.msra.mxu3 %v5235_v32  ;;  %v5163_v41 = vor.u32 %v6577_v39, %v5162_v38  ;;  %v6593_v43 = vld [vmem:[%s10386_s11 + $0x1e4] sm:$0xf0]  ;;  %v6559_v49 = vld [vmem:[%s10386_s11 + $0xd4] sm:$0xf0]  ;;  %v5154_v51 = vld [vmem:[%s10386_s11 + $0x150] sm:$0xf] }
  0x3c   : > { %819 = vmatmul.f32.vlgmr.msra.gmra.mxu0 %v735_v59  ;;  %v663_v61 = vadd.f32 %v662_v58, %v661_v50  ;;  %v687_v62 = vadd.f32 %v686_v60, %v685_v54  ;;  %v5227_v45 = vor.u32 %v6593_v43, %v5226_v42  ;;  %v5027_v50 = vor.u32 %v6543_v46, %v5026_v44  ;;  %v6575_v53 = vld [vmem:[%s10386_s11 + $0x154] sm:$0xf0]  ;;  %v5218_v54 = vld [vmem:[%s10386_s11 + $0x1d0] sm:$0xf]  ;;  %v5018_v60 = vld [vmem:[%s10386_s11 + $0x40] sm:$0xf] }
  0x3d   : > { %2407 = vmatpush.bf16.msra.mxu0 %v5043_v23  ;;  %v5091_v58 = vor.u32 %v6559_v49, %v5090_v47  ;;  %v6591_v59 = vld [vmem:[%s10386_s11 + $0x1d4] sm:$0xf0]  ;;  %v5074_v15 = vld [vmem:[%s10386_s11 + $0xb0] sm:$0xf]  ;;  %v6924_v26 = vld [vmem:[%s10396_s27] ss:$0 sm:$0xff] }
  0x3e   : > { %v727_v0 = vsel %vm725_vm1, %v687_v62, %v663_v61  ;;  %v6541_v61 = vld [vmem:[%s10386_s11 + $0x44] sm:$0xf0]  ;;  %v5138_v21 = vld [vmem:[%s10386_s11 + $0x130] sm:$0xf]  ;;  %v6571_v22 = vld [vmem:[%s10386_s11 + $0x134] sm:$0xf0] }
  0x3f   : > { %v736_v1 = vsel %vm734_vm2, %v710_v63, %v727_v0  ;;  %2436 = vmatpush.bf16.msra.mxu2 %v5163_v41  ;;  %2450 = vmatpush.bf16.msra.mxu3 %v5227_v45  ;;  %v5155_v63 = vor.u32 %v6575_v53, %v5154_v51  ;;  %v5219_v0 = vor.u32 %v6591_v59, %v5218_v54  ;;  %v5202_v23 = vld [vmem:[%s10386_s11 + $0x1b0] sm:$0xf]  ;;  %v6587_v24 = vld [vmem:[%s10386_s11 + $0x1b4] sm:$0xf0]  ;;  %v5002_v30 = vld [vmem:[%s10386_s11 + $0x20] sm:$0xf] }
  0x40   : > { %839 = vmatmul.f32.vlgmr.msra.gmra.mxu1 %v736_v1  ;;  %v5082_v1 = vld [vmem:[%s10386_s11 + $0xc0] sm:$0xf]  ;;  %v5139_v32 = vor.u32 %v6571_v22, %v5138_v21  ;;  %v5203_v33 = vor.u32 %v6587_v24, %v5202_v23  ;;  %v6553_v35 = vld [vmem:[%s10386_s11 + $0xa4] sm:$0xf0]  ;;  %v4994_v45 = vld [vmem:[%s10386_s11 + $0x10] sm:$0xf] }
  0x41   : > { %2421 = vmatpush.bf16.msra.mxu1 %v5107_v27  ;;  %2408 = vmatpush.bf16.msra.mxu0 %v5035_v36  ;;  %v5066_v34 = vld [vmem:[%s10386_s11 + $0xa0] sm:$0xf]  ;;  %v6569_v37 = vld [vmem:[%s10386_s11 + $0x124] sm:$0xf0]  ;;  %v6535_v46 = vld [vmem:[%s10386_s11 + $0x14] sm:$0xf0] }
  0x42   : > { %v5130_v36 = vld [vmem:[%s10386_s11 + $0x120] sm:$0xf]  ;;  %v6585_v39 = vld [vmem:[%s10386_s11 + $0x1a4] sm:$0xf0]  ;;  %v5067_v44 = vor.u32 %v6553_v35, %v5066_v34  ;;  %v5058_v47 = vld [vmem:[%s10386_s11 + $0x90] sm:$0xf] }
  0x43   : > { %2437 = vmatpush.bf16.msra.mxu2 %v5155_v63  ;;  %2451 = vmatpush.bf16.msra.mxu3 %v5219_v0  ;;  %v5194_v38 = vld [vmem:[%s10386_s11 + $0x1a0] sm:$0xf]  ;;  %v5131_v49 = vor.u32 %v6569_v37, %v5130_v36  ;;  %v6551_v51 = vld [vmem:[%s10386_s11 + $0x94] sm:$0xf0]  ;;  %v5122_v53 = vld [vmem:[%s10386_s11 + $0x110] sm:$0xf] }
  0x44   : > { %v6925_v43 = vld [vmem:[%s10377_s2] ss:$0 sm:$0xff]  ;;  %v6567_v54 = vld [vmem:[%s10386_s11 + $0x114] sm:$0xf0]  ;;  %v5362_v21 = vld [vmem:[%s10386_s11 + $0x2f0] sm:$0xf] }
  0x45   : > { %2422 = vmatpush.bf16.msra.mxu1 %v5099_v40  ;;  %2409 = vmatpush.bf16.msra.mxu0 %v5027_v50  ;;  %v5195_v50 = vor.u32 %v6585_v39, %v5194_v38  ;;  %v6583_v59 = vld [vmem:[%s10386_s11 + $0x194] sm:$0xf0]  ;;  %v5123_v63 = vor.u32 %v6567_v54, %v5122_v53  ;;  %v5426_v24 = vld [vmem:[%s10386_s11 + $0x370] sm:$0xf]  ;;  %v6625_v34 = vld [vmem:[%s10386_s11 + $0x2e4] sm:$0xf0] }
  0x46   : > { %v6627_v23 = vld [vmem:[%s10386_s11 + $0x2f4] sm:$0xf0]  ;;  %v5490_v28 = vld [vmem:[%s10386_s11 + $0x3f0] sm:$0xf]  ;;  %v5418_v35 = vld [vmem:[%s10386_s11 + $0x360] sm:$0xf] }
  0x47   : > { %v6641_v37 = vld [vmem:[%s10386_s11 + $0x364] sm:$0xf0]  ;;  %v5482_v38 = vld [vmem:[%s10386_s11 + $0x3e0] sm:$0xf]  ;;  %v5474_v53 = vld [vmem:[%s10386_s11 + $0x3d0] sm:$0xf] }
  0x48   : > { %v5419_v39 = vor.u32 %v6641_v37, %v5418_v35  ;;  %v6655_v54 = vld [vmem:[%s10386_s11 + $0x3d4] sm:$0xf0] }
  0x49   : > { %2423 = vmatpush.bf16.msra.mxu1 %v5091_v58  ;;  %v5186_v58 = vld [vmem:[%s10386_s11 + $0x190] sm:$0xf]  ;;  %v6615_v35 = vld [vmem:[%s10386_s11 + $0x294] sm:$0xf0] }
  0x4a   : > { %v5187_v0 = vor.u32 %v6583_v59, %v5186_v58  ;;  %v5274_v58 = vld [vmem:[%s10386_s11 + $0x240] sm:$0xf]  ;;  %v6605_v59 = vld [vmem:[%s10386_s11 + $0x244] sm:$0xf0] }
  0xb1   : > { %v860_v4 = vpop.f32.mrf.mxu2 }
  0xb3   : > { %v880_v6 = vpop.f32.mrf.mxu3 }
  0xb9   : > { %v820_v2 = vpop.f32.mrf.mxu0 }
  0xbd   : > { %v840_v3 = vpop.f32.mrf.mxu1 }
  0xbe   : > { %v841_v5 = vadd.f32 %v840_v3, %v820_v2  ;;  %v6557_v2 = vld [vmem:[%s10386_s11 + $0xc4] sm:$0xf0]  ;;  %v5146_v3 = vld [vmem:[%s10386_s11 + $0x140] sm:$0xf] }
  0xc0   : > { %v861_v7 = vadd.f32 %v860_v4, %v841_v5  ;;  %v6573_v4 = vld [vmem:[%s10386_s11 + $0x144] sm:$0xf0]  ;;  %v5210_v5 = vld [vmem:[%s10386_s11 + $0x1c0] sm:$0xf] }
  0xc1   : > { %v5147_v17 = vor.u32 %v6573_v4, %v5146_v3  ;;  %v6533_v4 = vld [vmem:[%s10386_s11 + $0x4] sm:$0xf0] }
  0xc2   : > { %v881_v10 = vadd.f32 %v880_v6, %v861_v7  ;;  %v5019_v7 = vor.u32 %v6541_v61, %v5018_v60  ;;  %v4995_v60 = vor.u32 %v6535_v46, %v4994_v45  ;;  %v6623_v46 = vld [vmem:[%s10386_s11 + $0x2d4] sm:$0xf0] }
  0xc3   : > { %2438 = vmatpush.bf16.msra.mxu2 %v5147_v17 }
  0xc4   : > { %v7338_v11 = vmul.f32 0.001953125, %v881_v10  ;;  %v6589_v10 = vld [vmem:[%s10386_s11 + $0x1c4] sm:$0xf0]  ;;  %2410 = vmatpush.bf16.msra.mxu0 %v5019_v7 }
  0xc5   : > { %v6549_v7 = vld [vmem:[%s10386_s11 + $0x84] sm:$0xf0] }
  0xc6   : > { %v884_v12 = vmul.f32 %v7338_v11, %v7338_v11 }
  0xc7   : > { %2439 = vmatpush.bf16.msra.mxu2 %v5139_v32 }
  0xc8   : > { %v886_v13 = vrot.slane %v884_v12, 6  ;;  %v5083_v12 = vor.u32 %v6557_v2, %v5082_v1 }
  0xca   : > { %v888_v18 = vsub.f32 %v7338_v11, %v886_v13  ;;  %v5010_v13 = vld [vmem:[%s10386_s11 + $0x30] sm:$0xf]  ;;  %2424 = vmatpush.bf16.msra.mxu1 %v5083_v12 }
  0xcb   : > { %v5011_v27 = vor.u32 %v6539_v14, %v5010_v13  ;;  %2440 = vmatpush.bf16.msra.mxu2 %v5131_v49  ;;  %v6565_v13 = vld [vmem:[%s10386_s11 + $0x104] sm:$0xf0]  ;;  %v5178_v14 = vld [vmem:[%s10386_s11 + $0x180] sm:$0xf]  ;;  %v6639_v49 = vld [vmem:[%s10386_s11 + $0x354] sm:$0xf0] }
  0xcc   : > { %v889_v19 = vmax.f32 %v888_v18, 0.0  ;;  %v5211_v18 = vor.u32 %v6589_v10, %v5210_v5  ;;  %v5114_v10 = vld [vmem:[%s10386_s11 + $0x100] sm:$0xf] }
  0xcd   : > { %2411 = vmatpush.bf16.msra.mxu0 %v5011_v27 }
  0xce   : > { %v7355_v20 = vadd.f32 1e-05, %v889_v19  ;;  %v6555_v19 = vld [vmem:[%s10386_s11 + $0xb4] sm:$0xf0]  ;;  %2452 = vmatpush.bf16.msra.mxu3 %v5211_v18  ;;  %v5298_v18 = vld [vmem:[%s10386_s11 + $0x270] sm:$0xf] }
  0xcf   : > { %v5075_v29 = vor.u32 %v6555_v19, %v5074_v15  ;;  %2441 = vmatpush.bf16.msra.mxu2 %v5123_v63  ;;  %v6581_v15 = vld [vmem:[%s10386_s11 + $0x184] sm:$0xf0]  ;;  %v6611_v19 = vld [vmem:[%s10386_s11 + $0x274] sm:$0xf0]  ;;  %v5402_v63 = vld [vmem:[%s10386_s11 + $0x340] sm:$0xf] }
  0xd0   : > { %6930 = vrsqrt.f32 %v7355_v20  ;;  %vm898_vm4 = vweird.f32 %v7355_v20  ;;  %v5179_v17 = vor.u32 %v6581_v15, %v5178_v14  ;;  %v5299_v22 = vor.u32 %v6611_v19, %v5298_v18  ;;  %v6635_v14 = vld [vmem:[%s10386_s11 + $0x334] sm:$0xf0]  ;;  %v5258_v19 = vld [vmem:[%s10386_s11 + $0x220] sm:$0xf] }
  0xd1   : > { %2425 = vmatpush.bf16.msra.mxu1 %v5075_v29  ;;  %v6659_v29 = vld [vmem:[%s10386_s11 + $0x3f4] sm:$0xf0] }
  0xd2   : > { %2453 = vmatpush.bf16.msra.mxu3 %v5203_v33  ;;  %v5354_v33 = vld [vmem:[%s10386_s11 + $0x2e0] sm:$0xf]  ;;  %v6651_v18 = vld [vmem:[%s10386_s11 + $0x3b4] sm:$0xf0] }
  0xd3   : > { %v5355_v36 = vor.u32 %v6625_v34, %v5354_v33  ;;  %v5314_v34 = vld [vmem:[%s10386_s11 + $0x290] sm:$0xf] }
  0xd5   : > { %2426 = vmatpush.bf16.msra.mxu1 %v5067_v44  ;;  %v5346_v44 = vld [vmem:[%s10386_s11 + $0x2d0] sm:$0xf] }
  0xd6   : > { %v6931_v57 = vpop.eup %6930  ;;  %2454 = vmatpush.bf16.msra.mxu3 %v5195_v50  ;;  %v5347_v50 = vor.u32 %v6623_v46, %v5346_v44  ;;  %v6613_v46 = vld [vmem:[%s10386_s11 + $0x284] sm:$0xf0] }
  0xd7   : > { %v893_v62 = vmul.f32 %v6931_v57, %v7355_v20  ;;  %vm899_vm3 = vweird.f32 %v6931_v57  ;;  %v6537_v20 = vld [vmem:[%s10386_s11 + $0x24] sm:$0xf0] }
  0xd8   : > { %vm7484_vm5 = vmor %vm898_vm4, %vm899_vm3  ;;  %v5003_v41 = vor.u32 %v6537_v20, %v5002_v30  ;;  %v5491_v30 = vor.u32 %v6659_v29, %v5490_v28  ;;  %v5290_v20 = vld [vmem:[%s10386_s11 + $0x260] sm:$0xf]  ;;  %v6633_v28 = vld [vmem:[%s10386_s11 + $0x324] sm:$0xf0] }
  0xd9   : > { %v894_v6 = vmul.f32 %v6931_v57, %v893_v62  ;;  %v5059_v62 = vor.u32 %v6551_v51, %v5058_v47  ;;  %v5410_v47 = vld [vmem:[%s10386_s11 + $0x350] sm:$0xf]  ;;  %v5450_v29 = vld [vmem:[%s10386_s11 + $0x3a0] sm:$0xf] }
  0xda   : > { %2412 = vmatpush.bf16.msra.mxu0 %v5003_v41  ;;  %2455 = vmatpush.bf16.msra.mxu3 %v5187_v0  ;;  %v5411_v51 = vor.u32 %v6639_v49, %v5410_v47  ;;  %v6637_v0 = vld [vmem:[%s10386_s11 + $0x344] sm:$0xf0]  ;;  %v5370_v49 = vld [vmem:[%s10386_s11 + $0x300] sm:$0xf] }
  0xdb   : > { %v895_v16 = vmul.f32 0.5, %v894_v6  ;;  %2427 = vmatpush.bf16.msra.mxu1 %v5059_v62  ;;  %v5050_v6 = vld [vmem:[%s10386_s11 + $0x80] sm:$0xf]  ;;  %v6621_v62 = vld [vmem:[%s10386_s11 + $0x2c4] sm:$0xf0] }
  0xdc   : > { %v5051_v12 = vor.u32 %v6549_v7, %v5050_v6  ;;  %v6603_v6 = vld [vmem:[%s10386_s11 + $0x234] sm:$0xf0]  ;;  %v5330_v7 = vld [vmem:[%s10386_s11 + $0x2b0] sm:$0xf] }
  0xdd   : > { %v896_v25 = vsub.f32 1.5, %v895_v16  ;;  %v5115_v16 = vor.u32 %v6565_v13, %v5114_v10  ;;  %v5394_v13 = vld [vmem:[%s10386_s11 + $0x330] sm:$0xf] }
  0xde   : > { %2413 = vmatpush.bf16.msra.mxu0 %v4995_v60  ;;  %2456 = vmatpush.bf16.msra.mxu3 %v5179_v17  ;;  %v5338_v60 = vld [vmem:[%s10386_s11 + $0x2c0] sm:$0xf]  ;;  %v5458_v17 = vld [vmem:[%s10386_s11 + $0x3b0] sm:$0xf] }
  0xdf   : > { %v897_v31 = vmul.f32 %v6931_v57, %v896_v25  ;;  %2428 = vmatpush.bf16.msra.mxu1 %v5051_v12  ;;  %v6643_v25 = vld [vmem:[%s10386_s11 + $0x374] sm:$0xf0]  ;;  %2442 = vmatpush.bf16.msra.mxu2 %v5115_v16  ;;  %v5395_v16 = vor.u32 %v6635_v14, %v5394_v13 }
  0xe0   : > { %v5427_v27 = vor.u32 %v6643_v25, %v5426_v24  ;;  %v6619_v12 = vld [vmem:[%s10386_s11 + $0x2b4] sm:$0xf0]  ;;  %v6617_v24 = vld [vmem:[%s10386_s11 + $0x2a4] sm:$0xf0] }
  0xe1   : > { %v901_v40 = vsel %vm7484_vm5, %v6931_v57, %v897_v31  ;;  %v6609_v31 = vld [vmem:[%s10386_s11 + $0x264] sm:$0xf0]  ;;  %v5331_v15 = vor.u32 %v6619_v12, %v5330_v7 }
  0xe2   : > { %v905_v42 = vmul.f32 %v6924_v26, %v901_v40  ;;  %v5363_v26 = vor.u32 %v6627_v23, %v5362_v21  ;;  %v5291_v32 = vor.u32 %v6609_v31, %v5290_v20  ;;  %v6657_v40 = vld [vmem:[%s10386_s11 + $0x3e4] sm:$0xf0]  ;;  %v5459_v21 = vor.u32 %v6651_v18, %v5458_v17  ;;  %v5322_v23 = vld [vmem:[%s10386_s11 + $0x2a0] sm:$0xf]  ;;  %v5250_v31 = vld [vmem:[%s10386_s11 + $0x210] sm:$0xf] }
  0xe3   : > { %v5483_v41 = vor.u32 %v6657_v40, %v5482_v38  ;;  %v6649_v20 = vld [vmem:[%s10386_s11 + $0x3a4] sm:$0xf0]  ;;  %v6631_v38 = vld [vmem:[%s10386_s11 + $0x314] sm:$0xf0] }
  0xe4   : > { %v908_v57 = vrot.slane %v905_v42, 2  ;;  %v5282_v42 = vld [vmem:[%s10386_s11 + $0x250] sm:$0xf]  ;;  %v5451_v33 = vor.u32 %v6649_v20, %v5450_v29  ;;  %v6647_v40 = vld [vmem:[%s10386_s11 + $0x394] sm:$0xf0] }
  0xe6   : > { %v910_v61 = vmul.f32 %v908_v57, %v7338_v11  ;;  %v4986_v11 = vld [vmem:[%s10386_s11] sm:$0xf] }
  0xe7   : > { %v4987_v5 = vor.u32 %v6533_v4, %v4986_v11  ;;  %v6653_v11 = vld [vmem:[%s10386_s11 + $0x3c4] sm:$0xf0] }
  0xe8   : > { %v914_v1 = vsub.f32 %v6925_v43, %v910_v61  ;;  %v6607_v43 = vld [vmem:[%s10386_s11 + $0x254] sm:$0xf0]  ;;  %v5275_v61 = vor.u32 %v6605_v59, %v5274_v58 }
  0xe9   : > { %2414 = vmatpush.bf16.msra.mxu0 %v4987_v5  ;;  %v5283_v45 = vor.u32 %v6607_v43, %v5282_v42  ;;  %v5266_v5 = vld [vmem:[%s10386_s11 + $0x230] sm:$0xf]  ;;  %v5242_v42 = vld [vmem:[%s10386_s11 + $0x200] sm:$0xf]  ;;  %v6597_v43 = vld [vmem:[%s10386_s11 + $0x204] sm:$0xf0] }
  0xea   : > { %v916_v2 = vrot.slane %v914_v1, 6  ;;  %v5339_v1 = vor.u32 %v6621_v62, %v5338_v60  ;;  %v5267_v10 = vor.u32 %v6603_v6, %v5266_v5 }
  0xec   : > { %v918_v3 = vsel %vm734_vm2, %v908_v57, %v916_v2  ;;  %v5475_v57 = vor.u32 %v6655_v54, %v5474_v53  ;;  %v5403_v2 = vor.u32 %v6637_v0, %v5402_v63  ;;  %v5434_v53 = vld [vmem:[%s10386_s11 + $0x380] sm:$0xf]  ;;  %v6645_v54 = vld [vmem:[%s10386_s11 + $0x384] sm:$0xf0] }
  0xed   : > { %4980 = vmatmul.msk.f32.vlgmr.msrb.gmra.mxu0 %vm923_vm6, %v918_v3  ;;  %4981 = vmatmul.msk.f32.vlgmr.msrb.gmra.mxu1 %vm923_vm6, %v918_v3  ;;  %v5435_v62 = vor.u32 %v6645_v54, %v5434_v53 }
  0xee   : > { %4982 = vmatmul.msk.f32.vlgmr.msrb.gmra.mxu2 %vm923_vm6, %v918_v3  ;;  %4983 = vmatmul.msk.f32.vlgmr.msrb.gmra.mxu3 %vm923_vm6, %v918_v3  ;;  %v5466_v3 = vld [vmem:[%s10386_s11 + $0x3c0] sm:$0xf]  ;;  %vm2926_vm6 = vcmask 31744  }
  0xef   : > { %2463 = vmatpush.bf16.msrb.mxu0 %v5299_v22  ;;  %2477 = vmatpush.bf16.msrb.mxu1 %v5363_v26  ;;  %v5467_v4 = vor.u32 %v6653_v11, %v5466_v3  ;;  %v6601_v22 = vld [vmem:[%s10386_s11 + $0x224] sm:$0xf0]  ;;  %v5323_v26 = vor.u32 %v6617_v24, %v5322_v23 }
  0xf0   : > { %2491 = vmatpush.bf16.msrb.mxu2 %v5427_v27  ;;  %2505 = vmatpush.bf16.msrb.mxu3 %v5491_v30  ;;  %v5259_v25 = vor.u32 %v6601_v22, %v5258_v19  ;;  %v5386_v27 = vld [vmem:[%s10386_s11 + $0x320] sm:$0xf] }
  0xf1   : > { %v5387_v30 = vor.u32 %v6633_v28, %v5386_v27  ;;  %v6936_v28 = vld [vmem:[%s7202_s29 + $0x10] sm:$0xff] }
  0xf3   : > { %2464 = vmatpush.bf16.msrb.mxu0 %v5291_v32  ;;  %2478 = vmatpush.bf16.msrb.mxu1 %v5355_v36  ;;  %v6599_v32 = vld [vmem:[%s10386_s11 + $0x214] sm:$0xf0]  ;;  %v5378_v36 = vld [vmem:[%s10386_s11 + $0x310] sm:$0xf] }
  0xf4   : > { %2492 = vmatpush.bf16.msrb.mxu2 %v5419_v39  ;;  %2506 = vmatpush.bf16.msrb.mxu3 %v5483_v41  ;;  %v5251_v37 = vor.u32 %v6599_v32, %v5250_v31  ;;  %v5442_v39 = vld [vmem:[%s10386_s11 + $0x390] sm:$0xf]  ;;  %v5315_v41 = vor.u32 %v6615_v35, %v5314_v34  ;;  %v5379_v44 = vor.u32 %v6631_v38, %v5378_v36 }
  0xf5   : > { %v5443_v47 = vor.u32 %v6647_v40, %v5442_v39  ;;  %v6937_v32 = vld [vmem:[%s7202_s29 + $0x30] sm:$0xff] }
  0xf7   : > { %2465 = vmatpush.bf16.msrb.mxu0 %v5283_v45  ;;  %2479 = vmatpush.bf16.msrb.mxu1 %v5347_v50  ;;  %v5306_v45 = vld [vmem:[%s10386_s11 + $0x280] sm:$0xf]  ;;  %v6629_v50 = vld [vmem:[%s10386_s11 + $0x304] sm:$0xf0] }
  0xf8   : > { %2493 = vmatpush.bf16.msrb.mxu2 %v5411_v51  ;;  %2507 = vmatpush.bf16.msrb.mxu3 %v5475_v57  ;;  %v5243_v51 = vor.u32 %v6597_v43, %v5242_v42  ;;  %v5307_v59 = vor.u32 %v6613_v46, %v5306_v45  ;;  %v5371_v60 = vor.u32 %v6629_v50, %v5370_v49 }
  0xfb   : > { %2466 = vmatpush.bf16.msrb.mxu0 %v5275_v61  ;;  %2480 = vmatpush.bf16.msrb.mxu1 %v5339_v1  ;;  %v557_v61 = vlaneseq }
  0xfc   : > { %2494 = vmatpush.bf16.msrb.mxu2 %v5403_v2  ;;  %2508 = vmatpush.bf16.msrb.mxu3 %v5467_v4 }
  0xfd   : > { %v7759_v63 = vshrl.u32 %v557_v61, 7 }
  0xff   : > { %2467 = vmatpush.bf16.msrb.mxu0 %v5267_v10  ;;  %2481 = vmatpush.bf16.msrb.mxu1 %v5331_v15  ;;  %v7762_v4 = vadd.s32 8, %v7759_v63  ;;  %v564_v19 = vand.u32 7, %v7759_v63  ;;  %v7993_v63 = vld [vmem:[%s10386_s11 + $0x534] sm:$0xf0] }
 0x100   : > { %2495 = vmatpush.bf16.msrb.mxu2 %v5395_v16  ;;  %2509 = vmatpush.bf16.msrb.mxu3 %v5459_v21 }
 0x101   : > { %v571_v21 = vand.u32 7, %v7762_v4  ;;  %vm7780_vm10 = vcmp.eq.s32.totalorder %v564_v19, 0  ;;  %vm7979_vm13 = vcmp.eq.s32.totalorder %v564_v19, 7  ;;  %v7998_v19 = vld [vmem:[%s10386_s11 + $0x5b0] sm:$0xf] }
 0x103   : > { %2468 = vmatpush.bf16.msrb.mxu0 %v5259_v25  ;;  %2482 = vmatpush.bf16.msrb.mxu1 %v5323_v26  ;;  %vm7786_vm11 = vcmp.eq.s32.totalorder %v571_v21, 0  ;;  %vm8070_vm14 = vcmp.eq.s32.totalorder %v571_v21, 7 }
 0x104   : > { %2496 = vmatpush.bf16.msrb.mxu2 %v5387_v30  ;;  %2510 = vmatpush.bf16.msrb.mxu3 %v5451_v33 }
 0x107   : > { %2469 = vmatpush.bf16.msrb.mxu0 %v5251_v37  ;;  %2483 = vmatpush.bf16.msrb.mxu1 %v5315_v41 }
 0x108   : > { %2497 = vmatpush.bf16.msrb.mxu2 %v5379_v44  ;;  %2511 = vmatpush.bf16.msrb.mxu3 %v5443_v47 }
 0x10b   : > { %2470 = vmatpush.bf16.msrb.mxu0 %v5243_v51  ;;  %2484 = vmatpush.bf16.msrb.mxu1 %v5307_v59 }
 0x10c   : > { %2498 = vmatpush.bf16.msrb.mxu2 %v5371_v60  ;;  %2512 = vmatpush.bf16.msrb.mxu3 %v5435_v62 }
 0x16a   : > { %v944_v57 = vpop.f32.mrf.mxu0  ;;  %v964_v58 = vpop.f32.mrf.mxu1 }
 0x16b   : > { %1048 = vst [vmem:[#allocation1] sm:$0xff] %v944_v57  ;;  %v1011_v0 = vrot.slane %v964_v58, 7 }
 0x16c   : > { %1049 = vst [vmem:[#allocation1 + $0x9] sm:$0xff] %v964_v58 }
 0x16d   : > { %v1015_v5 = vsel %vm1014_vm7, %v944_v57, %v1011_v0  ;;  %v1019_v6 = vsel %vm708_vm0, %v944_v57, %v1011_v0 }
 0x171   : > { %v984_v1 = vpop.f32.mrf.mxu2  ;;  %v1004_v2 = vpop.f32.mrf.mxu3 }
 0x172   : > { %v1012_v3 = vrot.slane %v984_v1, 6  ;;  %1050 = vst [vmem:[#allocation1 + $0x12] sm:$0xff] %v984_v1  ;;  %v1013_v11 = vrot.slane %v1004_v2, 5 }
 0x173   : > { %1051 = vst [vmem:[#allocation1 + $0x1b] sm:$0xff] %v1004_v2 }
 0x174   : > { %v1017_v7 = vsel %vm1016_vm8, %v1012_v3, %v1013_v11  ;;  %v1020_v10 = vsel %vm725_vm1, %v1012_v3, %v1013_v11 }
 0x175   : > { %v1018_v12 = vsel %vm734_vm2, %v1015_v5, %v1017_v7  ;;  %v1022_v13 = vsel %vm1021_vm9, %v1019_v6, %v1020_v10 }
 0x176   : > { %v1023_v14 = vrot.slane %v1022_v13, 1  ;;  %v1024_v15 = vperm.slane %v1018_v12, 0  ;;  %v1025_v16 = vperm.slane %v1018_v12, 1  ;;  %v1026_v17 = vperm.slane %v1018_v12, 2 }
 0x177   : > { %v1027_v18 = vperm.slane %v1018_v12, 3 }
 0x178   : > { %v1028_v22 = vperm.slane %v1023_v14, 0  ;;  %v1029_v23 = vperm.slane %v1023_v14, 1  ;;  %v1030_v24 = vperm.slane %v1023_v14, 2  ;;  %v1031_v25 = vperm.slane %v1023_v14, 3 }
 0x179   : > { %v1040_v26 = vmul.f32 %v1024_v15, %v7299_v48  ;;  %v1041_v27 = vmul.f32 %v1025_v16, %v7317_v8  ;;  %v1042_v29 = vmul.f32 %v6936_v28, %v1026_v17  ;;  %v1043_v30 = vmul.f32 %v1027_v18, %v7240_v55  ;;  %v6882_v8 = vld [vmem:[%s10390_s15 + $0x1f4] sm:$0xf] }
 0x17a   : > { %v1044_v20 = vmul.f32 %v1028_v22, %v7302_v52  ;;  %v1045_v31 = vmul.f32 %v1029_v23, %v7320_v9  ;;  %v1046_v33 = vmul.f32 %v6937_v32, %v1030_v24  ;;  %v1047_v34 = vmul.f32 %v1031_v25, %v7243_v56  ;;  %v1053_v35 = vld [vmem:[#allocation1 + $0x2] ss:$9 sm:$0xff] }
 0x17b   : > { %v1055_v36 = vld [vmem:[#allocation1 + $0x3] ss:$9 sm:$0xff]  ;;  %v1056_v37 = vperm.slane %v1053_v35, 0  ;;  %v1057_v38 = vperm.slane %v1053_v35, 1  ;;  %v1058_v39 = vperm.slane %v1053_v35, 2  ;;  %v1059_v48 = vperm.slane %v1053_v35, 3 }
 0x17c   : > { %v1060_v55 = vperm.slane %v1055_v36, 0  ;;  %v1061_v52 = vperm.slane %v1055_v36, 1  ;;  %v1062_v40 = vperm.slane %v1055_v36, 2  ;;  %v1063_v9 = vperm.slane %v1055_v36, 3  ;;  %v5618_v35 = vld [vmem:[%s10386_s11 + $0x4f0] sm:$0xf] }
 0x17d   : > { %v1072_v41 = vadd.f32 %v1056_v37, %v1040_v26  ;;  %v1073_v42 = vadd.f32 %v1057_v38, %v1041_v27  ;;  %v1074_v43 = vadd.f32 %v1058_v39, %v1042_v29  ;;  %v1075_v44 = vadd.f32 %v1059_v48, %v1043_v30  ;;  %v5554_v30 = vld [vmem:[%s10386_s11 + $0x470] sm:$0xf]  ;;  %v6691_v36 = vld [vmem:[%s10386_s11 + $0x4f4] sm:$0xf0]  ;;  %v6912_v56 = vld [vmem:[%s10390_s15 + $0x2e4] sm:$0xf] }
 0x17e   : > { %v1076_v45 = vadd.f32 %v1060_v55, %v1044_v20  ;;  %v1077_v46 = vadd.f32 %v1061_v52, %v1045_v31  ;;  %v1078_v47 = vadd.f32 %v1062_v40, %v1046_v33  ;;  %v1079_v49 = vadd.f32 %v1063_v9, %v1047_v34  ;;  %v6675_v20 = vld [vmem:[%s10386_s11 + $0x474] sm:$0xf0]  ;;  %v5682_v55 = vld [vmem:[%s10386_s11 + $0x570] sm:$0xf] }
 0x17f   : > { %v1080_v50 = vmul.f32 0.01, %v1072_v41  ;;  %v1081_v51 = vmul.f32 0.01, %v1073_v42  ;;  %v1082_v53 = vmul.f32 0.01, %v1074_v43 }
 0x180   : > { %v1083_v54 = vmul.f32 0.01, %v1075_v44  ;;  %v1084_v57 = vmul.f32 0.01, %v1076_v45  ;;  %v1085_v58 = vmul.f32 0.01, %v1077_v46 }
 0x181   : > { %v7790_v59 = vmax.f32 %v1072_v41, %v1080_v50  ;;  %v7792_v60 = vmax.f32 %v1073_v42, %v1081_v51  ;;  %v1086_v61 = vmul.f32 0.01, %v1078_v47  ;;  %v1087_v62 = vmul.f32 0.01, %v1079_v49  ;;  %v6707_v42 = vld [vmem:[%s10386_s11 + $0x574] sm:$0xf0] }
 0x182   : > { %v7794_v0 = vmax.f32 %v1076_v45, %v1084_v57  ;;  %v7796_v1 = vmax.f32 %v1077_v46, %v1085_v58  ;;  %v7798_v2 = vmax.f32 %v1074_v43, %v1082_v53  ;;  %v7800_v3 = vmax.f32 %v1075_v44, %v1083_v54  ;;  %v5746_v43 = vld [vmem:[%s10386_s11 + $0x5f0] sm:$0xf]  ;;  %v5546_v50 = vld [vmem:[%s10386_s11 + $0x460] sm:$0xf]  ;;  %v6673_v51 = vld [vmem:[%s10386_s11 + $0x464] sm:$0xf0] }
 0x183   : > { %v1104_v11 = vrot.slane %v7790_v59, 7  ;;  %v1105_v5 = vrot.slane %v7792_v60, 7  ;;  %v7804_v6 = vmax.f32 %v1078_v47, %v1086_v61  ;;  %v7806_v7 = vmax.f32 %v1079_v49, %v1087_v62  ;;  %v6723_v49 = vld [vmem:[%s10386_s11 + $0x5f4] sm:$0xf0]  ;;  %v5610_v57 = vld [vmem:[%s10386_s11 + $0x4e0] sm:$0xf] }
 0x184   : > { %v1108_v10 = vrot.slane %v7794_v0, 7  ;;  %v1110_v12 = vrot.slane %v7796_v1, 7  ;;  %v1106_v13 = vrot.slane %v7798_v2, 7  ;;  %v1107_v14 = vrot.slane %v7800_v3, 7  ;;  %v6689_v58 = vld [vmem:[%s10386_s11 + $0x4e4] sm:$0xf0] }
 0x185   : > { %v1124_v15 = vsel %vm1014_vm7, 0.0, %v1104_v11  ;;  %v1125_v16 = vsel %vm1014_vm7, 0.0, %v1105_v5  ;;  %v1112_v17 = vrot.slane %v7804_v6, 7  ;;  %v1114_v18 = vrot.slane %v7806_v7, 7 }
 0x186   : > { %v1109_v22 = vsel %vm1014_vm7, %v1104_v11, %v1108_v10  ;;  %v1111_v23 = vsel %vm1014_vm7, %v1105_v5, %v1110_v12  ;;  %v1132_v24 = vsel %vm7780_vm10, 0.0, %v1124_v15  ;;  %v1133_v25 = vsel %vm7780_vm10, 0.0, %v1125_v16  ;;  %v6705_v15 = vld [vmem:[%s10386_s11 + $0x564] sm:$0xf0] }
 0x187   : > { %v1136_v26 = vsel %vm7786_vm11, 0.0, %v1109_v22  ;;  %v1137_v27 = vsel %vm7786_vm11, 0.0, %v1111_v23  ;;  %v1177_v28 = vpack.c.bf16 %v1133_v25, %v1132_v24  ;;  %v1113_v29 = vsel %vm1014_vm7, %v1106_v13, %v1112_v17  ;;  %v5738_v22 = vld [vmem:[%s10386_s11 + $0x5e0] sm:$0xf]  ;;  %v6721_v23 = vld [vmem:[%s10386_s11 + $0x5e4] sm:$0xf0] }
 0x188   : > { %v1179_v31 = vpack.c.bf16 %v1137_v27, %v1136_v26  ;;  %v1115_v32 = vsel %vm1014_vm7, %v1107_v14, %v1114_v18  ;;  %v1126_v33 = vsel %vm1014_vm7, 0.0, %v1106_v13  ;;  %v1127_v34 = vsel %vm1014_vm7, 0.0, %v1107_v14  ;;  %v5674_v14 = vld [vmem:[%s10386_s11 + $0x560] sm:$0xf]  ;;  %v5538_v24 = vld [vmem:[%s10386_s11 + $0x450] sm:$0xf] }
 0x189   : > { %v1193_v37 = vunpack.c.l.b16 %v1177_v28  ;;  %v1194_v38 = vunpack.c.h.b16 %v1177_v28  ;;  %v1134_v39 = vsel %vm7780_vm10, 0.0, %v1126_v33  ;;  %v1135_v48 = vsel %vm7780_vm10, 0.0, %v1127_v34  ;;  %v6671_v25 = vld [vmem:[%s10386_s11 + $0x454] sm:$0xf0]  ;;  %v5602_v26 = vld [vmem:[%s10386_s11 + $0x4d0] sm:$0xf] }
 0x18a   : > { %v1197_v52 = vunpack.c.l.b16 %v1179_v31  ;;  %v1198_v40 = vunpack.c.h.b16 %v1179_v31  ;;  %v1138_v9 = vsel %vm7786_vm11, 0.0, %v1113_v29  ;;  %v1139_v41 = vsel %vm7786_vm11, 0.0, %v1115_v32  ;;  %v6687_v27 = vld [vmem:[%s10386_s11 + $0x4d4] sm:$0xf0]  ;;  %v5730_v33 = vld [vmem:[%s10386_s11 + $0x5d0] sm:$0xf] }
 0x18b   : > { %v1178_v44 = vpack.c.bf16 %v1135_v48, %v1134_v39  ;;  %v1180_v45 = vpack.c.bf16 %v1139_v41, %v1138_v9  ;;  %v5555_v46 = vor.u32 %v6675_v20, %v5554_v30  ;;  %v5619_v47 = vor.u32 %v6691_v36, %v5618_v35  ;;  %v5666_v30 = vld [vmem:[%s10386_s11 + $0x550] sm:$0xf]  ;;  %v6703_v20 = vld [vmem:[%s10386_s11 + $0x554] sm:$0xf0]  ;;  %v5530_v35 = vld [vmem:[%s10386_s11 + $0x440] sm:$0xf] }
 0x18c   : > { %v7868_v53 = vpack.c.b16 %v1197_v52, %v1193_v37  ;;  %v7870_v54 = vpack.c.b16 %v1198_v40, %v1194_v38  ;;  %v5683_v10 = vor.u32 %v6707_v42, %v5682_v55  ;;  %v5747_v12 = vor.u32 %v6723_v49, %v5746_v43  ;;  %v6719_v34 = vld [vmem:[%s10386_s11 + $0x5d4] sm:$0xf0]  ;;  %v6669_v37 = vld [vmem:[%s10386_s11 + $0x444] sm:$0xf0]  ;;  %v5594_v38 = vld [vmem:[%s10386_s11 + $0x4c0] sm:$0xf] }
 0x18d   : > { %v1195_v61 = vunpack.c.l.b16 %v1178_v44  ;;  %v1199_v62 = vunpack.c.l.b16 %v1180_v45  ;;  %v1196_v11 = vunpack.c.h.b16 %v1178_v44  ;;  %v1200_v5 = vunpack.c.h.b16 %v1180_v45  ;;  %v6685_v39 = vld [vmem:[%s10386_s11 + $0x4c4] sm:$0xf0]  ;;  %v5658_v40 = vld [vmem:[%s10386_s11 + $0x540] sm:$0xf] }
 0x18e   : > { %2415 = vmatmul.bf16.vlgmr.msra.gmra.mxu0 %v7868_v53  ;;  %2429 = vmatmul.bf16.vlgmr.msra.gmra.mxu1 %v7870_v54  ;;  %v5547_v13 = vor.u32 %v6673_v51, %v5546_v50  ;;  %v5611_v18 = vor.u32 %v6689_v58, %v5610_v57  ;;  %v5675_v28 = vor.u32 %v6705_v15, %v5674_v14  ;;  %v6701_v9 = vld [vmem:[%s10386_s11 + $0x544] sm:$0xf0]  ;;  %v7955_v41 = vld [vmem:[%s10385_s10] sm:$0xff]  ;;  %v6667_v57 = vld [vmem:[%s10386_s11 + $0x434] sm:$0xf0] }
 0x18f   : > { %v7886_v16 = vpack.c.b16 %v1199_v62, %v1195_v61  ;;  %v7888_v17 = vpack.c.b16 %v1200_v5, %v1196_v11  ;;  %2519 = vmatpush.bf16.msra.mxu0 %v5555_v46  ;;  %2533 = vmatpush.bf16.msra.mxu1 %v5619_v47  ;;  %v5739_v29 = vor.u32 %v6721_v23, %v5738_v22  ;;  %v5722_v44 = vld [vmem:[%s10386_s11 + $0x5c0] sm:$0xf]  ;;  %v6717_v45 = vld [vmem:[%s10386_s11 + $0x5c4] sm:$0xf0]  ;;  %v7966_v46 = vld [vmem:[%s10386_s11 + $0x430] sm:$0xf] }
 0x190   : > { %v5539_v31 = vor.u32 %v6671_v25, %v5538_v24  ;;  %v5603_v32 = vor.u32 %v6687_v27, %v5602_v26  ;;  %v1181_v36 = vpack.c.bf16 %v7792_v60, %v7790_v59  ;;  %v1183_v48 = vpack.c.bf16 %v7796_v1, %v7794_v0  ;;  %v5586_v58 = vld [vmem:[%s10386_s11 + $0x4b0] sm:$0xf]  ;;  %v6683_v61 = vld [vmem:[%s10386_s11 + $0x4b4] sm:$0xf0]  ;;  %2923 = vst [vmem:[#allocation1] ss:$2 sm:$0xff] %v7955_v41 }
 0x191   : > { %2443 = vmatmul.bf16.vlgmr.msra.gmra.mxu2 %v7886_v16  ;;  %2457 = vmatmul.bf16.vlgmr.msra.gmra.mxu3 %v7888_v17  ;;  %v7940_v55 = vpack.c.bf16 %v7800_v3, %v7798_v2  ;;  %v7944_v52 = vpack.c.bf16 %v7806_v7, %v7804_v6  ;;  %v5667_v42 = vor.u32 %v6703_v20, %v5666_v30  ;;  %v6715_v25 = vld [vmem:[%s10386_s11 + $0x5b4] sm:$0xf0]  ;;  %v8010_v26 = vld [vmem:[%s10386_s11 + $0x420] sm:$0xf]  ;;  %v8015_v27 = vld [vmem:[%s10386_s11 + $0x424] sm:$0xf0] }
 0x192   : > { %2547 = vmatpush.bf16.msra.mxu2 %v5683_v10  ;;  %2561 = vmatpush.bf16.msra.mxu3 %v5747_v12  ;;  %v5731_v43 = vor.u32 %v6719_v34, %v5730_v33  ;;  %v5531_v47 = vor.u32 %v6669_v37, %v5530_v35  ;;  %v5595_v49 = vor.u32 %v6685_v39, %v5594_v38  ;;  %v1213_v50 = vunpack.c.l.b16 %v1181_v36  ;;  %v8042_v37 = vld [vmem:[%s10386_s11 + $0x520] sm:$0xf] }
 0x193   : > { %2520 = vmatpush.bf16.msra.mxu0 %v5547_v13  ;;  %2534 = vmatpush.bf16.msra.mxu1 %v5611_v18  ;;  %v1214_v51 = vunpack.c.h.b16 %v1181_v36  ;;  %v1217_v11 = vunpack.c.l.b16 %v1183_v48  ;;  %v1218_v5 = vunpack.c.h.b16 %v1183_v48  ;;  %v1215_v10 = vunpack.c.l.b16 %v7940_v55  ;;  %v7988_v13 = vld [vmem:[%s10386_s11 + $0x530] sm:$0xf] }
 0x194   : > { %v1219_v12 = vunpack.c.l.b16 %v7944_v52  ;;  %v5659_v14 = vor.u32 %v6701_v9, %v5658_v40  ;;  %v5723_v15 = vor.u32 %v6717_v45, %v5722_v44  ;;  %v1216_v18 = vunpack.c.h.b16 %v7940_v55  ;;  %v6663_v44 = vld [vmem:[%s10386_s11 + $0x414] sm:$0xf0]  ;;  %v5570_v45 = vld [vmem:[%s10386_s11 + $0x490] sm:$0xf]  ;;  %v6372_v9 = vld [vmem:[%s10390_s15 + $0x1c8] sm:$0xf0] }
 0x195   : > { %v1220_v22 = vunpack.c.h.b16 %v7944_v52  ;;  %v5523_v23 = vor.u32 %v6667_v57, %v7966_v46  ;;  %v5587_v24 = vor.u32 %v6683_v61, %v5586_v58  ;;  %v1141_v30 = vrot.slane %v7790_v59, 1  ;;  %v8047_v59 = vld [vmem:[%s10386_s11 + $0x524] sm:$0xf0]  ;;  %v6679_v46 = vld [vmem:[%s10386_s11 + $0x494] sm:$0xf0] }
 0x196   : > { %2548 = vmatpush.bf16.msra.mxu2 %v5675_v28  ;;  %2562 = vmatpush.bf16.msra.mxu3 %v5739_v29  ;;  %v8020_v28 = vld [vmem:[%s10386_s11 + $0x4a0] sm:$0xf]  ;;  %v8025_v29 = vld [vmem:[%s10386_s11 + $0x4a4] sm:$0xf0]  ;;  %v1142_v20 = vrot.slane %v7794_v0, 1  ;;  %v8031_v33 = vpack.c.b16 %v1217_v11, %v1213_v50  ;;  %v8033_v34 = vpack.c.b16 %v1218_v5, %v1214_v51  ;;  %v8035_v35 = vpack.c.b16 %v1219_v12, %v1215_v10 }
 0x197   : > { %2521 = vmatpush.bf16.msra.mxu0 %v5539_v31  ;;  %2535 = vmatpush.bf16.msra.mxu1 %v5603_v32  ;;  %v1144_v31 = vrot.slane %v7792_v60, 1  ;;  %v1145_v32 = vrot.slane %v7796_v1, 1  ;;  %v5651_v36 = vor.u32 %v7993_v63, %v7988_v13  ;;  %v8052_v60 = vld [vmem:[%s10386_s11 + $0x5a0] sm:$0xf]  ;;  %v8057_v0 = vld [vmem:[%s10386_s11 + $0x5a4] sm:$0xf0]  ;;  %v8063_v55 = vpack.c.b16 %v1220_v22, %v1216_v18 }
 0x198   : > { %v1147_v1 = vrot.slane %v7798_v2, 1  ;;  %v1148_v38 = vrot.slane %v7804_v6, 1  ;;  %v1150_v39 = vrot.slane %v7800_v3, 1  ;;  %v1151_v48 = vrot.slane %v7806_v7, 1  ;;  %v5506_v2 = vld [vmem:[%s10386_s11 + $0x410] sm:$0xf] }
 0x199   : > { %v5715_v52 = vor.u32 %v6715_v25, %v7998_v19  ;;  %v5515_v40 = vor.u32 %v8015_v27, %v8010_v26  ;;  %v1143_v3 = vsel %vm1140_vm12, %v1141_v30, %v1142_v20  ;;  %v1146_v6 = vsel %vm1140_vm12, %v1144_v31, %v1145_v32  ;;  %v5698_v50 = vld [vmem:[%s10386_s11 + $0x590] sm:$0xf]  ;;  %v6711_v51 = vld [vmem:[%s10386_s11 + $0x594] sm:$0xf0]  ;;  %v5498_v5 = vld [vmem:[%s10386_s11 + $0x400] sm:$0xf] }
 0x19a   : > { %2549 = vmatpush.bf16.msra.mxu2 %v5667_v42  ;;  %2563 = vmatpush.bf16.msra.mxu3 %v5731_v43  ;;  %v1161_v7 = vsel %vm1140_vm12, %v1142_v20, 0.0  ;;  %v1162_v4 = vsel %vm1140_vm12, %v1145_v32, 0.0  ;;  %v5579_v21 = vor.u32 %v8025_v29, %v8020_v28  ;;  %v5643_v42 = vor.u32 %v8047_v59, %v8042_v37  ;;  %v6661_v10 = vld [vmem:[%s10386_s11 + $0x404] sm:$0xf0]  ;;  %v5562_v18 = vld [vmem:[%s10386_s11 + $0x480] sm:$0xf] }
 0x19b   : > { %2522 = vmatpush.bf16.msra.mxu0 %v5531_v47  ;;  %2536 = vmatpush.bf16.msra.mxu1 %v5595_v49  ;;  %v5707_v43 = vor.u32 %v8057_v0, %v8052_v60  ;;  %v5634_v47 = vld [vmem:[%s10386_s11 + $0x510] sm:$0xf]  ;;  %v6695_v49 = vld [vmem:[%s10386_s11 + $0x514] sm:$0xf0]  ;;  %v1149_v57 = vsel %vm1140_vm12, %v1147_v1, %v1148_v38  ;;  %v1152_v58 = vsel %vm1140_vm12, %v1150_v39, %v1151_v48  ;;  %v1163_v61 = vsel %vm1140_vm12, %v1148_v38, 0.0 }
 0x19c   : > { %v1164_v11 = vsel %vm1140_vm12, %v1151_v48, 0.0  ;;  %v1169_v12 = vsel %vm7979_vm13, 0.0, %v1143_v3  ;;  %v1170_v13 = vsel %vm7979_vm13, 0.0, %v1146_v6  ;;  %v5507_v63 = vor.u32 %v6663_v44, %v5506_v2  ;;  %v6677_v22 = vld [vmem:[%s10386_s11 + $0x484] sm:$0xf0] }
 0x19d   : > { %v5571_v19 = vor.u32 %v6679_v46, %v5570_v45  ;;  %v5690_v25 = vld [vmem:[%s10386_s11 + $0x580] sm:$0xf]  ;;  %v1171_v26 = vsel %vm7979_vm13, 0.0, %v1149_v57  ;;  %v1172_v27 = vsel %vm7979_vm13, 0.0, %v1152_v58  ;;  %v1175_v28 = vsel %vm8070_vm14, 0.0, %v1163_v61 }
 0x19e   : > { %2550 = vmatpush.bf16.msra.mxu2 %v5659_v14  ;;  %2564 = vmatpush.bf16.msra.mxu3 %v5723_v15  ;;  %v1173_v14 = vsel %vm8070_vm14, 0.0, %v1161_v7  ;;  %v1174_v15 = vsel %vm8070_vm14, 0.0, %v1162_v4  ;;  %v1176_v29 = vsel %vm8070_vm14, 0.0, %v1164_v11  ;;  %v6709_v30 = vld [vmem:[%s10386_s11 + $0x584] sm:$0xf0]  ;;  %v1185_v32 = vpack.c.bf16 %v1170_v13, %v1169_v12 }
 0x19f   : > { %2471 = vmatmul.bf16.vlgmr.msrb.gmra.mxu0 %v8031_v33  ;;  %2485 = vmatmul.bf16.vlgmr.msrb.gmra.mxu1 %v8033_v34  ;;  %v6546_v20 = vld [vmem:[%s10386_s11 + $0x74] sm:$0xf]  ;;  %v5044_v31 = vld [vmem:[%s10386_s11 + $0x78] sm:$0xf0]  ;;  %v5635_v37 = vor.u32 %v6695_v49, %v5634_v47  ;;  %v5699_v59 = vor.u32 %v6711_v51, %v5698_v50  ;;  %v5499_v38 = vor.u32 %v6661_v10, %v5498_v5  ;;  %v6544_v49 = vld [vmem:[%s10386_s11 + $0x64] sm:$0xf] }
 0x1a0   : > { %2523 = vmatpush.bf16.msra.mxu0 %v5523_v23  ;;  %2537 = vmatpush.bf16.msra.mxu1 %v5587_v24  ;;  %v5626_v23 = vld [vmem:[%s10386_s11 + $0x500] sm:$0xf]  ;;  %v6693_v24 = vld [vmem:[%s10386_s11 + $0x504] sm:$0xf0]  ;;  %v6562_v60 = vld [vmem:[%s10386_s11 + $0xf4] sm:$0xf]  ;;  %v1188_v2 = vpack.c.bf16 %v1176_v29, %v1175_v28  ;;  %v5563_v3 = vor.u32 %v6677_v22, %v5562_v18  ;;  %v5691_v7 = vor.u32 %v6709_v30, %v5690_v25  ;;  %v1234_v46 = vunpack.c.h.b16 %v1185_v32 }
 0x1a1   : > { %2499 = vmatmul.bf16.vlgmr.msrb.gmra.mxu2 %v8035_v35  ;;  %2513 = vmatmul.bf16.vlgmr.msrb.gmra.mxu3 %v8063_v55  ;;  %v5108_v0 = vld [vmem:[%s10386_s11 + $0xf8] sm:$0xf0]  ;;  %v6578_v1 = vld [vmem:[%s10386_s11 + $0x174] sm:$0xf]  ;;  %v5627_v6 = vor.u32 %v6693_v24, %v5626_v23  ;;  %v5047_v4 = vor.u32 %v6546_v20, %v5044_v31  ;;  %v5036_v50 = vld [vmem:[%s10386_s11 + $0x68] sm:$0xf0] }
 0x1a2   : > { %2551 = vmatpush.bf16.msra.mxu2 %v5651_v36  ;;  %2565 = vmatpush.bf16.msra.mxu3 %v5715_v52  ;;  %v1187_v36 = vpack.c.bf16 %v1174_v15, %v1173_v14  ;;  %v5172_v39 = vld [vmem:[%s10386_s11 + $0x178] sm:$0xf0]  ;;  %v6594_v48 = vld [vmem:[%s10386_s11 + $0x1f4] sm:$0xf]  ;;  %v6560_v51 = vld [vmem:[%s10386_s11 + $0xe4] sm:$0xf]  ;;  %v1239_v58 = vunpack.c.l.b16 %v1188_v2  ;;  %v1240_v11 = vunpack.c.h.b16 %v1188_v2 }
 0x1a3   : > { %v5236_v52 = vld [vmem:[%s10386_s11 + $0x1f8] sm:$0xf0]  ;;  %v5175_v44 = vor.u32 %v6578_v1, %v5172_v39  ;;  %v5100_v5 = vld [vmem:[%s10386_s11 + $0xe8] sm:$0xf0]  ;;  %v6576_v10 = vld [vmem:[%s10386_s11 + $0x164] sm:$0xf] }
 0x1a4   : > { %2524 = vmatpush.bf16.msra.mxu0 %v5515_v40  ;;  %2538 = vmatpush.bf16.msra.mxu1 %v5579_v21  ;;  %v1186_v40 = vpack.c.bf16 %v1172_v27, %v1171_v26  ;;  %v5111_v21 = vor.u32 %v6562_v60, %v5108_v0  ;;  %v5239_v45 = vor.u32 %v6594_v48, %v5236_v52  ;;  %v1238_v47 = vunpack.c.h.b16 %v1187_v36  ;;  %v5164_v12 = vld [vmem:[%s10386_s11 + $0x168] sm:$0xf0]  ;;  %v6592_v13 = vld [vmem:[%s10386_s11 + $0x1e4] sm:$0xf]  ;;  %v6542_v23 = vld [vmem:[%s10386_s11 + $0x54] sm:$0xf] }
 0x1a5   : > { %v5228_v14 = vld [vmem:[%s10386_s11 + $0x1e8] sm:$0xf0]  ;;  %v5103_v18 = vor.u32 %v6560_v51, %v5100_v5  ;;  %v5167_v22 = vor.u32 %v6576_v10, %v5164_v12  ;;  %v5028_v24 = vld [vmem:[%s10386_s11 + $0x58] sm:$0xf0]  ;;  %v6558_v28 = vld [vmem:[%s10386_s11 + $0xd4] sm:$0xf] }
 0x1a6   : > { %2552 = vmatpush.bf16.msra.mxu2 %v5643_v42  ;;  %2566 = vmatpush.bf16.msra.mxu3 %v5707_v43  ;;  %v1233_v42 = vunpack.c.l.b16 %v1185_v32  ;;  %v1237_v43 = vunpack.c.l.b16 %v1187_v36  ;;  %v1235_v57 = vunpack.c.l.b16 %v1186_v40  ;;  %v1236_v61 = vunpack.c.h.b16 %v1186_v40  ;;  %v5092_v29 = vld [vmem:[%s10386_s11 + $0xd8] sm:$0xf0]  ;;  %v6574_v30 = vld [vmem:[%s10386_s11 + $0x154] sm:$0xf]  ;;  %v5020_v60 = vld [vmem:[%s10386_s11 + $0x48] sm:$0xf0] }
 0x1a7   : > { %v5231_v27 = vor.u32 %v6592_v13, %v5228_v14  ;;  %v5156_v20 = vld [vmem:[%s10386_s11 + $0x158] sm:$0xf0]  ;;  %v6590_v31 = vld [vmem:[%s10386_s11 + $0x1d4] sm:$0xf]  ;;  %v5031_v36 = vor.u32 %v6542_v23, %v5028_v24  ;;  %v5084_v39 = vld [vmem:[%s10386_s11 + $0xc8] sm:$0xf0] }
 0x1a8   : > { %2525 = vmatpush.bf16.msra.mxu0 %v5507_v63  ;;  %2539 = vmatpush.bf16.msra.mxu1 %v5571_v19  ;;  %v8204_v15 = vpack.c.b16 %v1237_v43, %v1233_v42  ;;  %v5039_v63 = vor.u32 %v6544_v49, %v5036_v50  ;;  %v8206_v19 = vpack.c.b16 %v1238_v47, %v1234_v46  ;;  %v5220_v32 = vld [vmem:[%s10386_s11 + $0x1d8] sm:$0xf0]  ;;  %v6572_v48 = vld [vmem:[%s10386_s11 + $0x144] sm:$0xf]  ;;  %v5148_v52 = vld [vmem:[%s10386_s11 + $0x148] sm:$0xf0] }
 0x1a9   : > { %v8214_v25 = vpack.c.b16 %v1239_v58, %v1235_v57  ;;  %v8216_v26 = vpack.c.b16 %v1240_v11, %v1236_v61  ;;  %v5159_v0 = vor.u32 %v6574_v30, %v5156_v20  ;;  %v5223_v1 = vor.u32 %v6590_v31, %v5220_v32  ;;  %v6588_v40 = vld [vmem:[%s10386_s11 + $0x1c4] sm:$0xf]  ;;  %v5212_v2 = vld [vmem:[%s10386_s11 + $0x1c8] sm:$0xf0]  ;;  %v6554_v43 = vld [vmem:[%s10386_s11 + $0xb4] sm:$0xf] }
 0x1aa   : > { %2553 = vmatpush.bf16.msra.mxu2 %v5635_v37  ;;  %2567 = vmatpush.bf16.msra.mxu3 %v5699_v59  ;;  %v5095_v37 = vor.u32 %v6558_v28, %v5092_v29  ;;  %v6540_v59 = vld [vmem:[%s10386_s11 + $0x44] sm:$0xf]  ;;  %v5215_v42 = vor.u32 %v6588_v40, %v5212_v2  ;;  %v5140_v46 = vld [vmem:[%s10386_s11 + $0x138] sm:$0xf0]  ;;  %v6586_v47 = vld [vmem:[%s10386_s11 + $0x1b4] sm:$0xf] }
 0x1ab   : > { %v5204_v49 = vld [vmem:[%s10386_s11 + $0x1b8] sm:$0xf0]  ;;  %v6536_v57 = vld [vmem:[%s10386_s11 + $0x24] sm:$0xf]  ;;  %v5004_v58 = vld [vmem:[%s10386_s11 + $0x28] sm:$0xf0] }
 0x1ac   : > { %2526 = vmatpush.bf16.msra.mxu0 %v5499_v38  ;;  %2540 = vmatpush.bf16.msra.mxu1 %v5563_v3  ;;  %v6556_v38 = vld [vmem:[%s10386_s11 + $0xc4] sm:$0xf]  ;;  %v5023_v3 = vor.u32 %v6540_v59, %v5020_v60  ;;  %v5207_v11 = vor.u32 %v6586_v47, %v5204_v49  ;;  %v5068_v10 = vld [vmem:[%s10386_s11 + $0xa8] sm:$0xf0]  ;;  %v6534_v23 = vld [vmem:[%s10386_s11 + $0x14] sm:$0xf] }
 0x1ad   : > { %v6552_v5 = vld [vmem:[%s10386_s11 + $0xa4] sm:$0xf]  ;;  %v5132_v13 = vld [vmem:[%s10386_s11 + $0x128] sm:$0xf0]  ;;  %v4996_v24 = vld [vmem:[%s10386_s11 + $0x18] sm:$0xf0] }
 0x1ae   : > { %2554 = vmatpush.bf16.msra.mxu2 %v5627_v6  ;;  %2568 = vmatpush.bf16.msra.mxu3 %v5691_v7  ;;  %v5087_v6 = vor.u32 %v6556_v38, %v5084_v39  ;;  %v6538_v7 = vld [vmem:[%s10386_s11 + $0x34] sm:$0xf]  ;;  %v6568_v12 = vld [vmem:[%s10386_s11 + $0x124] sm:$0xf]  ;;  %v5060_v30 = vld [vmem:[%s10386_s11 + $0x98] sm:$0xf0]  ;;  %v4999_v59 = vor.u32 %v6534_v23, %v4996_v24 }
 0x1af   : > { %2527 = vmatmul.bf16.vlgmr.msra.gmra.mxu0 %v8204_v15  ;;  %2541 = vmatmul.bf16.vlgmr.msra.gmra.mxu1 %v8206_v19  ;;  %v6584_v14 = vld [vmem:[%s10386_s11 + $0x1a4] sm:$0xf]  ;;  %v6550_v29 = vld [vmem:[%s10386_s11 + $0x94] sm:$0xf]  ;;  %v5124_v31 = vld [vmem:[%s10386_s11 + $0x118] sm:$0xf0] }
 0x1b0   : > { %2575 = vmatpush.bf16.msrb.mxu0 %v5047_v4  ;;  %2589 = vmatpush.bf16.msrb.mxu1 %v5111_v21  ;;  %v5012_v4 = vld [vmem:[%s10386_s11 + $0x38] sm:$0xf0]  ;;  %v5151_v21 = vor.u32 %v6572_v48, %v5148_v52  ;;  %v6566_v20 = vld [vmem:[%s10386_s11 + $0x114] sm:$0xf]  ;;  %v5063_v60 = vor.u32 %v6550_v29, %v5060_v30  ;;  %v5052_v38 = vld [vmem:[%s10386_s11 + $0x88] sm:$0xf0] }
 0x1b1   : > { %2555 = vmatmul.bf16.vlgmr.msra.gmra.mxu2 %v8214_v25  ;;  %2569 = vmatmul.bf16.vlgmr.msra.gmra.mxu3 %v8216_v26  ;;  %v5015_v50 = vor.u32 %v6538_v7, %v5012_v4  ;;  %v6582_v32 = vld [vmem:[%s10386_s11 + $0x194] sm:$0xf]  ;;  %v5127_v39 = vor.u32 %v6566_v20, %v5124_v31  ;;  %v6564_v52 = vld [vmem:[%s10386_s11 + $0x104] sm:$0xf]  ;;  %v5116_v40 = vld [vmem:[%s10386_s11 + $0x108] sm:$0xf0] }
 0x1b2   : > { %2603 = vmatpush.bf16.msrb.mxu2 %v5175_v44  ;;  %2617 = vmatpush.bf16.msrb.mxu3 %v5239_v45  ;;  %v5076_v44 = vld [vmem:[%s10386_s11 + $0xb8] sm:$0xf0]  ;;  %v6570_v45 = vld [vmem:[%s10386_s11 + $0x134] sm:$0xf]  ;;  %v6580_v2 = vld [vmem:[%s10386_s11 + $0x184] sm:$0xf]  ;;  %v5119_v49 = vor.u32 %v6564_v52, %v5116_v40 }
 0x1b3   : > { %v5079_v51 = vor.u32 %v6554_v43, %v5076_v44  ;;  %v5143_v61 = vor.u32 %v6570_v45, %v5140_v46  ;;  %v5300_v7 = vld [vmem:[%s10386_s11 + $0x278] sm:$0xf0]  ;;  %v6626_v4 = vld [vmem:[%s10386_s11 + $0x2f4] sm:$0xf]  ;;  %v5468_v52 = vld [vmem:[%s10386_s11 + $0x3c8] sm:$0xf0] }
 0x1b4   : > { %2576 = vmatpush.bf16.msrb.mxu0 %v5039_v63  ;;  %2590 = vmatpush.bf16.msrb.mxu1 %v5103_v18  ;;  %v5196_v63 = vld [vmem:[%s10386_s11 + $0x1a8] sm:$0xf0]  ;;  %v5007_v18 = vor.u32 %v6536_v57, %v5004_v58  ;;  %v5428_v45 = vld [vmem:[%s10386_s11 + $0x378] sm:$0xf0]  ;;  %v6658_v46 = vld [vmem:[%s10386_s11 + $0x3f4] sm:$0xf] }
 0x1b5   : > { %v5199_v28 = vor.u32 %v6584_v14, %v5196_v63  ;;  %v5492_v47 = vld [vmem:[%s10386_s11 + $0x3f8] sm:$0xf0]  ;;  %v6608_v58 = vld [vmem:[%s10386_s11 + $0x264] sm:$0xf]  ;;  %v5420_v14 = vld [vmem:[%s10386_s11 + $0x368] sm:$0xf0] }
 0x1b6   : > { %2604 = vmatpush.bf16.msrb.mxu2 %v5167_v22  ;;  %2618 = vmatpush.bf16.msrb.mxu3 %v5231_v27  ;;  %v5071_v22 = vor.u32 %v6552_v5, %v5068_v10  ;;  %v5135_v27 = vor.u32 %v6568_v12, %v5132_v13  ;;  %v5495_v5 = vor.u32 %v6658_v46, %v5492_v47  ;;  %v6624_v10 = vld [vmem:[%s10386_s11 + $0x2e4] sm:$0xf]  ;;  %v5356_v12 = vld [vmem:[%s10386_s11 + $0x2e8] sm:$0xf0]  ;;  %v6606_v24 = vld [vmem:[%s10386_s11 + $0x254] sm:$0xf] }
 0x1b7   : > { %v6640_v13 = vld [vmem:[%s10386_s11 + $0x364] sm:$0xf]  ;;  %v5359_v23 = vor.u32 %v6624_v10, %v5356_v12  ;;  %v6622_v30 = vld [vmem:[%s10386_s11 + $0x2d4] sm:$0xf]  ;;  %v5348_v20 = vld [vmem:[%s10386_s11 + $0x2d8] sm:$0xf0] }
 0x1b8   : > { %2577 = vmatpush.bf16.msrb.mxu0 %v5031_v36  ;;  %2591 = vmatpush.bf16.msrb.mxu1 %v5095_v37  ;;  %v5188_v36 = vld [vmem:[%s10386_s11 + $0x198] sm:$0xf0]  ;;  %v6532_v37 = vld [vmem:[%s10386_s11 + $0x4] sm:$0xf]  ;;  %v6638_v31 = vld [vmem:[%s10386_s11 + $0x354] sm:$0xf] }
 0x1b9   : > { %v5191_v48 = vor.u32 %v6582_v32, %v5188_v36  ;;  %v6656_v63 = vld [vmem:[%s10386_s11 + $0x3e4] sm:$0xf]  ;;  %v5412_v32 = vld [vmem:[%s10386_s11 + $0x358] sm:$0xf0]  ;;  %v6654_v36 = vld [vmem:[%s10386_s11 + $0x3d4] sm:$0xf] }
 0x1ba   : > { %2605 = vmatpush.bf16.msrb.mxu2 %v5159_v0  ;;  %2619 = vmatpush.bf16.msrb.mxu3 %v5223_v1  ;;  %v4988_v0 = vld [vmem:[%s10386_s11 + $0x8] sm:$0xf0]  ;;  %v6548_v1 = vld [vmem:[%s10386_s11 + $0x84] sm:$0xf]  ;;  %v5460_v46 = vld [vmem:[%s10386_s11 + $0x3b8] sm:$0xf0] }
 0x1bb   : > { %v4991_v43 = vor.u32 %v6532_v37, %v4988_v0  ;;  %v5055_v44 = vor.u32 %v6548_v1, %v5052_v38  ;;  %v5476_v37 = vld [vmem:[%s10386_s11 + $0x3d8] sm:$0xf0]  ;;  %v5415_v0 = vor.u32 %v6638_v31, %v5412_v32  ;;  %v6636_v38 = vld [vmem:[%s10386_s11 + $0x344] sm:$0xf]  ;;  %v5388_v10 = vld [vmem:[%s10386_s11 + $0x328] sm:$0xf0] }
 0x1bc   : > { %2578 = vmatpush.bf16.msrb.mxu0 %v5023_v3  ;;  %2592 = vmatpush.bf16.msrb.mxu1 %v5087_v6  ;;  %v5180_v3 = vld [vmem:[%s10386_s11 + $0x188] sm:$0xf0]  ;;  %v6610_v6 = vld [vmem:[%s10386_s11 + $0x274] sm:$0xf]  ;;  %v5479_v1 = vor.u32 %v6654_v36, %v5476_v37  ;;  %v6648_v12 = vld [vmem:[%s10386_s11 + $0x3a4] sm:$0xf] }
 0x1bd   : > { %v5444_v31 = vld [vmem:[%s10386_s11 + $0x398] sm:$0xf0]  ;;  %v6596_v32 = vld [vmem:[%s10386_s11 + $0x204] sm:$0xf] }
 0x1be   : > { %2606 = vmatpush.bf16.msrb.mxu2 %v5151_v21  ;;  %2620 = vmatpush.bf16.msrb.mxu3 %v5215_v42  ;;  %v5364_v21 = vld [vmem:[%s10386_s11 + $0x2f8] sm:$0xf0]  ;;  %v6642_v42 = vld [vmem:[%s10386_s11 + $0x374] sm:$0xf] }
 0x1bf   : > { %v5367_v57 = vor.u32 %v6626_v4, %v5364_v21  ;;  %v6618_v21 = vld [vmem:[%s10386_s11 + $0x2b4] sm:$0xf] }
 0x1c0   : > { %2579 = vmatpush.bf16.msrb.mxu0 %v5015_v50  ;;  %2593 = vmatpush.bf16.msrb.mxu1 %v5079_v51  ;;  %v5183_v50 = vor.u32 %v6580_v2, %v5180_v3  ;;  %v5303_v51 = vor.u32 %v6610_v6, %v5300_v7  ;;  %v6602_v3 = vld [vmem:[%s10386_s11 + $0x234] sm:$0xf]  ;;  %v5268_v6 = vld [vmem:[%s10386_s11 + $0x238] sm:$0xf0] }
 0x1c1   : > { %v5271_v47 = vor.u32 %v6602_v3, %v5268_v6 }
 0x1c2   : > { %2607 = vmatpush.bf16.msrb.mxu2 %v5143_v61  ;;  %2621 = vmatpush.bf16.msrb.mxu3 %v5207_v11  ;;  %v5292_v61 = vld [vmem:[%s10386_s11 + $0x268] sm:$0xf0]  ;;  %v5431_v11 = vor.u32 %v6642_v42, %v5428_v45  ;;  %v5332_v42 = vld [vmem:[%s10386_s11 + $0x2b8] sm:$0xf0]  ;;  %v6650_v45 = vld [vmem:[%s10386_s11 + $0x3b4] sm:$0xf] }
 0x1c4   : > { %2580 = vmatpush.bf16.msrb.mxu0 %v5007_v18  ;;  %2594 = vmatpush.bf16.msrb.mxu1 %v5071_v22  ;;  %v5484_v18 = vld [vmem:[%s10386_s11 + $0x3e8] sm:$0xf0]  ;;  %v5295_v22 = vor.u32 %v6608_v58, %v5292_v61  ;;  %v5463_v58 = vor.u32 %v6650_v45, %v5460_v46  ;;  %v6616_v61 = vld [vmem:[%s10386_s11 + $0x2a4] sm:$0xf] }
 0x1c5   : > { %v5487_v29 = vor.u32 %v6656_v63, %v5484_v18  ;;  %v6598_v18 = vld [vmem:[%s10386_s11 + $0x214] sm:$0xf]  ;;  %v6672_v46 = vld [vmem:[%s10386_s11 + $0x464] sm:$0xf] }
 0x1c6   : > { %2608 = vmatpush.bf16.msrb.mxu2 %v5135_v27  ;;  %2622 = vmatpush.bf16.msrb.mxu3 %v5199_v28  ;;  %v5284_v27 = vld [vmem:[%s10386_s11 + $0x258] sm:$0xf0]  ;;  %v5423_v28 = vor.u32 %v6640_v13, %v5420_v14  ;;  %v5452_v13 = vld [vmem:[%s10386_s11 + $0x3a8] sm:$0xf0] }
 0x1c8   : > { %2581 = vmatpush.bf16.msrb.mxu0 %v4999_v59  ;;  %2595 = vmatpush.bf16.msrb.mxu1 %v5063_v60  ;;  %v6604_v59 = vld [vmem:[%s10386_s11 + $0x244] sm:$0xf]  ;;  %v5276_v60 = vld [vmem:[%s10386_s11 + $0x248] sm:$0xf0] }
 0x1c9   : > { %v5279_v40 = vor.u32 %v6604_v59, %v5276_v60  ;;  %v5308_v59 = vld [vmem:[%s10386_s11 + $0x288] sm:$0xf0] }
 0x1ca   : > { %2609 = vmatpush.bf16.msrb.mxu2 %v5127_v39  ;;  %2623 = vmatpush.bf16.msrb.mxu3 %v5191_v48  ;;  %v5404_v39 = vld [vmem:[%s10386_s11 + $0x348] sm:$0xf0]  ;;  %v6652_v48 = vld [vmem:[%s10386_s11 + $0x3c4] sm:$0xf] }
 0x1cb   : > { %v5407_v7 = vor.u32 %v6636_v38, %v5404_v39  ;;  %v5471_v4 = vor.u32 %v6652_v48, %v5468_v52  ;;  %v5436_v38 = vld [vmem:[%s10386_s11 + $0x388] sm:$0xf0]  ;;  %v6674_v39 = vld [vmem:[%s10386_s11 + $0x474] sm:$0xf]  ;;  %v5556_v48 = vld [vmem:[%s10386_s11 + $0x478] sm:$0xf0] }
 0x1cc   : > { %2582 = vmatpush.bf16.msrb.mxu0 %v4991_v43  ;;  %2596 = vmatpush.bf16.msrb.mxu1 %v5055_v44  ;;  %v6634_v43 = vld [vmem:[%s10386_s11 + $0x334] sm:$0xf]  ;;  %v5396_v44 = vld [vmem:[%s10386_s11 + $0x338] sm:$0xf0] }
 0x1cd   : > { %v6690_v52 = vld [vmem:[%s10386_s11 + $0x4f4] sm:$0xf] }
 0x1ce   : > { %2610 = vmatpush.bf16.msrb.mxu2 %v5119_v49  ;;  %2624 = vmatpush.bf16.msrb.mxu3 %v5183_v50  ;;  %v5335_v49 = vor.u32 %v6618_v21, %v5332_v42  ;;  %v6600_v50 = vld [vmem:[%s10386_s11 + $0x224] sm:$0xf]  ;;  %v5748_v21 = vld [vmem:[%s10386_s11 + $0x5f8] sm:$0xf0] }
 0x1cf   : > { %2583 = vmatmul.bf16.vlgmr.msrb.gmra.mxu0 %v7868_v53  ;;  %2597 = vmatmul.bf16.vlgmr.msrb.gmra.mxu1 %v7870_v54  ;;  %v5287_v53 = vor.u32 %v6606_v24, %v5284_v27  ;;  %v5351_v54 = vor.u32 %v6622_v30, %v5348_v20  ;;  %v5455_v24 = vor.u32 %v6648_v12, %v5452_v13  ;;  %v6614_v27 = vld [vmem:[%s10386_s11 + $0x294] sm:$0xf]  ;;  %v5380_v30 = vld [vmem:[%s10386_s11 + $0x318] sm:$0xf0] }
 0x1d0   : > { %2631 = vmatpush.bf16.msra.mxu0 %v5303_v51  ;;  %2645 = vmatpush.bf16.msra.mxu1 %v5367_v57  ;;  %v5260_v51 = vld [vmem:[%s10386_s11 + $0x228] sm:$0xf0]  ;;  %v5399_v57 = vor.u32 %v6634_v43, %v5396_v44  ;;  %v6646_v20 = vld [vmem:[%s10386_s11 + $0x394] sm:$0xf]  ;;  %v5559_v44 = vor.u32 %v6674_v39, %v5556_v48  ;;  %v5588_v39 = vld [vmem:[%s10386_s11 + $0x4b8] sm:$0xf0] }
 0x1d1   : > { %2611 = vmatmul.bf16.vlgmr.msrb.gmra.mxu2 %v7886_v16  ;;  %2625 = vmatmul.bf16.vlgmr.msrb.gmra.mxu3 %v7888_v17  ;;  %v6620_v16 = vld [vmem:[%s10386_s11 + $0x2c4] sm:$0xf]  ;;  %v5340_v17 = vld [vmem:[%s10386_s11 + $0x2c8] sm:$0xf0]  ;;  %v5263_v14 = vor.u32 %v6600_v50, %v5260_v51  ;;  %v6670_v13 = vld [vmem:[%s10386_s11 + $0x454] sm:$0xf] }
 0x1d2   : > { %2659 = vmatpush.bf16.msra.mxu2 %v5431_v11  ;;  %2673 = vmatpush.bf16.msra.mxu3 %v5495_v5  ;;  %v5343_v2 = vor.u32 %v6620_v16, %v5340_v17  ;;  %v5324_v11 = vld [vmem:[%s10386_s11 + $0x2a8] sm:$0xf0]  ;;  %v6632_v5 = vld [vmem:[%s10386_s11 + $0x324] sm:$0xf]  ;;  %v6698_v48 = vld [vmem:[%s10386_s11 + $0x534] sm:$0xf] }
 0x1d3   : > { %v5327_v63 = vor.u32 %v6616_v61, %v5324_v11  ;;  %v5372_v16 = vld [vmem:[%s10386_s11 + $0x308] sm:$0xf0]  ;;  %v6644_v17 = vld [vmem:[%s10386_s11 + $0x384] sm:$0xf] }
 0x1d4   : > { %2632 = vmatpush.bf16.msra.mxu0 %v5295_v22  ;;  %2646 = vmatpush.bf16.msra.mxu1 %v5359_v23  ;;  %v5252_v22 = vld [vmem:[%s10386_s11 + $0x218] sm:$0xf0]  ;;  %v5391_v23 = vor.u32 %v6632_v5, %v5388_v10  ;;  %v5439_v43 = vor.u32 %v6644_v17, %v5436_v38  ;;  %v6688_v51 = vld [vmem:[%s10386_s11 + $0x4e4] sm:$0xf]  ;;  %v5676_v61 = vld [vmem:[%s10386_s11 + $0x568] sm:$0xf0] }
 0x1d5   : > { %v5255_v36 = vor.u32 %v6598_v18, %v5252_v22  ;;  %v6720_v11 = vld [vmem:[%s10386_s11 + $0x5e4] sm:$0xf]  ;;  %v5740_v5 = vld [vmem:[%s10386_s11 + $0x5e8] sm:$0xf0]  ;;  %v6686_v22 = vld [vmem:[%s10386_s11 + $0x4d4] sm:$0xf] }
 0x1d6   : > { %2660 = vmatpush.bf16.msra.mxu2 %v5423_v28  ;;  %2674 = vmatpush.bf16.msra.mxu3 %v5487_v29  ;;  %v5316_v28 = vld [vmem:[%s10386_s11 + $0x298] sm:$0xf0]  ;;  %v6630_v29 = vld [vmem:[%s10386_s11 + $0x314] sm:$0xf]  ;;  %v5743_v18 = vor.u32 %v6720_v11, %v5740_v5 }
 0x1d7   : > { %v5319_v37 = vor.u32 %v6614_v27, %v5316_v28  ;;  %v5383_v60 = vor.u32 %v6630_v29, %v5380_v30  ;;  %v5668_v27 = vld [vmem:[%s10386_s11 + $0x558] sm:$0xf0]  ;;  %v6718_v28 = vld [vmem:[%s10386_s11 + $0x5d4] sm:$0xf]  ;;  %v6668_v30 = vld [vmem:[%s10386_s11 + $0x444] sm:$0xf] }
 0x1d8   : > { %2633 = vmatpush.bf16.msra.mxu0 %v5287_v53  ;;  %2647 = vmatpush.bf16.msra.mxu1 %v5351_v54  ;;  %v5244_v53 = vld [vmem:[%s10386_s11 + $0x208] sm:$0xf0]  ;;  %v6612_v54 = vld [vmem:[%s10386_s11 + $0x284] sm:$0xf]  ;;  %v5732_v29 = vld [vmem:[%s10386_s11 + $0x5d8] sm:$0xf0] }
 0x1d9   : > { %v5247_v3 = vor.u32 %v6596_v32, %v5244_v53  ;;  %v5311_v6 = vor.u32 %v6612_v54, %v5308_v59  ;;  %v5735_v32 = vor.u32 %v6718_v28, %v5732_v29  ;;  %v6716_v53 = vld [vmem:[%s10386_s11 + $0x5c4] sm:$0xf]  ;;  %v5724_v54 = vld [vmem:[%s10386_s11 + $0x5c8] sm:$0xf0]  ;;  %v6682_v38 = vld [vmem:[%s10386_s11 + $0x4b4] sm:$0xf] }
 0x1da   : > { %2661 = vmatpush.bf16.msra.mxu2 %v5415_v0  ;;  %2675 = vmatpush.bf16.msra.mxu3 %v5479_v1  ;;  %v5447_v0 = vor.u32 %v6646_v20, %v5444_v31  ;;  %v6628_v1 = vld [vmem:[%s10386_s11 + $0x304] sm:$0xf]  ;;  %v5532_v20 = vld [vmem:[%s10386_s11 + $0x448] sm:$0xf0]  ;;  %v5727_v17 = vor.u32 %v6716_v53, %v5724_v54  ;;  %v6678_v5 = vld [vmem:[%s10386_s11 + $0x494] sm:$0xf] }
 0x1db   : > { %v5375_v42 = vor.u32 %v6628_v1, %v5372_v16  ;;  %v5535_v59 = vor.u32 %v6668_v30, %v5532_v20  ;;  %v5524_v1 = vld [vmem:[%s10386_s11 + $0x438] sm:$0xf0]  ;;  %v6676_v29 = vld [vmem:[%s10386_s11 + $0x484] sm:$0xf]  ;;  %v5628_v30 = vld [vmem:[%s10386_s11 + $0x508] sm:$0xf0] }
 0x1dc   : > { %2634 = vmatpush.bf16.msra.mxu0 %v5279_v40  ;;  %2648 = vmatpush.bf16.msra.mxu1 %v5343_v2  ;;  %v5620_v40 = vld [vmem:[%s10386_s11 + $0x4f8] sm:$0xf0]  ;;  %v6706_v2 = vld [vmem:[%s10386_s11 + $0x574] sm:$0xf]  ;;  %v6708_v20 = vld [vmem:[%s10386_s11 + $0x584] sm:$0xf] }
 0x1dd   : > { %v5623_v45 = vor.u32 %v6690_v52, %v5620_v40  ;;  %v5652_v52 = vld [vmem:[%s10386_s11 + $0x538] sm:$0xf0]  ;;  %v6714_v40 = vld [vmem:[%s10386_s11 + $0x5b4] sm:$0xf] }
 0x1de   : > { %2662 = vmatpush.bf16.msra.mxu2 %v5407_v7  ;;  %2676 = vmatpush.bf16.msra.mxu3 %v5471_v4  ;;  %v5684_v7 = vld [vmem:[%s10386_s11 + $0x578] sm:$0xf0]  ;;  %v6722_v4 = vld [vmem:[%s10386_s11 + $0x5f4] sm:$0xf] }
 0x1df   : > { %v5751_v50 = vor.u32 %v6722_v4, %v5748_v21  ;;  %v5516_v4 = vld [vmem:[%s10386_s11 + $0x428] sm:$0xf0]  ;;  %v5655_v21 = vor.u32 %v6698_v48, %v5652_v52 }
 0x1e0   : > { %2635 = vmatpush.bf16.msra.mxu0 %v5271_v47  ;;  %2649 = vmatpush.bf16.msra.mxu1 %v5335_v49  ;;  %v5548_v47 = vld [vmem:[%s10386_s11 + $0x468] sm:$0xf0]  ;;  %v5687_v49 = vor.u32 %v6706_v2, %v5684_v7  ;;  %v5716_v2 = vld [vmem:[%s10386_s11 + $0x5b8] sm:$0xf0]  ;;  %v6664_v7 = vld [vmem:[%s10386_s11 + $0x424] sm:$0xf] }
 0x1e1   : > { %v5551_v10 = vor.u32 %v6672_v46, %v5548_v47  ;;  %v5644_v46 = vld [vmem:[%s10386_s11 + $0x528] sm:$0xf0]  ;;  %v6712_v47 = vld [vmem:[%s10386_s11 + $0x5a4] sm:$0xf] }
 0x1e2   : > { %2663 = vmatpush.bf16.msra.mxu2 %v5399_v57  ;;  %2677 = vmatpush.bf16.msra.mxu3 %v5463_v58  ;;  %v5612_v57 = vld [vmem:[%s10386_s11 + $0x4e8] sm:$0xf0]  ;;  %v6704_v58 = vld [vmem:[%s10386_s11 + $0x564] sm:$0xf] }
 0x1e3   : > { %v5615_v12 = vor.u32 %v6688_v51, %v5612_v57  ;;  %v6662_v57 = vld [vmem:[%s10386_s11 + $0x414] sm:$0xf]  ;;  %v2925_v53 = vld.sshfl [vmem:[#allocation1 + $0x8] sm:$0xff pattern:$0x75316420] }
 0x1e4   : > { %2636 = vmatpush.bf16.msra.mxu0 %v5263_v14  ;;  %2650 = vmatpush.bf16.msra.mxu1 %v5327_v63  ;;  %v5540_v14 = vld [vmem:[%s10386_s11 + $0x458] sm:$0xf0]  ;;  %v5679_v63 = vor.u32 %v6704_v58, %v5676_v61 }
 0x1e5   : > { %v5508_v58 = vld [vmem:[%s10386_s11 + $0x418] sm:$0xf0] }
 0x1e6   : > { %2664 = vmatpush.bf16.msra.mxu2 %v5391_v23  ;;  %2678 = vmatpush.bf16.msra.mxu3 %v5455_v24  ;;  %v5604_v23 = vld [vmem:[%s10386_s11 + $0x4d8] sm:$0xf0]  ;;  %v6702_v24 = vld [vmem:[%s10386_s11 + $0x554] sm:$0xf] }
 0x1e7   : > { %v5671_v31 = vor.u32 %v6702_v24, %v5668_v27  ;;  %v5500_v24 = vld [vmem:[%s10386_s11 + $0x408] sm:$0xf0] }
 0x1e8   : > { %2637 = vmatpush.bf16.msra.mxu0 %v5255_v36  ;;  %2651 = vmatpush.bf16.msra.mxu1 %v5319_v37  ;;  %v6700_v36 = vld [vmem:[%s10386_s11 + $0x544] sm:$0xf]  ;;  %v5660_v37 = vld [vmem:[%s10386_s11 + $0x548] sm:$0xf0] }
 0x1e9   : > { %v5663_v16 = vor.u32 %v6700_v36, %v5660_v37  ;;  %v2924_v37 = vld.sshfl [vmem:[#allocation1] sm:$0xff pattern:$0x75316420] }
 0x1ea   : > { %2665 = vmatpush.bf16.msra.mxu2 %v5383_v60  ;;  %2679 = vmatpush.bf16.msra.mxu3 %v5447_v0  ;;  %v6666_v0 = vld [vmem:[%s10386_s11 + $0x434] sm:$0xf] }
 0x1ec   : > { %2638 = vmatpush.bf16.msra.mxu0 %v5247_v3  ;;  %2652 = vmatpush.bf16.msra.mxu1 %v5311_v6  ;;  %v5527_v3 = vor.u32 %v6666_v0, %v5524_v1  ;;  %v5591_v6 = vor.u32 %v6682_v38, %v5588_v39  ;;  %v2828_v0 = vld [vmem:[%s10384_s9 + $0x78] sm:$0xff]  ;;  %v2827_v38 = vld [vmem:[%s10384_s9 + $0x70] sm:$0xff]  ;;  %v2826_v39 = vld [vmem:[%s10384_s9 + $0x68] sm:$0xff] }
 0x1ee   : > { %2666 = vmatpush.bf16.msra.mxu2 %v5375_v42  ;;  %2680 = vmatpush.bf16.msra.mxu3 %v5439_v43  ;;  %v5719_v42 = vor.u32 %v6714_v40, %v5716_v2  ;;  %v6680_v43 = vld [vmem:[%s10386_s11 + $0x4a4] sm:$0xf] }
 0x1ef   : > { %2639 = vmatmul.bf16.vlgmr.msra.gmra.mxu0 %v8031_v33  ;;  %2653 = vmatmul.bf16.vlgmr.msra.gmra.mxu1 %v8033_v34  ;;  %v5543_v33 = vor.u32 %v6670_v13, %v5540_v14  ;;  %v5607_v34 = vor.u32 %v6686_v22, %v5604_v23  ;;  %v5636_v13 = vld [vmem:[%s10386_s11 + $0x518] sm:$0xf0]  ;;  %v6710_v14 = vld [vmem:[%s10386_s11 + $0x594] sm:$0xf]  ;;  %v6660_v23 = vld [vmem:[%s10386_s11 + $0x404] sm:$0xf] }
 0x1f0   : > { %2687 = vmatpush.bf16.msrb.mxu0 %v5559_v44  ;;  %2701 = vmatpush.bf16.msrb.mxu1 %v5623_v45  ;;  %v5580_v44 = vld [vmem:[%s10386_s11 + $0x4a8] sm:$0xf0]  ;;  %v6696_v45 = vld [vmem:[%s10386_s11 + $0x524] sm:$0xf] }
 0x1f1   : > { %2667 = vmatmul.bf16.vlgmr.msra.gmra.mxu2 %v8035_v35  ;;  %2681 = vmatmul.bf16.vlgmr.msra.gmra.mxu3 %v8063_v55  ;;  %v6684_v35 = vld [vmem:[%s10386_s11 + $0x4c4] sm:$0xf]  ;;  %v5596_v55 = vld [vmem:[%s10386_s11 + $0x4c8] sm:$0xf0]  ;;  %v5583_v51 = vor.u32 %v6680_v43, %v5580_v44  ;;  %v5647_v61 = vor.u32 %v6696_v45, %v5644_v46  ;;  %v2823_v44 = vld [vmem:[%s10384_s9 + $0x50] sm:$0xff] }
 0x1f2   : > { %2715 = vmatpush.bf16.msrb.mxu2 %v5687_v49  ;;  %2729 = vmatpush.bf16.msrb.mxu3 %v5751_v50  ;;  %v5599_v60 = vor.u32 %v6684_v35, %v5596_v55  ;;  %v5708_v49 = vld [vmem:[%s10386_s11 + $0x5a8] sm:$0xf0]  ;;  %v5519_v50 = vor.u32 %v6664_v7, %v5516_v4  ;;  %v2824_v4 = vld [vmem:[%s10384_s9 + $0x58] sm:$0xff] }
 0x1f3   : > { %v5711_v11 = vor.u32 %v6712_v47, %v5708_v49  ;;  %v2822_v45 = vld [vmem:[%s10384_s9 + $0x48] sm:$0xff] }
 0x1f4   : > { %2688 = vmatpush.bf16.msrb.mxu0 %v5551_v10  ;;  %2702 = vmatpush.bf16.msrb.mxu1 %v5615_v12  ;;  %v5572_v10 = vld [vmem:[%s10386_s11 + $0x498] sm:$0xf0]  ;;  %v6694_v12 = vld [vmem:[%s10386_s11 + $0x514] sm:$0xf] }
 0x1f5   : > { %v5575_v22 = vor.u32 %v6678_v5, %v5572_v10  ;;  %v5639_v27 = vor.u32 %v6694_v12, %v5636_v13  ;;  %v2819_v10 = vld [vmem:[%s10384_s9 + $0x30] sm:$0xff]  ;;  %v2818_v13 = vld [vmem:[%s10384_s9 + $0x28] sm:$0xff] }
 0x1f6   : > { %2716 = vmatpush.bf16.msrb.mxu2 %v5679_v63  ;;  %2730 = vmatpush.bf16.msrb.mxu3 %v5743_v18  ;;  %v5700_v63 = vld [vmem:[%s10386_s11 + $0x598] sm:$0xf0]  ;;  %v5511_v18 = vor.u32 %v6662_v57, %v5508_v58 }
 0x1f7   : > { %v5703_v28 = vor.u32 %v6710_v14, %v5700_v63 }
 0x1f8   : > { %2689 = vmatpush.bf16.msrb.mxu0 %v5543_v33  ;;  %2703 = vmatpush.bf16.msrb.mxu1 %v5607_v34  ;;  %v5564_v33 = vld [vmem:[%s10386_s11 + $0x488] sm:$0xf0]  ;;  %v6692_v34 = vld [vmem:[%s10386_s11 + $0x504] sm:$0xf] }
 0x1f9   : > { %v5567_v35 = vor.u32 %v6676_v29, %v5564_v33  ;;  %v5631_v55 = vor.u32 %v6692_v34, %v5628_v30  ;;  %v2815_v34 = vld [vmem:[%s10384_s9 + $0x10] sm:$0xff] }
 0x1fa   : > { %2717 = vmatpush.bf16.msrb.mxu2 %v5671_v31  ;;  %2731 = vmatpush.bf16.msrb.mxu3 %v5735_v32  ;;  %v5692_v31 = vld [vmem:[%s10386_s11 + $0x588] sm:$0xf0]  ;;  %v5503_v32 = vor.u32 %v6660_v23, %v5500_v24  ;;  %v2817_v23 = vld [vmem:[%s10384_s9 + $0x20] sm:$0xff] }
 0x1fb   : > { %v5695_v36 = vor.u32 %v6708_v20, %v5692_v31  ;;  %v2814_v20 = vld [vmem:[%s10384_s9 + $0x8] sm:$0xff] }
 0x1fc   : > { %2690 = vmatpush.bf16.msrb.mxu0 %v5535_v59  ;;  %2704 = vmatpush.bf16.msrb.mxu1 %v5599_v60  ;;  %v8761_v60 = vld [vmem:[%s10387_s12] sm:$0x3] }
 0x1fe   : > { %2718 = vmatpush.bf16.msrb.mxu2 %v5663_v16  ;;  %2732 = vmatpush.bf16.msrb.mxu3 %v5727_v17 }
 0x200   : > { %2691 = vmatpush.bf16.msrb.mxu0 %v5527_v3  ;;  %2705 = vmatpush.bf16.msrb.mxu1 %v5591_v6  ;;  %v2825_v6 = vld [vmem:[%s10384_s9 + $0x60] sm:$0xff] }
 0x202   : > { %2719 = vmatpush.bf16.msrb.mxu2 %v5655_v21  ;;  %2733 = vmatpush.bf16.msrb.mxu3 %v5719_v42 }
 0x204   : > { %2692 = vmatpush.bf16.msrb.mxu0 %v5519_v50  ;;  %2706 = vmatpush.bf16.msrb.mxu1 %v5583_v51  ;;  %v2821_v51 = vld [vmem:[%s10384_s9 + $0x40] sm:$0xff] }
 0x206   : > { %2720 = vmatpush.bf16.msrb.mxu2 %v5647_v61  ;;  %2734 = vmatpush.bf16.msrb.mxu3 %v5711_v11  ;;  %v2820_v61 = vld [vmem:[%s10384_s9 + $0x38] sm:$0xff] }
 0x208   : > { %2693 = vmatpush.bf16.msrb.mxu0 %v5511_v18  ;;  %2707 = vmatpush.bf16.msrb.mxu1 %v5575_v22 }
 0x20a   : > { %2721 = vmatpush.bf16.msrb.mxu2 %v5639_v27  ;;  %2735 = vmatpush.bf16.msrb.mxu3 %v5703_v28  ;;  %v2816_v28 = vld [vmem:[%s10384_s9 + $0x18] sm:$0xff] }
 0x20b   : > { %v2416_v54 = vpop.f32.mrf.mxu0  ;;  %v2430_v59 = vpop.f32.mrf.mxu1 }
 0x20c   : > { %2694 = vmatpush.bf16.msrb.mxu0 %v5503_v32  ;;  %2708 = vmatpush.bf16.msrb.mxu1 %v5567_v35 }
 0x20e   : > { %2722 = vmatpush.bf16.msrb.mxu2 %v5631_v55  ;;  %2736 = vmatpush.bf16.msrb.mxu3 %v5695_v36 }
 0x20f   : > { %2695 = vmatmul.bf16.vlgmr.msrb.gmra.mxu0 %v8204_v15  ;;  %2709 = vmatmul.bf16.vlgmr.msrb.gmra.mxu1 %v8206_v19  ;;  %v1443_v15 = vperm.slane %v8761_v60, 0 }
 0x210   : > { %2845 = vmatpush.msra.mxu0 %v2828_v0 }
 0x211   : > { %2723 = vmatmul.bf16.vlgmr.msrb.gmra.mxu2 %v8214_v25  ;;  %2737 = vmatmul.bf16.vlgmr.msrb.gmra.mxu3 %v8216_v26  ;;  %v2417_v17 = vadd.f32 %v2416_v54, %v1443_v15 }
 0x212   : > { %5752 = vmatpush.msk.msra.mxu2 %vm2930_vm15, %v2924_v37  ;;  %5754 = vmatpush.msk.msra.mxu3 %vm2930_vm15, %v2925_v53  ;;  %v2813_v37 = vld [vmem:[%s10384_s9] sm:$0xff] }
 0x213   : > { %v2418_v1 = vpop.f32.mrf.mxu0  ;;  %v2432_v19 = vpop.f32.mrf.mxu1  ;;  %v2431_v26 = vadd.f32 %v2430_v59, %v2417_v17  ;;  %2846 = vmatpush.msra.mxu0 %v2827_v38 }
 0x214   : > { %v2444_v16 = vpop.f32.mrf.mxu2  ;;  %v2458_v25 = vpop.f32.mrf.mxu3  ;;  %v2419_v7 = vadd.f32 %v2418_v1, %v1443_v15 }
 0x215   : > { %v2445_v40 = vadd.f32 %v2444_v16, %v2431_v26  ;;  %2847 = vmatpush.msra.mxu0 %v2826_v39 }
 0x216   : > { %v2433_v42 = vadd.f32 %v2432_v19, %v2419_v7 }
 0x217   : > { %2848 = vmatpush.msra.mxu0 %v2825_v6  ;;  %v2459_v21 = vadd.f32 %v2458_v25, %v2445_v40 }
 0x219   : > { %2849 = vmatpush.msra.mxu0 %v2824_v4 }
 0x21b   : > { %2850 = vmatpush.msra.mxu0 %v2823_v44 }
 0x21c   : > { %v2446_v48 = vpop.f32.mrf.mxu2  ;;  %v2460_v52 = vpop.f32.mrf.mxu3 }
 0x21d   : > { %v2472_v2 = vpop.f32.mrf.mxu0  ;;  %v2486_v3 = vpop.f32.mrf.mxu1  ;;  %v2447_v49 = vadd.f32 %v2446_v48, %v2433_v42  ;;  %2851 = vmatpush.msra.mxu0 %v2822_v45 }
 0x21e   : > { %v2473_v43 = vadd.f32 %v2472_v2, %v2459_v21 }
 0x21f   : > { %2852 = vmatpush.msra.mxu0 %v2821_v51  ;;  %v2461_v11 = vadd.f32 %v2460_v52, %v2447_v49 }
 0x220   : > { %v2487_v58 = vadd.f32 %v2486_v3, %v2473_v43 }
 0x221   : > { %2853 = vmatpush.msra.mxu0 %v2820_v61 }
 0x223   : > { %2854 = vmatpush.msra.mxu0 %v2819_v10 }
 0x224   : > { %v2500_v46 = vpop.f32.mrf.mxu2  ;;  %v2514_v47 = vpop.f32.mrf.mxu3 }
 0x225   : > { %v2474_v50 = vpop.f32.mrf.mxu0  ;;  %v2488_v57 = vpop.f32.mrf.mxu1  ;;  %v2501_v5 = vadd.f32 %v2500_v46, %v2487_v58  ;;  %2855 = vmatpush.msra.mxu0 %v2818_v13 }
 0x226   : > { %v2475_v12 = vadd.f32 %v2474_v50, %v2461_v11 }
 0x227   : > { %v2515_v18 = vadd.f32 %v2514_v47, %v2501_v5  ;;  %2856 = vmatpush.msra.mxu0 %v2817_v23 }
 0x228   : > { %v2489_v24 = vadd.f32 %v2488_v57, %v2475_v12 }
 0x229   : > { %2857 = vmatpush.msra.mxu0 %v2816_v28 }
 0x22b   : > { %2858 = vmatpush.msra.mxu0 %v2815_v34 }
 0x22c   : > { %v2502_v14 = vpop.f32.mrf.mxu2  ;;  %v2516_v63 = vpop.f32.mrf.mxu3 }
 0x22d   : > { %v2528_v22 = vpop.f32.mrf.mxu0  ;;  %v2542_v29 = vpop.f32.mrf.mxu1  ;;  %v2503_v33 = vadd.f32 %v2502_v14, %v2489_v24  ;;  %2859 = vmatpush.msra.mxu0 %v2814_v20  ;;  %v2842_v20 = vld [vmem:[%s10384_s9 + $0xe8] sm:$0xff] }
 0x22e   : > { %v2529_v27 = vadd.f32 %v2528_v22, %v2515_v18  ;;  %v2844_v18 = vld [vmem:[%s10384_s9 + $0xf8] sm:$0xff]  ;;  %v1444_v22 = vperm.slane %v8761_v60, 1  ;;  %v2841_v60 = vld [vmem:[%s10384_s9 + $0xe0] sm:$0xff] }
 0x22f   : > { %v2517_v35 = vadd.f32 %v2516_v63, %v2503_v33  ;;  %2860 = vmatpush.msra.mxu0 %v2813_v37  ;;  %2865 = vmatpush.msra.mxu1 %v2844_v18 }
 0x230   : > { %v2543_v30 = vadd.f32 %v2542_v29, %v2529_v27 }
 0x234   : > { %v2556_v31 = vpop.f32.mrf.mxu2  ;;  %v2570_v32 = vpop.f32.mrf.mxu3 }
 0x235   : > { %v2557_v55 = vadd.f32 %v2556_v31, %v2543_v30  ;;  %v2530_v36 = vpop.f32.mrf.mxu0  ;;  %v2544_v15 = vpop.f32.mrf.mxu1  ;;  %v2843_v30 = vld [vmem:[%s10384_s9 + $0xf0] sm:$0xff] }
 0x236   : > { %v2531_v54 = vadd.f32 %v2530_v36, %v2517_v35  ;;  %2866 = vmatpush.msra.mxu1 %v2843_v30 }
 0x237   : > { %v8812_v53 = vadd.f32 %v2570_v32, %v2557_v55  ;;  %v2840_v55 = vld [vmem:[%s10384_s9 + $0xd8] sm:$0xff] }
 0x238   : > { %v2545_v19 = vadd.f32 %v2544_v15, %v2531_v54  ;;  %2867 = vmatpush.msra.mxu1 %v2842_v20  ;;  %v2839_v15 = vld [vmem:[%s10384_s9 + $0xd0] sm:$0xff] }
 0x239   : > { %v2743_v59 = vrot.slane %v8812_v53, 4  ;;  %v2767_v0 = vmul.f32 %v8812_v53, %v8812_v53 }
 0x23a   : > { %2868 = vmatpush.msra.mxu1 %v2841_v60 }
 0x23b   : > { %v2771_v1 = vrot.slane %v2767_v0, 4  ;;  %v2744_v25 = vadd.f32 %v2743_v59, %v8812_v53 }
 0x23c   : > { %v2558_v16 = vpop.f32.mrf.mxu2  ;;  %v2572_v38 = vpop.f32.mrf.mxu3  ;;  %2869 = vmatpush.msra.mxu1 %v2840_v55 }
 0x23d   : > { %v2559_v17 = vadd.f32 %v2558_v16, %v2545_v19  ;;  %v2772_v26 = vadd.f32 %v2771_v1, %v2767_v0  ;;  %v2745_v40 = vrot.slane %v2744_v25, 2  ;;  %v2838_v1 = vld [vmem:[%s10384_s9 + $0xc8] sm:$0xff] }
 0x23e   : > { %2870 = vmatpush.msra.mxu1 %v2839_v15 }
 0x23f   : > { %v8818_v39 = vadd.f32 %v2572_v38, %v2559_v17  ;;  %v2773_v2 = vrot.slane %v2772_v26, 2  ;;  %v2746_v7 = vadd.f32 %v2745_v40, %v2744_v25  ;;  %v2837_v25 = vld [vmem:[%s10384_s9 + $0xc0] sm:$0xff]  ;;  %v2835_v40 = vld [vmem:[%s10384_s9 + $0xb0] sm:$0xff] }
 0x240   : > { %2871 = vmatpush.msra.mxu1 %v2838_v1 }
 0x241   : > { %v2755_v48 = vrot.slane %v8818_v39, 4  ;;  %v2769_v52 = vmul.f32 %v8818_v39, %v8818_v39  ;;  %v2774_v21 = vadd.f32 %v2773_v2, %v2772_v26  ;;  %v2747_v45 = vrot.slane %v2746_v7, 1  ;;  %v2836_v26 = vld [vmem:[%s10384_s9 + $0xb8] sm:$0xff] }
 0x242   : > { %2872 = vmatpush.msra.mxu1 %v2837_v25 }
 0x243   : > { %v2756_v3 = vadd.f32 %v2755_v48, %v8818_v39  ;;  %v2783_v6 = vrot.slane %v2769_v52, 4  ;;  %v2775_v47 = vrot.slane %v2774_v21, 1  ;;  %v2748_v57 = vadd.f32 %v2747_v45, %v2746_v7  ;;  %v2832_v45 = vld [vmem:[%s10384_s9 + $0x98] sm:$0xff] }
 0x244   : > { %2873 = vmatpush.msra.mxu1 %v2836_v26 }
 0x245   : > { %v2757_v4 = vrot.slane %v2756_v3, 2  ;;  %v2784_v42 = vadd.f32 %v2783_v6, %v2769_v52  ;;  %v2776_v58 = vadd.f32 %v2775_v47, %v2774_v21 }
 0x246   : > { %2874 = vmatpush.msra.mxu1 %v2835_v40 }
 0x247   : > { %v2758_v43 = vadd.f32 %v2757_v4, %v2756_v3  ;;  %v2785_v44 = vrot.slane %v2784_v42, 2  ;;  %v2834_v3 = vld [vmem:[%s10384_s9 + $0xa8] sm:$0xff] }
 0x248   : > { %2875 = vmatpush.msra.mxu1 %v2834_v3 }
 0x249   : > { %v2759_v46 = vrot.slane %v2758_v43, 1  ;;  %v2786_v49 = vadd.f32 %v2785_v44, %v2784_v42  ;;  %v2833_v42 = vld [vmem:[%s10384_s9 + $0xa0] sm:$0xff] }
 0x24a   : > { %2876 = vmatpush.msra.mxu1 %v2833_v42 }
 0x24b   : > { %v2760_v50 = vadd.f32 %v2759_v46, %v2758_v43  ;;  %v2787_v51 = vrot.slane %v2786_v49, 1 }
 0x24c   : > { %v2584_v12 = vpop.f32.mrf.mxu0  ;;  %v2598_v13 = vpop.f32.mrf.mxu1  ;;  %2877 = vmatpush.msra.mxu1 %v2832_v45  ;;  %v5942_v45 = vld [vmem:[%s10388_s13 + $0x170] sm:$0xf] }
 0x24d   : > { %v2788_v61 = vadd.f32 %v2787_v51, %v2786_v49  ;;  %v2799_v11 = vsel %vm708_vm0, %v2760_v50, %v2748_v57  ;;  %v2585_v27 = vadd.f32 %v2584_v12, %v1444_v22  ;;  %v2831_v49 = vld [vmem:[%s10384_s9 + $0x90] sm:$0xff]  ;;  %v2830_v51 = vld [vmem:[%s10384_s9 + $0x88] sm:$0xff] }
 0x24e   : > { %2878 = vmatpush.msra.mxu1 %v2831_v49 }
 0x24f   : > { %v2807_v5 = vsel %vm725_vm1, %v2788_v61, %v2776_v58  ;;  %v2599_v33 = vadd.f32 %v2598_v13, %v2585_v27 }
 0x250   : > { %v2811_v10 = vsel %vm734_vm2, %v2799_v11, %v2807_v5  ;;  %2879 = vmatpush.msra.mxu1 %v2830_v51  ;;  %v6787_v51 = vld [vmem:[%s10388_s13 + $0x1f4] sm:$0xf0] }
 0x251   : > { %2861 = vmatmul.f32.vlgmr.msra.gmra.mxu0 %v2811_v10  ;;  %v2829_v10 = vld [vmem:[%s10384_s9 + $0x80] sm:$0xff] }
 0x252   : > { %2880 = vmatpush.msra.mxu1 %v2829_v10 }
 0x254   : > { %v2612_v14 = vpop.f32.mrf.mxu2  ;;  %v2626_v63 = vpop.f32.mrf.mxu3 }
 0x255   : > { %v2586_v23 = vpop.f32.mrf.mxu0  ;;  %v2600_v24 = vpop.f32.mrf.mxu1  ;;  %v2613_v31 = vadd.f32 %v2612_v14, %v2599_v33 }
 0x256   : > { %v2587_v35 = vadd.f32 %v2586_v23, %v1444_v22 }
 0x257   : > { %v2627_v36 = vadd.f32 %v2626_v63, %v2613_v31 }
 0x258   : > { %v2601_v59 = vadd.f32 %v2600_v24, %v2587_v35 }
 0x25c   : > { %v2614_v28 = vpop.f32.mrf.mxu2  ;;  %v2628_v29 = vpop.f32.mrf.mxu3 }
 0x25d   : > { %v2615_v19 = vadd.f32 %v2614_v28, %v2601_v59 }
 0x25f   : > { %v2629_v48 = vadd.f32 %v2628_v29, %v2615_v19 }
 0x26c   : > { %v2640_v34 = vpop.f32.mrf.mxu0  ;;  %v2654_v32 = vpop.f32.mrf.mxu1 }
 0x26d   : > { %v2641_v0 = vadd.f32 %v2640_v34, %v2627_v36 }
 0x26f   : > { %v2655_v17 = vadd.f32 %v2654_v32, %v2641_v0 }
 0x274   : > { %v2668_v37 = vpop.f32.mrf.mxu2  ;;  %v2682_v54 = vpop.f32.mrf.mxu3 }
 0x275   : > { %v2642_v16 = vpop.f32.mrf.mxu0  ;;  %v2656_v38 = vpop.f32.mrf.mxu1  ;;  %v2669_v52 = vadd.f32 %v2668_v37, %v2655_v17 }
 0x276   : > { %v2643_v2 = vadd.f32 %v2642_v16, %v2629_v48 }
 0x277   : > { %v2683_v4 = vadd.f32 %v2682_v54, %v2669_v52 }
 0x278   : > { %v2657_v43 = vadd.f32 %v2656_v38, %v2643_v2 }
 0x27c   : > { %v2670_v6 = vpop.f32.mrf.mxu2  ;;  %v2684_v7 = vpop.f32.mrf.mxu3 }
 0x27d   : > { %v2671_v47 = vadd.f32 %v2670_v6, %v2657_v43 }
 0x27f   : > { %v2685_v61 = vadd.f32 %v2684_v7, %v2671_v47  ;;  %v6006_v47 = vld [vmem:[%s10388_s13 + $0x1f0] sm:$0xf] }
 0x28c   : > { %v2696_v21 = vpop.f32.mrf.mxu0  ;;  %v2710_v46 = vpop.f32.mrf.mxu1 }
 0x28d   : > { %v2697_v44 = vadd.f32 %v2696_v21, %v2683_v4 }
 0x28f   : > { %v2711_v50 = vadd.f32 %v2710_v46, %v2697_v44  ;;  %v6771_v46 = vld [vmem:[%s10388_s13 + $0x174] sm:$0xf0] }
 0x294   : > { %v2724_v57 = vpop.f32.mrf.mxu2  ;;  %v2738_v58 = vpop.f32.mrf.mxu3 }
 0x295   : > { %v2725_v11 = vadd.f32 %v2724_v57, %v2711_v50  ;;  %v2698_v5 = vpop.f32.mrf.mxu0  ;;  %v2712_v18 = vpop.f32.mrf.mxu1  ;;  %v5943_v50 = vor.u32 %v6771_v46, %v5942_v45  ;;  %v5934_v57 = vld [vmem:[%s10388_s13 + $0x160] sm:$0xf] }
 0x296   : > { %v2699_v13 = vadd.f32 %v2698_v5, %v2685_v61  ;;  %v6769_v61 = vld [vmem:[%s10388_s13 + $0x164] sm:$0xf0] }
 0x297   : > { %v8876_v12 = vadd.f32 %v2738_v58, %v2725_v11  ;;  %v6007_v58 = vor.u32 %v6787_v51, %v6006_v47  ;;  %v5998_v11 = vld [vmem:[%s10388_s13 + $0x1e0] sm:$0xf]  ;;  %v6785_v5 = vld [vmem:[%s10388_s13 + $0x1e4] sm:$0xf0]  ;;  %3701 = vmatpush.bf16.msrb.mxu0 %v5943_v50  ;;  %v5935_v10 = vor.u32 %v6769_v61, %v5934_v57  ;;  %v6731_v61 = vld [vmem:[%s10388_s13 + $0x34] sm:$0xf0] }
 0x298   : > { %v2713_v23 = vadd.f32 %v2712_v18, %v2699_v13  ;;  %v5814_v13 = vld [vmem:[%s10388_s13 + $0x70] sm:$0xf]  ;;  %v5999_v18 = vor.u32 %v6785_v5, %v5998_v11  ;;  %v5902_v47 = vld [vmem:[%s10388_s13 + $0x120] sm:$0xf]  ;;  %v6761_v57 = vld [vmem:[%s10388_s13 + $0x124] sm:$0xf0] }
 0x299   : > { %v2749_v14 = vrot.slane %v8876_v12, 4  ;;  %v2768_v63 = vmul.f32 %v8876_v12, %v8876_v12  ;;  %3715 = vmatpush.bf16.msrb.mxu1 %v6007_v58  ;;  %v5782_v58 = vld [vmem:[%s10388_s13 + $0x30] sm:$0xf] }
 0x29b   : > { %v2777_v22 = vrot.slane %v2768_v63, 4  ;;  %v2750_v27 = vadd.f32 %v2749_v14, %v8876_v12  ;;  %v6739_v14 = vld [vmem:[%s10388_s13 + $0x74] sm:$0xf0]  ;;  %3702 = vmatpush.bf16.msrb.mxu0 %v5935_v10  ;;  %v5846_v10 = vld [vmem:[%s10388_s13 + $0xb0] sm:$0xf] }
 0x29c   : > { %v2726_v24 = vpop.f32.mrf.mxu2  ;;  %v2740_v33 = vpop.f32.mrf.mxu3 }
 0x29d   : > { %v2727_v28 = vadd.f32 %v2726_v24, %v2713_v23  ;;  %v2778_v29 = vadd.f32 %v2777_v22, %v2768_v63  ;;  %v2751_v31 = vrot.slane %v2750_v27, 2  ;;  %v5878_v63 = vld [vmem:[%s10388_s13 + $0xf0] sm:$0xf]  ;;  %v5815_v22 = vor.u32 %v6739_v14, %v5814_v13  ;;  %v6755_v23 = vld [vmem:[%s10388_s13 + $0xf4] sm:$0xf0]  ;;  %3716 = vmatpush.bf16.msrb.mxu1 %v5999_v18 }
 0x29e   : > { %v5926_v24 = vld [vmem:[%s10388_s13 + $0x150] sm:$0xf]  ;;  %v6747_v13 = vld [vmem:[%s10388_s13 + $0xb4] sm:$0xf0]  ;;  %v6926_v14 = vld [vmem:[%s10378_s3] ss:$0 sm:$0xff] }
 0x29f   : > { %v8882_v34 = vadd.f32 %v2740_v33, %v2727_v28  ;;  %v2779_v60 = vrot.slane %v2778_v29, 2  ;;  %v2752_v55 = vadd.f32 %v2751_v31, %v2750_v27  ;;  %v6767_v27 = vld [vmem:[%s10388_s13 + $0x154] sm:$0xf0]  ;;  %v5879_v28 = vor.u32 %v6755_v23, %v5878_v63  ;;  %3673 = vmatpush.bf16.msrb.mxu2 %v5815_v22  ;;  %v5870_v31 = vld [vmem:[%s10388_s13 + $0xe0] sm:$0xf] }
 0x2a0   : > { %v6783_v33 = vld [vmem:[%s10388_s13 + $0x1d4] sm:$0xf0]  ;;  %v5966_v63 = vld [vmem:[%s10388_s13 + $0x1a0] sm:$0xf]  ;;  %v6777_v18 = vld [vmem:[%s10388_s13 + $0x1a4] sm:$0xf0] }
 0x2a1   : > { %v2761_v30 = vrot.slane %v8882_v34, 4  ;;  %v2770_v20 = vmul.f32 %v8882_v34, %v8882_v34  ;;  %v2780_v37 = vadd.f32 %v2779_v60, %v2778_v29  ;;  %v2753_v15 = vrot.slane %v2752_v55, 1  ;;  %v5990_v29 = vld [vmem:[%s10388_s13 + $0x1d0] sm:$0xf]  ;;  %v6753_v60 = vld [vmem:[%s10388_s13 + $0xe4] sm:$0xf0]  ;;  %3687 = vmatpush.bf16.msrb.mxu3 %v5879_v28 }
 0x2a2   : > { %v5894_v28 = vld [vmem:[%s10388_s13 + $0x110] sm:$0xf]  ;;  %v6752_v23 = vld [vmem:[%s10388_s13 + $0xe4] sm:$0xf] }
 0x2a3   : > { %v2762_v32 = vadd.f32 %v2761_v30, %v8882_v34  ;;  %v2789_v35 = vrot.slane %v2770_v20, 4  ;;  %v2781_v19 = vrot.slane %v2780_v37, 1  ;;  %v2754_v26 = vadd.f32 %v2753_v15, %v2752_v55  ;;  %v5806_v30 = vld [vmem:[%s10388_s13 + $0x60] sm:$0xf]  ;;  %v6735_v15 = vld [vmem:[%s10388_s13 + $0x54] sm:$0xf0] }
 0x2a4   : > { %v5871_v55 = vor.u32 %v6753_v60, %v5870_v31  ;;  %v6759_v31 = vld [vmem:[%s10388_s13 + $0x114] sm:$0xf0]  ;;  %v5838_v60 = vld [vmem:[%s10388_s13 + $0xa0] sm:$0xf] }
 0x2a5   : > { %v2763_v36 = vrot.slane %v2762_v32, 2  ;;  %v2790_v54 = vadd.f32 %v2789_v35, %v2770_v20  ;;  %v2782_v38 = vadd.f32 %v2781_v19, %v2780_v37  ;;  %v6737_v20 = vld [vmem:[%s10388_s13 + $0x64] sm:$0xf0] }
 0x2a6   : > { %v5807_v35 = vor.u32 %v6737_v20, %v5806_v30  ;;  %v6765_v37 = vld [vmem:[%s10388_s13 + $0x144] sm:$0xf0]  ;;  %3688 = vmatpush.bf16.msrb.mxu3 %v5871_v55  ;;  %v5967_v20 = vor.u32 %v6777_v18, %v5966_v63  ;;  %v5958_v55 = vld [vmem:[%s10388_s13 + $0x190] sm:$0xf]  ;;  %v5808_v63 = vld [vmem:[%s10388_s13 + $0x68] sm:$0xf0] }
 0x2a7   : > { %v2764_v59 = vadd.f32 %v2763_v36, %v2762_v32  ;;  %v2791_v0 = vrot.slane %v2790_v54, 2  ;;  %v5927_v32 = vor.u32 %v6767_v27, %v5926_v24  ;;  %v5918_v36 = vld [vmem:[%s10388_s13 + $0x140] sm:$0xf]  ;;  %v6781_v19 = vld [vmem:[%s10388_s13 + $0x1c4] sm:$0xf0]  ;;  %v5903_v24 = vor.u32 %v6761_v57, %v5902_v47 }
 0x2a8   : > { %3674 = vmatpush.bf16.msrb.mxu2 %v5807_v35  ;;  %v5847_v27 = vor.u32 %v6747_v13, %v5846_v10  ;;  %v6741_v47 = vld [vmem:[%s10388_s13 + $0x84] sm:$0xf0] }
 0x2a9   : > { %v2765_v1 = vrot.slane %v2764_v59, 1  ;;  %v2792_v16 = vadd.f32 %v2791_v0, %v2790_v54  ;;  %v5991_v54 = vor.u32 %v6783_v33, %v5990_v29  ;;  %v5798_v0 = vld [vmem:[%s10388_s13 + $0x50] sm:$0xf]  ;;  %3703 = vmatpush.bf16.msrb.mxu0 %v5927_v32  ;;  %v5774_v29 = vld [vmem:[%s10388_s13 + $0x20] sm:$0xf] }
 0x2aa   : > { %v6729_v33 = vld [vmem:[%s10388_s13 + $0x24] sm:$0xf0] }
 0x2ab   : > { %v2766_v25 = vadd.f32 %v2765_v1, %v2764_v59  ;;  %v2793_v17 = vrot.slane %v2792_v16, 1  ;;  %v5982_v59 = vld [vmem:[%s10388_s13 + $0x1c0] sm:$0xf]  ;;  %3717 = vmatpush.bf16.msrb.mxu1 %v5991_v54  ;;  %v6745_v32 = vld [vmem:[%s10388_s13 + $0xa4] sm:$0xf0]  ;;  %v5775_v54 = vor.u32 %v6729_v33, %v5774_v29 }
 0x2ac   : > { %v6734_v33 = vld [vmem:[%s10388_s13 + $0x54] sm:$0xf] }
 0x2ad   : > { %v2794_v48 = vadd.f32 %v2793_v17, %v2792_v16  ;;  %v2800_v52 = vsel %vm708_vm0, %v2766_v25, %v2754_v26  ;;  %v5862_v16 = vld [vmem:[%s10388_s13 + $0xd0] sm:$0xf]  ;;  %v6751_v25 = vld [vmem:[%s10388_s13 + $0xd4] sm:$0xf0]  ;;  %v5799_v26 = vor.u32 %v6735_v15, %v5798_v0  ;;  %v5895_v15 = vor.u32 %v6759_v31, %v5894_v28 }
 0x2af   : > { %v2808_v40 = vsel %vm725_vm1, %v2794_v48, %v2782_v38  ;;  %v5919_v38 = vor.u32 %v6765_v37, %v5918_v36  ;;  %v5863_v48 = vor.u32 %v6751_v25, %v5862_v16  ;;  %3675 = vmatpush.bf16.msrb.mxu2 %v5799_v26  ;;  %v6775_v36 = vld [vmem:[%s10388_s13 + $0x194] sm:$0xf0]  ;;  %v6927_v37 = vld [vmem:[%s10379_s4] ss:$0 sm:$0xff]  ;;  %v5830_v26 = vld [vmem:[%s10388_s13 + $0x90] sm:$0xf] }
 0x2b0   : > { %v2812_v2 = vsel %vm734_vm2, %v2800_v52, %v2808_v40  ;;  %v5910_v52 = vld [vmem:[%s10388_s13 + $0x130] sm:$0xf]  ;;  %v5790_v40 = vld [vmem:[%s10388_s13 + $0x40] sm:$0xf]  ;;  %v6727_v16 = vld [vmem:[%s10388_s13 + $0x14] sm:$0xf0]  ;;  %v5959_v25 = vor.u32 %v6775_v36, %v5958_v55 }
 0x2b1   : > { %2881 = vmatmul.f32.vlgmr.msra.gmra.mxu1 %v2812_v2  ;;  %v6733_v2 = vld [vmem:[%s10388_s13 + $0x44] sm:$0xf0]  ;;  %3704 = vmatpush.bf16.msrb.mxu0 %v5919_v38  ;;  %v6743_v38 = vld [vmem:[%s10388_s13 + $0x94] sm:$0xf0] }
 0x2b2   : > { %v5791_v46 = vor.u32 %v6733_v2, %v5790_v40  ;;  %3689 = vmatpush.bf16.msrb.mxu3 %v5863_v48  ;;  %v6773_v40 = vld [vmem:[%s10388_s13 + $0x184] sm:$0xf0]  ;;  %v6738_v2 = vld [vmem:[%s10388_s13 + $0x74] sm:$0xf] }
 0x2b4   : > { %3676 = vmatpush.bf16.msrb.mxu2 %v5791_v46  ;;  %v5822_v46 = vld [vmem:[%s10388_s13 + $0x80] sm:$0xf] }
 0x2ce   : > { %v2862_v3 = vpop.f32.mrf.mxu0 }
 0x32e   : > { %v2882_v6 = vpop.f32.mrf.mxu1 }
 0x32f   : > { %v2883_v7 = vadd.f32 %v2882_v6, %v2862_v3  ;;  %v5983_v6 = vor.u32 %v6781_v19, %v5982_v59  ;;  %v5886_v59 = vld [vmem:[%s10388_s13 + $0x100] sm:$0xf]  ;;  %v5766_v19 = vld [vmem:[%s10388_s13 + $0x10] sm:$0xf] }
 0x331   : > { %v8891_v4 = vmul.f32 0.001953125, %v2883_v7  ;;  %v6763_v7 = vld [vmem:[%s10388_s13 + $0x134] sm:$0xf0]  ;;  %3718 = vmatpush.bf16.msrb.mxu1 %v5983_v6  ;;  %v5816_v6 = vld [vmem:[%s10388_s13 + $0x78] sm:$0xf0] }
 0x332   : > { %v5911_v50 = vor.u32 %v6763_v7, %v5910_v52  ;;  %v5950_v52 = vld [vmem:[%s10388_s13 + $0x180] sm:$0xf]  ;;  %v5880_v7 = vld [vmem:[%s10388_s13 + $0xf8] sm:$0xf0] }
 0x333   : > { %v2886_v21 = vmul.f32 %v8891_v4, %v8891_v4 }
 0x334   : > { %3705 = vmatpush.bf16.msrb.mxu0 %v5911_v50  ;;  %v6070_v50 = vld [vmem:[%s10388_s13 + $0x270] sm:$0xf] }
 0x335   : > { %v2888_v42 = vrot.slane %v2886_v21, 6  ;;  %v5854_v21 = vld [vmem:[%s10388_s13 + $0xc0] sm:$0xf] }
 0x337   : > { %v2890_v43 = vsub.f32 %v8891_v4, %v2888_v42  ;;  %v6749_v42 = vld [vmem:[%s10388_s13 + $0xc4] sm:$0xf0] }
 0x338   : > { %v5855_v51 = vor.u32 %v6749_v42, %v5854_v21  ;;  %3706 = vmatpush.bf16.msrb.mxu0 %v5903_v24 }
 0x339   : > { %v2891_v44 = vmax.f32 %v2890_v43, 0.0  ;;  %v5974_v43 = vld [vmem:[%s10388_s13 + $0x1b0] sm:$0xf] }
 0x33a   : > { %3690 = vmatpush.bf16.msrb.mxu3 %v5855_v51  ;;  %v6803_v51 = vld [vmem:[%s10388_s13 + $0x274] sm:$0xf0] }
 0x33b   : > { %v8905_v49 = vadd.f32 1e-05, %v2891_v44  ;;  %v6779_v44 = vld [vmem:[%s10388_s13 + $0x1b4] sm:$0xf0]  ;;  %v6071_v24 = vor.u32 %v6803_v51, %v6070_v50  ;;  %v5776_v50 = vld [vmem:[%s10388_s13 + $0x28] sm:$0xf0] }
 0x33c   : > { %v5975_v5 = vor.u32 %v6779_v44, %v5974_v43  ;;  %3707 = vmatpush.bf16.msrb.mxu0 %v5895_v15  ;;  %v5831_v43 = vor.u32 %v6743_v38, %v5830_v26  ;;  %v5758_v44 = vld [vmem:[%s10388_s13] sm:$0xf]  ;;  %v5792_v15 = vld [vmem:[%s10388_s13 + $0x48] sm:$0xf0]  ;;  %v6799_v26 = vld [vmem:[%s10388_s13 + $0x254] sm:$0xf0] }
 0x33d   : > { %6932 = vrsqrt.f32 %v8905_v49  ;;  %vm2900_vm4 = vweird.f32 %v8905_v49  ;;  %v6118_v38 = vld [vmem:[%s10388_s13 + $0x2d0] sm:$0xf]  ;;  %v6744_v51 = vld [vmem:[%s10388_s13 + $0xa4] sm:$0xf] }
 0x33e   : > { %3719 = vmatpush.bf16.msrb.mxu1 %v5975_v5  ;;  %3691 = vmatpush.bf16.msrb.mxu3 %v5847_v27  ;;  %v6819_v5 = vld [vmem:[%s10388_s13 + $0x2f4] sm:$0xf0] }
 0x342   : > { %3720 = vmatpush.bf16.msrb.mxu1 %v5967_v20  ;;  %v6750_v20 = vld [vmem:[%s10388_s13 + $0xd4] sm:$0xf] }
 0x343   : > { %v6933_v1 = vpop.eup %6932 }
 0x344   : > { %v2895_v17 = vmul.f32 %v6933_v1, %v8905_v49  ;;  %vm2901_vm3 = vweird.f32 %v6933_v1  ;;  %v5783_v49 = vor.u32 %v6731_v61, %v5782_v58  ;;  %v5951_v58 = vor.u32 %v6773_v40, %v5950_v52  ;;  %v6815_v52 = vld [vmem:[%s10388_s13 + $0x2d4] sm:$0xf0]  ;;  %v6730_v40 = vld [vmem:[%s10388_s13 + $0x34] sm:$0xf] }
 0x345   : > { %vm9037_vm5 = vmor %vm2900_vm4, %vm2901_vm3  ;;  %v5819_v61 = vor.u32 %v6738_v2, %v5816_v6  ;;  %v5784_v2 = vld [vmem:[%s10388_s13 + $0x38] sm:$0xf0]  ;;  %v6746_v6 = vld [vmem:[%s10388_s13 + $0xb4] sm:$0xf] }
 0x346   : > { %v2896_v3 = vmul.f32 %v6933_v1, %v2895_v17  ;;  %3677 = vmatpush.bf16.msrb.mxu2 %v5783_v49  ;;  %v6757_v17 = vld [vmem:[%s10388_s13 + $0x104] sm:$0xf0]  ;;  %3721 = vmatpush.bf16.msrb.mxu1 %v5959_v25  ;;  %v5872_v49 = vld [vmem:[%s10388_s13 + $0xe8] sm:$0xf0] }
 0x347   : > { %v5887_v42 = vor.u32 %v6757_v17, %v5886_v59  ;;  %v5875_v29 = vor.u32 %v6752_v23, %v5872_v49  ;;  %v6732_v59 = vld [vmem:[%s10388_s13 + $0x44] sm:$0xf]  ;;  %v6054_v17 = vld [vmem:[%s10388_s13 + $0x250] sm:$0xf]  ;;  %v6742_v23 = vld [vmem:[%s10388_s13 + $0x94] sm:$0xf] }
 0x348   : > { %v2897_v45 = vmul.f32 0.5, %v2896_v3  ;;  %v5767_v3 = vor.u32 %v6727_v16, %v5766_v19  ;;  %v5856_v19 = vld [vmem:[%s10388_s13 + $0xc8] sm:$0xf0]  ;;  %v5795_v16 = vor.u32 %v6732_v59, %v5792_v15 }
 0x349   : > { %3708 = vmatpush.bf16.msrb.mxu0 %v5887_v42  ;;  %v6797_v42 = vld [vmem:[%s10388_s13 + $0x244] sm:$0xf0]  ;;  %v5824_v15 = vld [vmem:[%s10388_s13 + $0x88] sm:$0xf0] }
 0x34a   : > { %v2898_v11 = vsub.f32 1.5, %v2897_v45  ;;  %3678 = vmatpush.bf16.msrb.mxu2 %v5775_v54  ;;  %v6725_v45 = vld [vmem:[%s10388_s13 + $0x4] sm:$0xf0]  ;;  %3722 = vmatpush.bf16.msrb.mxu1 %v5951_v58  ;;  %v5840_v58 = vld [vmem:[%s10388_s13 + $0xa8] sm:$0xf0] }
 0x34b   : > { %v5759_v13 = vor.u32 %v6725_v45, %v5758_v44  ;;  %v6817_v54 = vld [vmem:[%s10388_s13 + $0x2e4] sm:$0xf0] }
 0x34c   : > { %v2899_v22 = vmul.f32 %v6933_v1, %v2898_v11  ;;  %v6134_v11 = vld [vmem:[%s10388_s13 + $0x2f0] sm:$0xf]  ;;  %v6813_v44 = vld [vmem:[%s10388_s13 + $0x2c4] sm:$0xf0] }
 0x34d   : > { %v6135_v27 = vor.u32 %v6819_v5, %v6134_v11  ;;  %3757 = vmatpush.bf16.msra.mxu0 %v5819_v61  ;;  %v6038_v61 = vld [vmem:[%s10388_s13 + $0x230] sm:$0xf]  ;;  %v6795_v11 = vld [vmem:[%s10388_s13 + $0x234] sm:$0xf0] }
 0x34e   : > { %v2903_v30 = vsel %vm9037_vm5, %v6933_v1, %v2899_v22  ;;  %v5839_v1 = vor.u32 %v6745_v32, %v5838_v60  ;;  %3679 = vmatpush.bf16.msrb.mxu2 %v5767_v3  ;;  %v5823_v22 = vor.u32 %v6741_v47, %v5822_v46  ;;  %v5864_v60 = vld [vmem:[%s10388_s13 + $0xd8] sm:$0xf0]  ;;  %v6062_v32 = vld [vmem:[%s10388_s13 + $0x260] sm:$0xf]  ;;  %v6119_v3 = vor.u32 %v6815_v52, %v6118_v38  ;;  %v6728_v47 = vld [vmem:[%s10388_s13 + $0x24] sm:$0xf] }
 0x34f   : > { %v2907_v35 = vmul.f32 %v6926_v14, %v2903_v30  ;;  %v6736_v14 = vld [vmem:[%s10388_s13 + $0x64] sm:$0xf]  ;;  %v5800_v30 = vld [vmem:[%s10388_s13 + $0x58] sm:$0xf0]  ;;  %v5867_v55 = vor.u32 %v6750_v20, %v5864_v60  ;;  %v6102_v5 = vld [vmem:[%s10388_s13 + $0x2b0] sm:$0xf] }
 0x350   : > { %3692 = vmatpush.bf16.msrb.mxu3 %v5839_v1  ;;  %v5811_v28 = vor.u32 %v6736_v14, %v5808_v63  ;;  %v5803_v31 = vor.u32 %v6734_v33, %v5800_v30  ;;  %v6748_v1 = vld [vmem:[%s10388_s13 + $0xc4] sm:$0xf]  ;;  %v5843_v14 = vor.u32 %v6744_v51, %v5840_v58  ;;  %v6039_v63 = vor.u32 %v6795_v11, %v6038_v61  ;;  %v6094_v30 = vld [vmem:[%s10388_s13 + $0x2a0] sm:$0xf]  ;;  %v6809_v20 = vld [vmem:[%s10388_s13 + $0x2a4] sm:$0xf0] }
 0x351   : > { %v2910_v0 = vrot.slane %v2907_v35, 2  ;;  %v6801_v35 = vld [vmem:[%s10388_s13 + $0x264] sm:$0xf0]  ;;  %v5859_v25 = vor.u32 %v6748_v1, %v5856_v19  ;;  %v6022_v1 = vld [vmem:[%s10388_s13 + $0x210] sm:$0xf] }
 0x352   : > { %3680 = vmatpush.bf16.msrb.mxu2 %v5759_v13  ;;  %3758 = vmatpush.bf16.msra.mxu0 %v5811_v28  ;;  %v6063_v36 = vor.u32 %v6801_v35, %v6062_v32  ;;  %v5779_v13 = vor.u32 %v6728_v47, %v5776_v50  ;;  %v6793_v28 = vld [vmem:[%s10388_s13 + $0x224] sm:$0xf0]  ;;  %v6724_v32 = vld [vmem:[%s10388_s13 + $0x4] sm:$0xf]  ;;  %v6791_v19 = vld [vmem:[%s10388_s13 + $0x214] sm:$0xf0] }
 0x353   : > { %v2912_v48 = vmul.f32 %v2910_v0, %v8891_v4  ;;  %v6754_v4 = vld [vmem:[%s10388_s13 + $0xf4] sm:$0xf] }
 0x354   : > { %v5883_v10 = vor.u32 %v6754_v4, %v5880_v7  ;;  %3693 = vmatpush.bf16.msrb.mxu3 %v5831_v43  ;;  %v5848_v4 = vld [vmem:[%s10388_s13 + $0xb8] sm:$0xf0]  ;;  %v6046_v7 = vld [vmem:[%s10388_s13 + $0x240] sm:$0xf] }
 0x355   : > { %v2916_v21 = vsub.f32 %v6927_v37, %v2912_v48  ;;  %v6126_v37 = vld [vmem:[%s10388_s13 + $0x2e0] sm:$0xf]  ;;  %v6055_v48 = vor.u32 %v6799_v26, %v6054_v17  ;;  %v5851_v45 = vor.u32 %v6746_v6, %v5848_v4  ;;  %v6047_v46 = vor.u32 %v6797_v42, %v6046_v7  ;;  %v6807_v17 = vld [vmem:[%s10388_s13 + $0x294] sm:$0xf0]  ;;  %v6789_v4 = vld [vmem:[%s10388_s13 + $0x204] sm:$0xf0] }
 0x356   : > { %3771 = vmatpush.bf16.msra.mxu1 %v5883_v10  ;;  %3759 = vmatpush.bf16.msra.mxu0 %v5803_v31  ;;  %v6110_v43 = vld [vmem:[%s10388_s13 + $0x2c0] sm:$0xf]  ;;  %v6811_v10 = vld [vmem:[%s10388_s13 + $0x2b4] sm:$0xf0] }
 0x357   : > { %v2918_v57 = vrot.slane %v2916_v21, 6  ;;  %v5787_v21 = vor.u32 %v6730_v40, %v5784_v2  ;;  %v6103_v49 = vor.u32 %v6811_v10, %v6102_v5  ;;  %v6014_v6 = vld [vmem:[%s10388_s13 + $0x200] sm:$0xf] }
 0x358   : > { %3694 = vmatpush.bf16.msrb.mxu3 %v5823_v22  ;;  %v5768_v22 = vld [vmem:[%s10388_s13 + $0x18] sm:$0xf0]  ;;  %v6015_v51 = vor.u32 %v6789_v4, %v6014_v6  ;;  %v6064_v4 = vld [vmem:[%s10388_s13 + $0x268] sm:$0xf0] }
 0x359   : > { %v2920_v18 = vsel %vm734_vm2, %v2910_v0, %v2918_v57  ;;  %v6127_v0 = vor.u32 %v6817_v54, %v6126_v37  ;;  %v6111_v57 = vor.u32 %v6813_v44, %v6110_v43  ;;  %v6740_v37 = vld [vmem:[%s10388_s13 + $0x84] sm:$0xf]  ;;  %v6078_v43 = vld [vmem:[%s10388_s13 + $0x280] sm:$0xf]  ;;  %v6805_v44 = vld [vmem:[%s10388_s13 + $0x284] sm:$0xf0] }
 0x35a   : > { %5753 = vmatmul.msk.f32.vlgmr.msra.gmra.mxu2 %vm2926_vm6, %v2920_v18  ;;  %5755 = vmatmul.msk.f32.vlgmr.msra.gmra.mxu3 %vm2926_vm6, %v2920_v18  ;;  %v6726_v18 = vld [vmem:[%s10388_s13 + $0x14] sm:$0xf]  ;;  %v5827_v2 = vor.u32 %v6740_v37, %v5824_v15  ;;  %v6079_v5 = vor.u32 %v6805_v44, %v6078_v43  ;;  %v5944_v44 = vld [vmem:[%s10388_s13 + $0x178] sm:$0xf0] }
 0x35b   : > { %3729 = vmatpush.bf16.msra.mxu2 %v6071_v24  ;;  %3772 = vmatpush.bf16.msra.mxu1 %v5875_v29  ;;  %v5832_v24 = vld [vmem:[%s10388_s13 + $0x98] sm:$0xf0]  ;;  %v5771_v60 = vor.u32 %v6726_v18, %v5768_v22  ;;  %v6770_v43 = vld [vmem:[%s10388_s13 + $0x174] sm:$0xf] }
 0x35c   : > { %3743 = vmatpush.bf16.msra.mxu3 %v6135_v27  ;;  %3760 = vmatpush.bf16.msra.mxu0 %v5795_v16  ;;  %v6030_v27 = vld [vmem:[%s10388_s13 + $0x220] sm:$0xf]  ;;  %v5835_v35 = vor.u32 %v6742_v23, %v5832_v24  ;;  %v6802_v24 = vld [vmem:[%s10388_s13 + $0x274] sm:$0xf] }
 0x35f   : > { %3773 = vmatpush.bf16.msra.mxu1 %v5867_v55  ;;  %3730 = vmatpush.bf16.msra.mxu2 %v6063_v36  ;;  %v6031_v55 = vor.u32 %v6793_v28, %v6030_v27  ;;  %v5760_v36 = vld [vmem:[%s10388_s13 + $0x8] sm:$0xf0] }
 0x360   : > { %3744 = vmatpush.bf16.msra.mxu3 %v6127_v0  ;;  %3761 = vmatpush.bf16.msra.mxu0 %v5787_v21  ;;  %v6095_v0 = vor.u32 %v6809_v20, %v6094_v30  ;;  %v6818_v30 = vld [vmem:[%s10388_s13 + $0x2f4] sm:$0xf]  ;;  %v6136_v20 = vld [vmem:[%s10388_s13 + $0x2f8] sm:$0xf0] }
 0x363   : > { %3774 = vmatpush.bf16.msra.mxu1 %v5859_v25  ;;  %3731 = vmatpush.bf16.msra.mxu2 %v6055_v48  ;;  %v6086_v25 = vld [vmem:[%s10388_s13 + $0x290] sm:$0xf]  ;;  %v5763_v48 = vor.u32 %v6724_v32, %v5760_v36 }
 0x364   : > { %3745 = vmatpush.bf16.msra.mxu3 %v6119_v3  ;;  %3762 = vmatpush.bf16.msra.mxu0 %v5779_v13  ;;  %v6023_v3 = vor.u32 %v6791_v19, %v6022_v1  ;;  %v6087_v7 = vor.u32 %v6807_v17, %v6086_v25 }
 0x367   : > { %3775 = vmatpush.bf16.msra.mxu1 %v5851_v45  ;;  %3732 = vmatpush.bf16.msra.mxu2 %v6047_v46 }
 0x368   : > { %3746 = vmatpush.bf16.msra.mxu3 %v6111_v57  ;;  %3763 = vmatpush.bf16.msra.mxu0 %v5771_v60 }
 0x36b   : > { %3776 = vmatpush.bf16.msra.mxu1 %v5843_v14  ;;  %3733 = vmatpush.bf16.msra.mxu2 %v6039_v63 }
 0x36c   : > { %3747 = vmatpush.bf16.msra.mxu3 %v6103_v49  ;;  %3764 = vmatpush.bf16.msra.mxu0 %v5763_v48 }
 0x36f   : > { %3777 = vmatpush.bf16.msra.mxu1 %v5835_v35  ;;  %3734 = vmatpush.bf16.msra.mxu2 %v6031_v55 }
 0x370   : > { %3748 = vmatpush.bf16.msra.mxu3 %v6095_v0  ;;  %v6139_v0 = vor.u32 %v6818_v30, %v6136_v20  ;;  %v6796_v30 = vld [vmem:[%s10388_s13 + $0x244] sm:$0xf] }
 0x373   : > { %3778 = vmatpush.bf16.msra.mxu1 %v5827_v2  ;;  %3735 = vmatpush.bf16.msra.mxu2 %v6023_v3 }
 0x374   : > { %3749 = vmatpush.bf16.msra.mxu3 %v6087_v7  ;;  %v6816_v7 = vld [vmem:[%s10388_s13 + $0x2e4] sm:$0xf] }
 0x377   : > { %3736 = vmatpush.bf16.msra.mxu2 %v6015_v51  ;;  %v6786_v51 = vld [vmem:[%s10388_s13 + $0x1f4] sm:$0xf] }
 0x378   : > { %3750 = vmatpush.bf16.msra.mxu3 %v6079_v5 }
 0x3dd   : > { %v2952_v29 = vpop.f32.mrf.mxu2  ;;  %v2972_v33 = vpop.f32.mrf.mxu3 }
 0x3de   : > { %2993 = vst [vmem:[#allocation1] sm:$0xff] %v2952_v29  ;;  %v2977_v31 = vrot.slane %v2972_v33, 7 }
 0x3df   : > { %2994 = vst [vmem:[#allocation1 + $0x9] sm:$0xff] %v2972_v33 }
 0x3e0   : > { %v2978_v54 = vsel %vm1014_vm7, %v2952_v29, %v2977_v31  ;;  %v2979_v59 = vsel %vm708_vm0, %v2952_v29, %v2977_v31 }
 0x3e1   : > { %v2980_v16 = vrot.slane %v2979_v59, 1  ;;  %v2981_v26 = vperm.slane %v2978_v54, 0  ;;  %v2982_v38 = vperm.slane %v2978_v54, 1 }
 0x3e3   : > { %v2983_v52 = vperm.slane %v2980_v16, 0  ;;  %v2984_v40 = vperm.slane %v2980_v16, 1  ;;  %v2989_v45 = vmul.f32 %v2981_v26, %v8812_v53  ;;  %v2990_v46 = vmul.f32 %v2982_v38, %v8876_v12 }
 0x3e5   : > { %v2991_v21 = vmul.f32 %v2983_v52, %v8818_v39  ;;  %v2992_v42 = vmul.f32 %v2984_v40, %v8882_v34  ;;  %v6800_v52 = vld [vmem:[%s10388_s13 + $0x264] sm:$0xf] }
 0x3e6   : > { %v2996_v47 = vld [vmem:[#allocation1 + $0x2] ss:$9 sm:$0xff] }
 0x3e7   : > { %v2998_v50 = vld [vmem:[#allocation1 + $0x3] ss:$9 sm:$0xff]  ;;  %v2999_v57 = vperm.slane %v2996_v47, 0  ;;  %v3000_v58 = vperm.slane %v2996_v47, 1 }
 0x3e8   : > { %v3001_v61 = vperm.slane %v2998_v50, 0  ;;  %v3002_v11 = vperm.slane %v2998_v50, 1  ;;  %3987 = vst [vmem:[#allocation1] ss:$2 sm:$0xff] %v7955_v41  ;;  %v6072_v41 = vld [vmem:[%s10388_s13 + $0x278] sm:$0xf0] }
 0x3e9   : > { %v3007_v10 = vadd.f32 %v2999_v57, %v2989_v45  ;;  %v3008_v13 = vadd.f32 %v3000_v58, %v2990_v46  ;;  %v6075_v60 = vor.u32 %v6802_v24, %v6072_v41  ;;  %v6008_v57 = vld [vmem:[%s10388_s13 + $0x1f8] sm:$0xf0]  ;;  %v6814_v24 = vld [vmem:[%s10388_s13 + $0x2d4] sm:$0xf] }
 0x3ea   : > { %v3009_v14 = vadd.f32 %v3001_v61, %v2991_v21  ;;  %v3010_v63 = vadd.f32 %v3002_v11, %v2992_v42  ;;  %v6128_v42 = vld [vmem:[%s10388_s13 + $0x2e8] sm:$0xf0]  ;;  %v6120_v41 = vld [vmem:[%s10388_s13 + $0x2d8] sm:$0xf0] }
 0x3eb   : > { %v3011_v18 = vmul.f32 0.01, %v3007_v10  ;;  %v3012_v22 = vmul.f32 0.01, %v3008_v13 }
 0x3ec   : > { %v3013_v23 = vmul.f32 0.01, %v3009_v14  ;;  %v3014_v49 = vmul.f32 0.01, %v3010_v63 }
 0x3ed   : > { %v9315_v27 = vmax.f32 %v3007_v10, %v3011_v18  ;;  %v9317_v28 = vmax.f32 %v3008_v13, %v3012_v22  ;;  %v6067_v10 = vor.u32 %v6800_v52, %v6064_v4  ;;  %v6131_v13 = vor.u32 %v6816_v7, %v6128_v42  ;;  %v6040_v52 = vld [vmem:[%s10388_s13 + $0x238] sm:$0xf0]  ;;  %v6810_v7 = vld [vmem:[%s10388_s13 + $0x2b4] sm:$0xf]  ;;  %v6764_v42 = vld [vmem:[%s10388_s13 + $0x144] sm:$0xf] }
 0x3ee   : > { %v9319_v29 = vmax.f32 %v3009_v14, %v3013_v23  ;;  %v9321_v33 = vmax.f32 %v3010_v63, %v3014_v49  ;;  %v6798_v14 = vld [vmem:[%s10388_s13 + $0x254] sm:$0xf]  ;;  %v6056_v63 = vld [vmem:[%s10388_s13 + $0x258] sm:$0xf0]  ;;  %v5947_v23 = vor.u32 %v6770_v43, %v5944_v44  ;;  %v6011_v49 = vor.u32 %v6786_v51, %v6008_v57  ;;  %v5920_v44 = vld [vmem:[%s10388_s13 + $0x148] sm:$0xf0] }
 0x3ef   : > { %v3057_v31 = vpack.c.bf16 %v9317_v28, %v9315_v27  ;;  %v3023_v32 = vrot.slane %v9315_v27, 7  ;;  %v3024_v55 = vrot.slane %v9317_v28, 7  ;;  %v3039_v45 = vrot.slane %v9315_v27, 1  ;;  %v6768_v27 = vld [vmem:[%s10388_s13 + $0x164] sm:$0xf] }
 0x3f0   : > { %v3058_v35 = vpack.c.bf16 %v9321_v33, %v9319_v29  ;;  %v3025_v36 = vrot.slane %v9319_v29, 7  ;;  %v3027_v37 = vrot.slane %v9321_v33, 7  ;;  %v3042_v46 = vrot.slane %v9317_v28, 1  ;;  %v5936_v28 = vld [vmem:[%s10388_s13 + $0x168] sm:$0xf0] }
 0x3f1   : > { %v3073_v54 = vunpack.c.l.b16 %v3057_v31  ;;  %v3074_v59 = vunpack.c.h.b16 %v3057_v31  ;;  %v3033_v15 = vsel %vm1014_vm7, 0.0, %v3023_v32  ;;  %v3034_v17 = vsel %vm1014_vm7, 0.0, %v3024_v55 }
 0x3f2   : > { %v3075_v1 = vunpack.c.l.b16 %v3058_v35  ;;  %v3076_v19 = vunpack.c.h.b16 %v3058_v35  ;;  %v3026_v16 = vsel %vm1014_vm7, %v3023_v32, %v3025_v36  ;;  %v3028_v25 = vsel %vm1014_vm7, %v3024_v55, %v3027_v37  ;;  %v6048_v36 = vld [vmem:[%s10388_s13 + $0x248] sm:$0xf0]  ;;  %v6812_v37 = vld [vmem:[%s10388_s13 + $0x2c4] sm:$0xf] }
 0x3f3   : > { %v3035_v26 = vsel %vm7780_vm10, 0.0, %v3033_v15  ;;  %v3037_v38 = vsel %vm7786_vm11, 0.0, %v3026_v16  ;;  %v3038_v48 = vsel %vm7786_vm11, 0.0, %v3028_v25  ;;  %v3036_v3 = vsel %vm7780_vm10, 0.0, %v3034_v17  ;;  %v6766_v15 = vld [vmem:[%s10388_s13 + $0x154] sm:$0xf] }
 0x3f4   : > { %v9350_v40 = vpack.c.b16 %v3075_v1, %v3073_v54  ;;  %v9352_v2 = vpack.c.b16 %v3076_v19, %v3074_v59  ;;  %v3056_v6 = vpack.c.bf16 %v3038_v48, %v3037_v38  ;;  %v3055_v21 = vpack.c.bf16 %v3036_v3, %v3035_v26  ;;  %v6112_v54 = vld [vmem:[%s10388_s13 + $0x2c8] sm:$0xf0]  ;;  %v5928_v1 = vld [vmem:[%s10388_s13 + $0x158] sm:$0xf0]  ;;  %v6782_v19 = vld [vmem:[%s10388_s13 + $0x1d4] sm:$0xf] }
 0x3f5   : > { %v3040_v11 = vrot.slane %v9319_v29, 1  ;;  %v3043_v5 = vrot.slane %v9321_v33, 1  ;;  %v6784_v29 = vld [vmem:[%s10388_s13 + $0x1e4] sm:$0xf]  ;;  %v6000_v33 = vld [vmem:[%s10388_s13 + $0x1e8] sm:$0xf0]  ;;  %v6059_v35 = vor.u32 %v6798_v14, %v6056_v63  ;;  %v6123_v55 = vor.u32 %v6814_v24, %v6120_v41 }
 0x3f6   : > { %3709 = vmatmul.bf16.vlgmr.msrb.gmra.mxu0 %v9350_v40  ;;  %3723 = vmatmul.bf16.vlgmr.msrb.gmra.mxu1 %v9352_v2  ;;  %v3065_v47 = vunpack.c.l.b16 %v3056_v6  ;;  %v3066_v50 = vunpack.c.h.b16 %v3056_v6  ;;  %v3063_v58 = vunpack.c.l.b16 %v3055_v21  ;;  %v3064_v61 = vunpack.c.h.b16 %v3055_v21  ;;  %v5992_v16 = vld [vmem:[%s10388_s13 + $0x1d8] sm:$0xf0]  ;;  %v6794_v48 = vld [vmem:[%s10388_s13 + $0x234] sm:$0xf] }
 0x3f7   : > { %3813 = vmatpush.bf16.msrb.mxu0 %v6075_v60  ;;  %3827 = vmatpush.bf16.msrb.mxu1 %v6139_v0  ;;  %v3041_v20 = vsel %vm1140_vm12, %v3039_v45, %v3040_v11  ;;  %v3044_v31 = vsel %vm1140_vm12, %v3042_v46, %v3043_v5  ;;  %v3049_v60 = vsel %vm1140_vm12, %v3040_v11, 0.0  ;;  %v3050_v32 = vsel %vm1140_vm12, %v3043_v5, 0.0  ;;  %v6104_v21 = vld [vmem:[%s10388_s13 + $0x2b8] sm:$0xf0]  ;;  %v6780_v45 = vld [vmem:[%s10388_s13 + $0x1c4] sm:$0xf] }
 0x3f8   : > { %v9389_v18 = vpack.c.b16 %v3065_v47, %v3063_v58  ;;  %v9391_v22 = vpack.c.b16 %v3066_v50, %v3064_v61  ;;  %v5939_v59 = vor.u32 %v6768_v27, %v5936_v28  ;;  %v6003_v0 = vor.u32 %v6784_v29, %v6000_v33  ;;  %v5984_v46 = vld [vmem:[%s10388_s13 + $0x1c8] sm:$0xf0]  ;;  %v6792_v11 = vld [vmem:[%s10388_s13 + $0x224] sm:$0xf]  ;;  %v6762_v24 = vld [vmem:[%s10388_s13 + $0x134] sm:$0xf] }
 0x3f9   : > { %v3051_v25 = vsel %vm7979_vm13, 0.0, %v3041_v20  ;;  %v3052_v17 = vsel %vm7979_vm13, 0.0, %v3044_v31  ;;  %v3053_v26 = vsel %vm8070_vm14, 0.0, %v3049_v60  ;;  %v3054_v38 = vsel %vm8070_vm14, 0.0, %v3050_v32  ;;  %v6032_v5 = vld [vmem:[%s10388_s13 + $0x228] sm:$0xf0] }
 0x3fa   : > { %3681 = vmatmul.bf16.vlgmr.msrb.gmra.mxu2 %v9389_v18  ;;  %3695 = vmatmul.bf16.vlgmr.msrb.gmra.mxu3 %v9391_v22  ;;  %v6051_v3 = vor.u32 %v6796_v30, %v6048_v36  ;;  %v6115_v6 = vor.u32 %v6812_v37, %v6112_v54  ;;  %v5931_v4 = vor.u32 %v6766_v15, %v5928_v1  ;;  %v5912_v41 = vld [vmem:[%s10388_s13 + $0x138] sm:$0xf0]  ;;  %v6778_v27 = vld [vmem:[%s10388_s13 + $0x1b4] sm:$0xf]  ;;  %v5904_v36 = vld [vmem:[%s10388_s13 + $0x128] sm:$0xf0] }
 0x3fb   : > { %3814 = vmatpush.bf16.msrb.mxu0 %v6067_v10  ;;  %3828 = vmatpush.bf16.msrb.mxu1 %v6131_v13  ;;  %v5995_v43 = vor.u32 %v6782_v19, %v5992_v16  ;;  %v3059_v47 = vpack.c.bf16 %v3052_v17, %v3051_v25  ;;  %v3060_v50 = vpack.c.bf16 %v3054_v38, %v3053_v26  ;;  %v6808_v10 = vld [vmem:[%s10388_s13 + $0x2a4] sm:$0xf]  ;;  %v5976_v28 = vld [vmem:[%s10388_s13 + $0x1b8] sm:$0xf0]  ;;  %v6790_v20 = vld [vmem:[%s10388_s13 + $0x214] sm:$0xf] }
 0x3fc   : > { %3785 = vmatpush.bf16.msrb.mxu2 %v5947_v23  ;;  %3799 = vmatpush.bf16.msrb.mxu3 %v6011_v49  ;;  %v6043_v51 = vor.u32 %v6794_v48, %v6040_v52  ;;  %v6107_v57 = vor.u32 %v6810_v7, %v6104_v21  ;;  %v5923_v58 = vor.u32 %v6764_v42, %v5920_v44  ;;  %v6096_v49 = vld [vmem:[%s10388_s13 + $0x2a8] sm:$0xf0]  ;;  %v6806_v32 = vld [vmem:[%s10388_s13 + $0x294] sm:$0xf]  ;;  %v6776_v37 = vld [vmem:[%s10388_s13 + $0x1a4] sm:$0xf] }
 0x3fd   : > { %v5987_v61 = vor.u32 %v6780_v45, %v5984_v46  ;;  %v3083_v13 = vunpack.c.l.b16 %v3059_v47  ;;  %v3085_v14 = vunpack.c.l.b16 %v3060_v50  ;;  %v3084_v63 = vunpack.c.h.b16 %v3059_v47  ;;  %v5968_v54 = vld [vmem:[%s10388_s13 + $0x1a8] sm:$0xf0]  ;;  %v6788_v15 = vld [vmem:[%s10388_s13 + $0x204] sm:$0xf]  ;;  %v6758_v26 = vld [vmem:[%s10388_s13 + $0x114] sm:$0xf] }
 0x3fe   : > { %v3086_v23 = vunpack.c.h.b16 %v3060_v50  ;;  %v6035_v29 = vor.u32 %v6792_v11, %v6032_v5  ;;  %v6099_v33 = vor.u32 %v6808_v10, %v6096_v49  ;;  %v5915_v30 = vor.u32 %v6762_v24, %v5912_v41  ;;  %v6016_v1 = vld [vmem:[%s10388_s13 + $0x208] sm:$0xf0]  ;;  %v6804_v25 = vld [vmem:[%s10388_s13 + $0x284] sm:$0xf]  ;;  %v5896_v38 = vld [vmem:[%s10388_s13 + $0x118] sm:$0xf0] }
 0x3ff   : > { %3815 = vmatpush.bf16.msrb.mxu0 %v6059_v35  ;;  %3829 = vmatpush.bf16.msrb.mxu1 %v6123_v55  ;;  %v5979_v60 = vor.u32 %v6778_v27, %v5976_v28  ;;  %v6088_v35 = vld [vmem:[%s10388_s13 + $0x298] sm:$0xf0]  ;;  %v6760_v55 = vld [vmem:[%s10388_s13 + $0x124] sm:$0xf]  ;;  %v5971_v16 = vor.u32 %v6776_v37, %v5968_v54  ;;  %v6080_v17 = vld [vmem:[%s10388_s13 + $0x288] sm:$0xf0] }
 0x400   : > { %3786 = vmatpush.bf16.msrb.mxu2 %v5939_v59  ;;  %3800 = vmatpush.bf16.msrb.mxu3 %v6003_v0  ;;  %v3088_v31 = vpack.c.b16 %v3086_v23, %v3084_v63  ;;  %v6091_v0 = vor.u32 %v6806_v32, %v6088_v35  ;;  %v5907_v19 = vor.u32 %v6760_v55, %v5904_v36  ;;  %v6774_v48 = vld [vmem:[%s10388_s13 + $0x194] sm:$0xf]  ;;  %v5960_v52 = vld [vmem:[%s10388_s13 + $0x198] sm:$0xf0]  ;;  %v6756_v21 = vld [vmem:[%s10388_s13 + $0x104] sm:$0xf] }
 0x401   : > { %v5963_v7 = vor.u32 %v6774_v48, %v5960_v52  ;;  %v5888_v42 = vld [vmem:[%s10388_s13 + $0x108] sm:$0xf0]  ;;  %v3988_v45 = vld.sshfl [vmem:[#allocation1] sm:$0xff pattern:$0x75316420]  ;;  %v6946_v10 = vld [vmem:[%s10384_s9 + $0x58] sm:$0xff] }
 0x402   : > { %v5952_v44 = vld [vmem:[%s10388_s13 + $0x188] sm:$0xf0]  ;;  %v5891_v47 = vor.u32 %v6756_v21, %v5888_v42  ;;  %v6945_v5 = vld [vmem:[%s10384_s9 + $0xe0] sm:$0xff]  ;;  %v6949_v63 = vld [vmem:[%s10384_s9 + $0xd0] sm:$0xff] }
 0x403   : > { %3816 = vmatpush.bf16.msrb.mxu0 %v6051_v3  ;;  %3830 = vmatpush.bf16.msrb.mxu1 %v6115_v6  ;;  %v6019_v3 = vor.u32 %v6788_v15, %v6016_v1  ;;  %v6083_v6 = vor.u32 %v6804_v25, %v6080_v17  ;;  %v3989_v46 = vld.sshfl [vmem:[#allocation1 + $0x8] sm:$0xff pattern:$0x75316420]  ;;  %v6952_v24 = vld [vmem:[%s10384_s9 + $0x40] sm:$0xff]  ;;  %v6954_v27 = vld [vmem:[%s10384_s9 + $0x38] sm:$0xff] }
 0x404   : > { %3787 = vmatpush.bf16.msrb.mxu2 %v5931_v4  ;;  %3801 = vmatpush.bf16.msrb.mxu3 %v5995_v43  ;;  %v5899_v4 = vor.u32 %v6758_v26, %v5896_v38  ;;  %v6772_v43 = vld [vmem:[%s10388_s13 + $0x184] sm:$0xf]  ;;  %v6942_v11 = vld [vmem:[%s10384_s9 + $0x68] sm:$0xff]  ;;  %v6955_v28 = vld [vmem:[%s10384_s9 + $0xb8] sm:$0xff] }
 0x405   : > { %v5955_v50 = vor.u32 %v6772_v43, %v5952_v44  ;;  %v6950_v23 = vld [vmem:[%s10384_s9 + $0x48] sm:$0xff]  ;;  %v6953_v41 = vld [vmem:[%s10384_s9 + $0xc0] sm:$0xff]  ;;  %v6964_v32 = vld [vmem:[%s10384_s9 + $0x10] sm:$0xff] }
 0x406   : > { %3765 = vmatmul.bf16.vlgmr.msra.gmra.mxu0 %v9389_v18  ;;  %3779 = vmatmul.bf16.vlgmr.msra.gmra.mxu1 %v9391_v22  ;;  %v6024_v18 = vld [vmem:[%s10388_s13 + $0x218] sm:$0xf0]  ;;  %v3087_v22 = vpack.c.b16 %v3085_v14, %v3083_v13  ;;  %v6948_v14 = vld [vmem:[%s10384_s9 + $0x50] sm:$0xff]  ;;  %v6951_v49 = vld [vmem:[%s10384_s9 + $0xc8] sm:$0xff] }
 0x407   : > { %3817 = vmatpush.bf16.msrb.mxu0 %v6043_v51  ;;  %3831 = vmatpush.bf16.msrb.mxu1 %v6107_v57  ;;  %v6027_v59 = vor.u32 %v6790_v20, %v6024_v18  ;;  %v6938_v51 = vld [vmem:[%s10384_s9 + $0x78] sm:$0xff]  ;;  %v6959_v20 = vld [vmem:[%s10384_s9 + $0xa8] sm:$0xff]  ;;  %v6960_v18 = vld [vmem:[%s10384_s9 + $0x20] sm:$0xff] }
 0x408   : > { %3788 = vmatpush.bf16.msrb.mxu2 %v5923_v58  ;;  %3802 = vmatpush.bf16.msrb.mxu3 %v5987_v61  ;;  %v6939_v57 = vld [vmem:[%s10384_s9 + $0xf8] sm:$0xff]  ;;  %v6940_v58 = vld [vmem:[%s10384_s9 + $0x70] sm:$0xff]  ;;  %v6966_v55 = vld [vmem:[%s10384_s9 + $0x8] sm:$0xff] }
 0x409   : > { %v6941_v61 = vld [vmem:[%s10384_s9 + $0xf0] sm:$0xff]  ;;  %v6947_v13 = vld [vmem:[%s10384_s9 + $0xd8] sm:$0xff]  ;;  %v6967_v36 = vld [vmem:[%s10384_s9 + $0x88] sm:$0xff] }
 0x40a   : > { %3737 = vmatmul.bf16.vlgmr.msra.gmra.mxu2 %v3087_v22  ;;  %3751 = vmatmul.bf16.vlgmr.msra.gmra.mxu3 %v3088_v31  ;;  %v6965_v35 = vld [vmem:[%s10384_s9 + $0x90] sm:$0xff]  ;;  %v6968_v37 = vld [vmem:[%s10384_s9] sm:$0xff] }
 0x40b   : > { %3818 = vmatpush.bf16.msrb.mxu0 %v6035_v29  ;;  %3832 = vmatpush.bf16.msrb.mxu1 %v6099_v33  ;;  %v6956_v29 = vld [vmem:[%s10384_s9 + $0x30] sm:$0xff]  ;;  %v6969_v54 = vld [vmem:[%s10384_s9 + $0x80] sm:$0xff] }
 0x40c   : > { %3789 = vmatpush.bf16.msrb.mxu2 %v5915_v30  ;;  %3803 = vmatpush.bf16.msrb.mxu3 %v5979_v60  ;;  %v6957_v33 = vld [vmem:[%s10384_s9 + $0xb0] sm:$0xff]  ;;  %v6958_v30 = vld [vmem:[%s10384_s9 + $0x28] sm:$0xff]  ;;  %v6963_v60 = vld [vmem:[%s10384_s9 + $0x98] sm:$0xff] }
 0x40f   : > { %3819 = vmatpush.bf16.msrb.mxu0 %v6027_v59  ;;  %3833 = vmatpush.bf16.msrb.mxu1 %v6091_v0  ;;  %v3187_v0 = vld [vmem:[%s10389_s14] sm:$0x3] }
 0x410   : > { %3790 = vmatpush.bf16.msrb.mxu2 %v5907_v19  ;;  %3804 = vmatpush.bf16.msrb.mxu3 %v5971_v16  ;;  %v3189_v1 = vperm.slane %v3187_v0, 0 }
 0x413   : > { %3820 = vmatpush.bf16.msrb.mxu0 %v6019_v3  ;;  %3834 = vmatpush.bf16.msrb.mxu1 %v6083_v6 }
 0x414   : > { %3791 = vmatpush.bf16.msrb.mxu2 %v5899_v4  ;;  %3805 = vmatpush.bf16.msrb.mxu3 %v5963_v7 }
 0x416   : > { %3821 = vmatmul.bf16.vlgmr.msrb.gmra.mxu0 %v3087_v22  ;;  %3835 = vmatmul.bf16.vlgmr.msrb.gmra.mxu1 %v3088_v31  ;;  %v6961_v22 = vld [vmem:[%s10384_s9 + $0xa0] sm:$0xff]  ;;  %v6962_v31 = vld [vmem:[%s10384_s9 + $0x18] sm:$0xff] }
 0x417   : > { %6140 = vmatpush.msk.msra.mxu0 %vm2930_vm15, %v3988_v45  ;;  %6142 = vmatpush.msk.msra.mxu1 %vm2930_vm15, %v3989_v46 }
 0x418   : > { %3792 = vmatpush.bf16.msrb.mxu2 %v5891_v47  ;;  %3806 = vmatpush.bf16.msrb.mxu3 %v5955_v50 }
 0x41b   : > { %3793 = vmatmul.bf16.vlgmr.msrb.gmra.mxu2 %v9350_v40  ;;  %3807 = vmatmul.bf16.vlgmr.msrb.gmra.mxu3 %v9352_v2  ;;  %v6943_v40 = vld [vmem:[%s10384_s9 + $0xe8] sm:$0xff]  ;;  %v6944_v2 = vld [vmem:[%s10384_s9 + $0x60] sm:$0xff] }
 0x41c   : > { %3911 = vmatpush.msra.mxu2 %v6938_v51  ;;  %3931 = vmatpush.msra.mxu3 %v6939_v57 }
 0x41e   : > { %3912 = vmatpush.msra.mxu2 %v6940_v58  ;;  %3932 = vmatpush.msra.mxu3 %v6941_v61  ;;  %v3190_v61 = vperm.slane %v3187_v0, 1 }
 0x420   : > { %3913 = vmatpush.msra.mxu2 %v6942_v11  ;;  %3933 = vmatpush.msra.mxu3 %v6943_v40 }
 0x422   : > { %3914 = vmatpush.msra.mxu2 %v6944_v2  ;;  %3934 = vmatpush.msra.mxu3 %v6945_v5 }
 0x424   : > { %3915 = vmatpush.msra.mxu2 %v6946_v10  ;;  %3935 = vmatpush.msra.mxu3 %v6947_v13 }
 0x426   : > { %3916 = vmatpush.msra.mxu2 %v6948_v14  ;;  %3936 = vmatpush.msra.mxu3 %v6949_v63 }
 0x428   : > { %3917 = vmatpush.msra.mxu2 %v6950_v23  ;;  %3937 = vmatpush.msra.mxu3 %v6951_v49 }
 0x42a   : > { %3918 = vmatpush.msra.mxu2 %v6952_v24  ;;  %3938 = vmatpush.msra.mxu3 %v6953_v41 }
 0x42c   : > { %3919 = vmatpush.msra.mxu2 %v6954_v27  ;;  %3939 = vmatpush.msra.mxu3 %v6955_v28 }
 0x42e   : > { %3920 = vmatpush.msra.mxu2 %v6956_v29  ;;  %3940 = vmatpush.msra.mxu3 %v6957_v33 }
 0x430   : > { %3921 = vmatpush.msra.mxu2 %v6958_v30  ;;  %3941 = vmatpush.msra.mxu3 %v6959_v20 }
 0x432   : > { %3922 = vmatpush.msra.mxu2 %v6960_v18  ;;  %3942 = vmatpush.msra.mxu3 %v6961_v22 }
 0x434   : > { %3923 = vmatpush.msra.mxu2 %v6962_v31  ;;  %3943 = vmatpush.msra.mxu3 %v6963_v60 }
 0x436   : > { %3924 = vmatpush.msra.mxu2 %v6964_v32  ;;  %3944 = vmatpush.msra.mxu3 %v6965_v35 }
 0x438   : > { %3925 = vmatpush.msra.mxu2 %v6966_v55  ;;  %3945 = vmatpush.msra.mxu3 %v6967_v36 }
 0x43a   : > { %3926 = vmatpush.msra.mxu2 %v6968_v37  ;;  %3946 = vmatpush.msra.mxu3 %v6969_v54 }
 0x473   : > { %v3710_v59 = vpop.f32.mrf.mxu0  ;;  %v3724_v15 = vpop.f32.mrf.mxu1 }
 0x47b   : > { %v3712_v17 = vpop.f32.mrf.mxu0  ;;  %v3726_v26 = vpop.f32.mrf.mxu1 }
 0x47d   : > { %v3682_v19 = vpop.f32.mrf.mxu2  ;;  %v3696_v16 = vpop.f32.mrf.mxu3 }
 0x47e   : > { %v3683_v25 = vadd.f32 %v3682_v19, %v3189_v1 }
 0x480   : > { %v3697_v38 = vadd.f32 %v3696_v16, %v3683_v25 }
 0x482   : > { %v3711_v3 = vadd.f32 %v3710_v59, %v3697_v38 }
 0x483   : > { %v3766_v4 = vpop.f32.mrf.mxu0  ;;  %v3780_v44 = vpop.f32.mrf.mxu1 }
 0x484   : > { %v3725_v21 = vadd.f32 %v3724_v15, %v3711_v3  ;;  %v3767_v23 = vadd.f32 %v3766_v4, %v3190_v61 }
 0x485   : > { %v3684_v48 = vpop.f32.mrf.mxu2  ;;  %v3698_v52 = vpop.f32.mrf.mxu3 }
 0x486   : > { %v3685_v6 = vadd.f32 %v3684_v48, %v3189_v1  ;;  %v3781_v33 = vadd.f32 %v3780_v44, %v3767_v23 }
 0x488   : > { %v3699_v7 = vadd.f32 %v3698_v52, %v3685_v6 }
 0x48a   : > { %v3713_v46 = vadd.f32 %v3712_v17, %v3699_v7 }
 0x48b   : > { %v3768_v2 = vpop.f32.mrf.mxu0  ;;  %v3782_v14 = vpop.f32.mrf.mxu1 }
 0x48c   : > { %v3727_v58 = vadd.f32 %v3726_v26, %v3713_v46  ;;  %v3769_v37 = vadd.f32 %v3768_v2, %v3190_v61 }
 0x48d   : > { %v3738_v42 = vpop.f32.mrf.mxu2  ;;  %v3752_v43 = vpop.f32.mrf.mxu3 }
 0x48e   : > { %v3739_v45 = vadd.f32 %v3738_v42, %v3725_v21  ;;  %v3783_v26 = vadd.f32 %v3782_v14, %v3769_v37 }
 0x490   : > { %v9662_v47 = vadd.f32 %v3752_v43, %v3739_v45 }
 0x492   : > { %v3841_v50 = vrot.slane %v9662_v47, 4  ;;  %v3865_v51 = vmul.f32 %v9662_v47, %v9662_v47 }
 0x493   : > { %v3822_v35 = vpop.f32.mrf.mxu0  ;;  %v3836_v59 = vpop.f32.mrf.mxu1 }
 0x494   : > { %v3869_v57 = vrot.slane %v3865_v51, 4  ;;  %v3842_v5 = vadd.f32 %v3841_v50, %v9662_v47 }
 0x495   : > { %v3740_v11 = vpop.f32.mrf.mxu2  ;;  %v3754_v40 = vpop.f32.mrf.mxu3 }
 0x496   : > { %v3870_v10 = vadd.f32 %v3869_v57, %v3865_v51  ;;  %v3741_v13 = vadd.f32 %v3740_v11, %v3727_v58  ;;  %v3843_v49 = vrot.slane %v3842_v5, 2 }
 0x498   : > { %v9668_v63 = vadd.f32 %v3754_v40, %v3741_v13  ;;  %v3871_v24 = vrot.slane %v3870_v10, 2  ;;  %v3844_v30 = vadd.f32 %v3843_v49, %v3842_v5 }
 0x49a   : > { %v3853_v41 = vrot.slane %v9668_v63, 4  ;;  %v3867_v27 = vmul.f32 %v9668_v63, %v9668_v63  ;;  %v3872_v60 = vadd.f32 %v3871_v24, %v3870_v10  ;;  %v3845_v0 = vrot.slane %v3844_v30, 1 }
 0x49b   : > { %v3824_v51 = vpop.f32.mrf.mxu0  ;;  %v3838_v11 = vpop.f32.mrf.mxu1 }
 0x49c   : > { %v3854_v28 = vadd.f32 %v3853_v41, %v9668_v63  ;;  %v3881_v29 = vrot.slane %v3867_v27, 4  ;;  %v3873_v1 = vrot.slane %v3872_v60, 1  ;;  %v3846_v52 = vadd.f32 %v3845_v0, %v3844_v30 }
 0x49e   : > { %v3855_v20 = vrot.slane %v3854_v28, 2  ;;  %v3882_v18 = vadd.f32 %v3881_v29, %v3867_v27  ;;  %v3794_v22 = vpop.f32.mrf.mxu2  ;;  %v3808_v31 = vpop.f32.mrf.mxu3  ;;  %v3874_v3 = vadd.f32 %v3873_v1, %v3872_v60 }
 0x49f   : > { %v3795_v32 = vadd.f32 %v3794_v22, %v3781_v33 }
 0x4a0   : > { %v3856_v55 = vadd.f32 %v3855_v20, %v3854_v28  ;;  %v3883_v36 = vrot.slane %v3882_v18, 2 }
 0x4a1   : > { %v3809_v54 = vadd.f32 %v3808_v31, %v3795_v32 }
 0x4a2   : > { %v3857_v15 = vrot.slane %v3856_v55, 1  ;;  %v3884_v19 = vadd.f32 %v3883_v36, %v3882_v18 }
 0x4a3   : > { %v3823_v16 = vadd.f32 %v3822_v35, %v3809_v54 }
 0x4a4   : > { %v3858_v25 = vadd.f32 %v3857_v15, %v3856_v55  ;;  %v3885_v17 = vrot.slane %v3884_v19, 1 }
 0x4a5   : > { %v9674_v38 = vadd.f32 %v3836_v59, %v3823_v16 }
 0x4a6   : > { %v3796_v48 = vpop.f32.mrf.mxu2  ;;  %v3886_v6 = vadd.f32 %v3885_v17, %v3884_v19  ;;  %v3810_v42 = vpop.f32.mrf.mxu3  ;;  %v3897_v43 = vsel %vm708_vm0, %v3858_v25, %v3846_v52  ;;  %v6330_v17 = vld [vmem:[%s10390_s15 + $0x170] sm:$0xf] }
 0x4a7   : > { %v3847_v4 = vrot.slane %v9674_v38, 4  ;;  %v3866_v7 = vmul.f32 %v9674_v38, %v9674_v38  ;;  %v3797_v21 = vadd.f32 %v3796_v48, %v3783_v26  ;;  %v6867_v26 = vld [vmem:[%s10390_s15 + $0x174] sm:$0xf0]  ;;  %v6394_v48 = vld [vmem:[%s10390_s15 + $0x1f0] sm:$0xf] }
 0x4a8   : > { %v3905_v44 = vsel %vm725_vm1, %v3886_v6, %v3874_v3  ;;  %v6331_v3 = vor.u32 %v6867_v26, %v6330_v17  ;;  %v6883_v6 = vld [vmem:[%s10390_s15 + $0x1f4] sm:$0xf0]  ;;  %v6362_v26 = vld [vmem:[%s10390_s15 + $0x1b0] sm:$0xf] }
 0x4a9   : > { %v3875_v45 = vrot.slane %v3866_v7, 4  ;;  %v3811_v46 = vadd.f32 %v3810_v42, %v3797_v21  ;;  %v3909_v50 = vsel %vm734_vm2, %v3897_v43, %v3905_v44  ;;  %v3848_v57 = vadd.f32 %v3847_v4, %v9674_v38  ;;  %v6202_v4 = vld [vmem:[%s10390_s15 + $0x70] sm:$0xf]  ;;  %v6835_v21 = vld [vmem:[%s10390_s15 + $0x74] sm:$0xf0] }
 0x4aa   : > { %3927 = vmatmul.f32.vlgmr.msra.gmra.mxu2 %v3909_v50  ;;  %v6266_v42 = vld [vmem:[%s10390_s15 + $0xf0] sm:$0xf]  ;;  %v6851_v43 = vld [vmem:[%s10390_s15 + $0xf4] sm:$0xf0]  ;;  %v6203_v44 = vor.u32 %v6835_v21, %v6202_v4  ;;  %v6865_v50 = vld [vmem:[%s10390_s15 + $0x164] sm:$0xf0] }
 0x4ab   : > { %v3825_v58 = vadd.f32 %v3824_v51, %v3811_v46  ;;  %v3876_v61 = vadd.f32 %v3875_v45, %v3866_v7  ;;  %v3849_v10 = vrot.slane %v3848_v57, 2  ;;  %v6395_v7 = vor.u32 %v6883_v6, %v6394_v48  ;;  %4763 = vmatpush.bf16.msrb.mxu2 %v6331_v3  ;;  %v6322_v46 = vld [vmem:[%s10390_s15 + $0x160] sm:$0xf]  ;;  %v6859_v17 = vld [vmem:[%s10390_s15 + $0x134] sm:$0xf0] }
 0x4ac   : > { %v6267_v45 = vor.u32 %v6851_v43, %v6266_v42  ;;  %v6386_v51 = vld [vmem:[%s10390_s15 + $0x1e0] sm:$0xf]  ;;  %4735 = vmatpush.bf16.msrb.mxu0 %v6203_v44  ;;  %v6875_v6 = vld [vmem:[%s10390_s15 + $0x1b4] sm:$0xf0]  ;;  %v6170_v4 = vld [vmem:[%s10390_s15 + $0x30] sm:$0xf] }
 0x4ad   : > { %v9683_v40 = vadd.f32 %v3838_v11, %v3825_v58  ;;  %v3877_v13 = vrot.slane %v3876_v61, 2  ;;  %v3850_v49 = vadd.f32 %v3849_v10, %v3848_v57  ;;  %4777 = vmatpush.bf16.msrb.mxu3 %v6395_v7  ;;  %v6323_v57 = vor.u32 %v6865_v50, %v6322_v46  ;;  %v6881_v58 = vld [vmem:[%s10390_s15 + $0x1e4] sm:$0xf0]  ;;  %v6258_v10 = vld [vmem:[%s10390_s15 + $0xe0] sm:$0xf] }
 0x4ae   : > { %v6833_v11 = vld [vmem:[%s10390_s15 + $0x64] sm:$0xf0]  ;;  %4749 = vmatpush.bf16.msrb.mxu1 %v6267_v45  ;;  %v6827_v7 = vld [vmem:[%s10390_s15 + $0x34] sm:$0xf0]  ;;  %v6234_v42 = vld [vmem:[%s10390_s15 + $0xb0] sm:$0xf]  ;;  %v6363_v50 = vor.u32 %v6875_v6, %v6362_v26 }
 0x4af   : > { %v3859_v2 = vrot.slane %v9683_v40, 4  ;;  %v3868_v5 = vmul.f32 %v9683_v40, %v9683_v40  ;;  %v3878_v41 = vadd.f32 %v3877_v13, %v3876_v61  ;;  %v3851_v33 = vrot.slane %v3850_v49, 1  ;;  %v6194_v61 = vld [vmem:[%s10390_s15 + $0x60] sm:$0xf]  ;;  %v6849_v13 = vld [vmem:[%s10390_s15 + $0xe4] sm:$0xf0]  ;;  %4764 = vmatpush.bf16.msrb.mxu2 %v6323_v57 }
 0x4b0   : > { %v6843_v43 = vld [vmem:[%s10390_s15 + $0xb4] sm:$0xf0]  ;;  %v6928_v44 = vld [vmem:[%s10380_s5] ss:$0 sm:$0xff]  ;;  %v6857_v57 = vld [vmem:[%s10390_s15 + $0x124] sm:$0xf0] }
 0x4b1   : > { %v3860_v14 = vadd.f32 %v3859_v2, %v9683_v40  ;;  %v3887_v23 = vrot.slane %v3868_v5, 4  ;;  %v3879_v20 = vrot.slane %v3878_v41, 1  ;;  %v3852_v60 = vadd.f32 %v3851_v33, %v3850_v49  ;;  %v6863_v49 = vld [vmem:[%s10390_s15 + $0x154] sm:$0xf0]  ;;  %v6250_v33 = vld [vmem:[%s10390_s15 + $0xd0] sm:$0xf] }
 0x4b2   : > { %v6387_v2 = vor.u32 %v6881_v58, %v6386_v51  ;;  %v6290_v51 = vld [vmem:[%s10390_s15 + $0x120] sm:$0xf]  ;;  %v6171_v58 = vor.u32 %v6827_v7, %v6170_v4  ;;  %v6268_v26 = vld [vmem:[%s10390_s15 + $0xf8] sm:$0xf0]  ;;  %v6821_v4 = vld [vmem:[%s10390_s15 + $0x4] sm:$0xf0] }
 0x4b3   : > { %v3861_v24 = vrot.slane %v3860_v14, 2  ;;  %v3888_v27 = vadd.f32 %v3887_v23, %v3868_v5  ;;  %v3880_v32 = vadd.f32 %v3879_v20, %v3878_v41  ;;  %v6195_v5 = vor.u32 %v6833_v11, %v6194_v61  ;;  %v6879_v41 = vld [vmem:[%s10390_s15 + $0x1d4] sm:$0xf0]  ;;  %v6354_v11 = vld [vmem:[%s10390_s15 + $0x1a0] sm:$0xf] }
 0x4b4   : > { %v6259_v23 = vor.u32 %v6849_v13, %v6258_v10  ;;  %4778 = vmatpush.bf16.msrb.mxu3 %v6387_v2  ;;  %v6847_v20 = vld [vmem:[%s10390_s15 + $0xd4] sm:$0xf0]  ;;  %v6235_v61 = vor.u32 %v6843_v43, %v6234_v42  ;;  %v6873_v2 = vld [vmem:[%s10390_s15 + $0x1a4] sm:$0xf0]  ;;  %v6146_v6 = vld [vmem:[%s10390_s15] sm:$0xf] }
 0x4b5   : > { %v3862_v28 = vadd.f32 %v3861_v24, %v3860_v14  ;;  %v3889_v29 = vrot.slane %v3888_v27, 2  ;;  %v6314_v14 = vld [vmem:[%s10390_s15 + $0x150] sm:$0xf]  ;;  %4736 = vmatpush.bf16.msrb.mxu0 %v6195_v5  ;;  %v6162_v5 = vld [vmem:[%s10390_s15 + $0x20] sm:$0xf] }
 0x4b6   : > { %v6378_v24 = vld [vmem:[%s10390_s15 + $0x1d0] sm:$0xf]  ;;  %4750 = vmatpush.bf16.msrb.mxu1 %v6259_v23  ;;  %v6825_v13 = vld [vmem:[%s10390_s15 + $0x24] sm:$0xf0]  ;;  %v6210_v7 = vld [vmem:[%s10390_s15 + $0x80] sm:$0xf] }
 0x4b7   : > { %v3863_v30 = vrot.slane %v3862_v28, 1  ;;  %v3890_v18 = vadd.f32 %v3889_v29, %v3888_v27  ;;  %v6315_v27 = vor.u32 %v6863_v49, %v6314_v14  ;;  %v6831_v29 = vld [vmem:[%s10390_s15 + $0x54] sm:$0xf0]  ;;  %v6226_v14 = vld [vmem:[%s10390_s15 + $0xa0] sm:$0xf]  ;;  %v6291_v49 = vor.u32 %v6857_v57, %v6290_v51 }
 0x4b8   : > { %v6841_v23 = vld [vmem:[%s10390_s15 + $0xa4] sm:$0xf0]  ;;  %v6458_v42 = vld [vmem:[%s10390_s15 + $0x270] sm:$0xf]  ;;  %v6899_v43 = vld [vmem:[%s10390_s15 + $0x274] sm:$0xf0] }
 0x4b9   : > { %v3864_v22 = vadd.f32 %v3863_v30, %v3862_v28  ;;  %v3891_v31 = vrot.slane %v3890_v18, 1  ;;  %v6186_v28 = vld [vmem:[%s10390_s15 + $0x50] sm:$0xf]  ;;  %v6379_v30 = vor.u32 %v6879_v41, %v6378_v24  ;;  %4765 = vmatpush.bf16.msrb.mxu2 %v6315_v27  ;;  %v6355_v41 = vor.u32 %v6873_v2, %v6354_v11  ;;  %v6855_v27 = vld [vmem:[%s10390_s15 + $0x114] sm:$0xf0] }
 0x4ba   : > { %v6915_v51 = vld [vmem:[%s10390_s15 + $0x2f4] sm:$0xf0]  ;;  %v6196_v11 = vld [vmem:[%s10390_s15 + $0x68] sm:$0xf0] }
 0x4bb   : > { %v3892_v35 = vadd.f32 %v3891_v31, %v3890_v18  ;;  %v3898_v55 = vsel %vm708_vm0, %v3864_v22, %v3852_v60  ;;  %v6306_v18 = vld [vmem:[%s10390_s15 + $0x140] sm:$0xf]  ;;  %v6861_v22 = vld [vmem:[%s10390_s15 + $0x144] sm:$0xf0]  ;;  %v6187_v60 = vor.u32 %v6831_v29, %v6186_v28  ;;  %4779 = vmatpush.bf16.msrb.mxu3 %v6379_v30  ;;  %v6163_v29 = vor.u32 %v6825_v13, %v6162_v5  ;;  %v6346_v30 = vld [vmem:[%s10390_s15 + $0x190] sm:$0xf] }
 0x4bc   : > { %v6848_v13 = vld [vmem:[%s10390_s15 + $0xe4] sm:$0xf] }
 0x4bd   : > { %v3906_v36 = vsel %vm725_vm1, %v3892_v35, %v3880_v32  ;;  %v6251_v32 = vor.u32 %v6847_v20, %v6250_v33  ;;  %v6370_v35 = vld [vmem:[%s10390_s15 + $0x1c0] sm:$0xf]  ;;  %4737 = vmatpush.bf16.msrb.mxu0 %v6187_v60  ;;  %v6227_v33 = vor.u32 %v6841_v23, %v6226_v14  ;;  %v6871_v20 = vld [vmem:[%s10390_s15 + $0x194] sm:$0xf0]  ;;  %v6260_v14 = vld [vmem:[%s10390_s15 + $0xe8] sm:$0xf0] }
 0x4be   : > { %v3910_v37 = vsel %vm734_vm2, %v3898_v55, %v3906_v36  ;;  %v6877_v55 = vld [vmem:[%s10390_s15 + $0x1c4] sm:$0xf0]  ;;  %v6178_v36 = vld [vmem:[%s10390_s15 + $0x40] sm:$0xf]  ;;  %v6839_v60 = vld [vmem:[%s10390_s15 + $0x94] sm:$0xf0] }
 0x4bf   : > { %3947 = vmatmul.f32.vlgmr.msra.gmra.mxu3 %v3910_v37  ;;  %4751 = vmatpush.bf16.msrb.mxu1 %v6251_v32 }
 0x52d   : > { %v3928_v54 = vpop.f32.mrf.mxu2 }
 0x542   : > { %v3948_v59 = vpop.f32.mrf.mxu3 }
 0x543   : > { %v3949_v0 = vadd.f32 %v3948_v59, %v3928_v54  ;;  %v6829_v54 = vld [vmem:[%s10390_s15 + $0x44] sm:$0xf0]  ;;  %v6242_v59 = vld [vmem:[%s10390_s15 + $0xc0] sm:$0xf] }
 0x544   : > { %v6179_v48 = vor.u32 %v6829_v54, %v6178_v36  ;;  %v6347_v36 = vor.u32 %v6871_v20, %v6346_v30  ;;  %v6853_v54 = vld [vmem:[%s10390_s15 + $0x104] sm:$0xf0]  ;;  %v6188_v30 = vld [vmem:[%s10390_s15 + $0x58] sm:$0xf0] }
 0x545   : > { %v9692_v15 = vmul.f32 0.001953125, %v3949_v0  ;;  %v6845_v0 = vld [vmem:[%s10390_s15 + $0xc4] sm:$0xf0] }
 0x546   : > { %v6243_v3 = vor.u32 %v6845_v0, %v6242_v59  ;;  %4738 = vmatpush.bf16.msrb.mxu0 %v6179_v48 }
 0x547   : > { %v3952_v1 = vmul.f32 %v9692_v15, %v9692_v15 }
 0x548   : > { %4752 = vmatpush.bf16.msrb.mxu1 %v6243_v3 }
 0x549   : > { %v3954_v19 = vrot.slane %v3952_v1, 6  ;;  %v6307_v1 = vor.u32 %v6861_v22, %v6306_v18  ;;  %v6154_v18 = vld [vmem:[%s10390_s15 + $0x10] sm:$0xf]  ;;  %v6823_v22 = vld [vmem:[%s10390_s15 + $0x14] sm:$0xf0] }
 0x54a   : > { %4739 = vmatpush.bf16.msrb.mxu0 %v6171_v58  ;;  %v6155_v0 = vor.u32 %v6823_v22, %v6154_v18  ;;  %v6147_v58 = vor.u32 %v6821_v4, %v6146_v6  ;;  %v6846_v22 = vld [vmem:[%s10390_s15 + $0xd4] sm:$0xf]  ;;  %v6172_v4 = vld [vmem:[%s10390_s15 + $0x38] sm:$0xf0] }
 0x54b   : > { %v3956_v16 = vsub.f32 %v9692_v15, %v3954_v19  ;;  %4766 = vmatpush.bf16.msrb.mxu2 %v6307_v1 }
 0x54c   : > { %4753 = vmatpush.bf16.msrb.mxu1 %v6235_v61  ;;  %v6832_v61 = vld [vmem:[%s10390_s15 + $0x64] sm:$0xf] }
 0x54d   : > { %v3957_v25 = vmax.f32 %v3956_v16, 0.0  ;;  %v6371_v16 = vor.u32 %v6877_v55, %v6370_v35  ;;  %v6929_v35 = vld [vmem:[%s10381_s6] ss:$0 sm:$0xff] }
 0x54e   : > { %4740 = vmatpush.bf16.msrb.mxu0 %v6163_v29  ;;  %v6913_v29 = vld [vmem:[%s10390_s15 + $0x2e4] sm:$0xf0] }
 0x54f   : > { %v9706_v52 = vadd.f32 1e-05, %v3957_v25  ;;  %v6298_v25 = vld [vmem:[%s10390_s15 + $0x130] sm:$0xf]  ;;  %4780 = vmatpush.bf16.msrb.mxu3 %v6371_v16  ;;  %v6869_v16 = vld [vmem:[%s10390_s15 + $0x184] sm:$0xf0] }
 0x550   : > { %v6299_v45 = vor.u32 %v6859_v17, %v6298_v25  ;;  %4754 = vmatpush.bf16.msrb.mxu1 %v6227_v33  ;;  %v6834_v25 = vld [vmem:[%s10390_s15 + $0x74] sm:$0xf] }
 0x551   : > { %6934 = vrsqrt.f32 %v9706_v52  ;;  %vm3966_vm8 = vweird.f32 %v9706_v52  ;;  %v6850_v17 = vld [vmem:[%s10390_s15 + $0xf4] sm:$0xf] }
 0x552   : > { %4767 = vmatpush.bf16.msrb.mxu2 %v6299_v45  ;;  %4741 = vmatpush.bf16.msrb.mxu0 %v6155_v0  ;;  %v6271_v57 = vor.u32 %v6850_v17, %v6268_v26  ;;  %v6830_v33 = vld [vmem:[%s10390_s15 + $0x54] sm:$0xf]  ;;  %v6180_v0 = vld [vmem:[%s10390_s15 + $0x48] sm:$0xf0]  ;;  %v6498_v26 = vld [vmem:[%s10390_s15 + $0x2c0] sm:$0xf] }
 0x553   : > { %4781 = vmatpush.bf16.msrb.mxu3 %v6363_v50  ;;  %v6522_v50 = vld [vmem:[%s10390_s15 + $0x2f0] sm:$0xf]  ;;  %v6191_v18 = vor.u32 %v6830_v33, %v6188_v30  ;;  %v6838_v33 = vld [vmem:[%s10390_s15 + $0x94] sm:$0xf]  ;;  %v6220_v30 = vld [vmem:[%s10390_s15 + $0x98] sm:$0xf0] }
 0x554   : > { %v6523_v23 = vor.u32 %v6915_v51, %v6522_v50  ;;  %v6907_v51 = vld [vmem:[%s10390_s15 + $0x2b4] sm:$0xf0] }
 0x556   : > { %4768 = vmatpush.bf16.msrb.mxu2 %v6291_v49  ;;  %v6199_v49 = vor.u32 %v6832_v61, %v6196_v11  ;;  %4742 = vmatpush.bf16.msrb.mxu0 %v6147_v58  ;;  %v6164_v58 = vld [vmem:[%s10390_s15 + $0x28] sm:$0xf0]  ;;  %v6840_v61 = vld [vmem:[%s10390_s15 + $0xa4] sm:$0xf] }
 0x557   : > { %v6935_v31 = vpop.eup %6934  ;;  %4782 = vmatpush.bf16.msrb.mxu3 %v6355_v41  ;;  %v6450_v41 = vld [vmem:[%s10390_s15 + $0x260] sm:$0xf]  ;;  %v6228_v11 = vld [vmem:[%s10390_s15 + $0xa8] sm:$0xf0] }
 0x558   : > { %v3961_v37 = vmul.f32 %v6935_v31, %v9706_v52  ;;  %vm3967_vm1 = vweird.f32 %v6935_v31  ;;  %v6282_v52 = vld [vmem:[%s10390_s15 + $0x110] sm:$0xf] }
 0x559   : > { %vm3968_vm9 = vmor %vm3966_vm8, %vm3967_vm1  ;;  %v6283_v55 = vor.u32 %v6855_v27, %v6282_v52  ;;  %v6897_v52 = vld [vmem:[%s10390_s15 + $0x264] sm:$0xf0]  ;;  %v6514_v27 = vld [vmem:[%s10390_s15 + $0x2e0] sm:$0xf] }
 0x55a   : > { %v3962_v19 = vmul.f32 %v6935_v31, %v3961_v37  ;;  %v6274_v37 = vld [vmem:[%s10390_s15 + $0x100] sm:$0xf]  ;;  %v6515_v20 = vor.u32 %v6913_v29, %v6514_v27  ;;  %v6822_v27 = vld [vmem:[%s10390_s15 + $0x14] sm:$0xf] }
 0x55b   : > { %4769 = vmatpush.bf16.msrb.mxu2 %v6283_v55  ;;  %v6275_v3 = vor.u32 %v6853_v54, %v6274_v37  ;;  %4783 = vmatpush.bf16.msrb.mxu3 %v6347_v36  ;;  %v6506_v55 = vld [vmem:[%s10390_s15 + $0x2d0] sm:$0xf]  ;;  %v6911_v36 = vld [vmem:[%s10390_s15 + $0x2d4] sm:$0xf0] }
 0x55c   : > { %v3963_v21 = vmul.f32 0.5, %v3962_v19  ;;  %v6338_v19 = vld [vmem:[%s10390_s15 + $0x180] sm:$0xf]  ;;  %v6507_v54 = vor.u32 %v6911_v36, %v6506_v55  ;;  %v6474_v55 = vld [vmem:[%s10390_s15 + $0x290] sm:$0xf] }
 0x55d   : > { %v6339_v45 = vor.u32 %v6869_v16, %v6338_v19  ;;  %v6244_v16 = vld [vmem:[%s10390_s15 + $0xc8] sm:$0xf0]  ;;  %v6903_v36 = vld [vmem:[%s10390_s15 + $0x294] sm:$0xf0] }
 0x55e   : > { %v3964_v46 = vsub.f32 1.5, %v3963_v21  ;;  %v6837_v21 = vld [vmem:[%s10390_s15 + $0x84] sm:$0xf0] }
 0x55f   : > { %4770 = vmatpush.bf16.msrb.mxu2 %v6275_v3  ;;  %v6211_v5 = vor.u32 %v6837_v21, %v6210_v7  ;;  %4784 = vmatpush.bf16.msrb.mxu3 %v6339_v45  ;;  %v6826_v3 = vld [vmem:[%s10390_s15 + $0x34] sm:$0xf]  ;;  %v6236_v21 = vld [vmem:[%s10390_s15 + $0xb8] sm:$0xf0]  ;;  %v6891_v45 = vld [vmem:[%s10390_s15 + $0x234] sm:$0xf0] }
 0x560   : > { %v3965_v10 = vmul.f32 %v6935_v31, %v3964_v46  ;;  %v6842_v7 = vld [vmem:[%s10390_s15 + $0xb4] sm:$0xf] }
 0x561   : > { %v6239_v50 = vor.u32 %v6842_v7, %v6236_v21 }
 0x562   : > { %v3969_v24 = vsel %vm3968_vm9, %v6935_v31, %v3965_v10  ;;  %v6218_v31 = vld [vmem:[%s10390_s15 + $0x90] sm:$0xf]  ;;  %v6459_v10 = vor.u32 %v6899_v43, %v6458_v42  ;;  %v6175_v43 = vor.u32 %v6826_v3, %v6172_v4  ;;  %v6885_v3 = vld [vmem:[%s10390_s15 + $0x204] sm:$0xf0] }
 0x563   : > { %v3973_v28 = vmul.f32 %v6928_v44, %v3969_v24  ;;  %v6219_v1 = vor.u32 %v6839_v60, %v6218_v31  ;;  %4833 = vmatpush.bf16.msra.mxu3 %v6271_v57  ;;  %v6263_v24 = vor.u32 %v6848_v13, %v6260_v14  ;;  %v6252_v31 = vld [vmem:[%s10390_s15 + $0xd8] sm:$0xf0]  ;;  %v6442_v60 = vld [vmem:[%s10390_s15 + $0x250] sm:$0xf]  ;;  %v6824_v57 = vld [vmem:[%s10390_s15 + $0x24] sm:$0xf] }
 0x564   : > { %v6167_v13 = vor.u32 %v6824_v57, %v6164_v58  ;;  %v6889_v14 = vld [vmem:[%s10390_s15 + $0x224] sm:$0xf0] }
 0x565   : > { %v3976_v32 = vrot.slane %v3973_v28, 2  ;;  %4755 = vmatpush.bf16.msrb.mxu1 %v6219_v1  ;;  %v6451_v28 = vor.u32 %v6897_v52, %v6450_v41  ;;  %v6844_v1 = vld [vmem:[%s10390_s15 + $0xc4] sm:$0xf]  ;;  %v6231_v52 = vor.u32 %v6840_v61, %v6228_v11 }
 0x566   : > { %v6247_v17 = vor.u32 %v6844_v1, %v6244_v16  ;;  %v6836_v16 = vld [vmem:[%s10390_s15 + $0x84] sm:$0xf] }
 0x567   : > { %v3978_v59 = vmul.f32 %v3976_v32, %v9692_v15  ;;  %v6204_v15 = vld [vmem:[%s10390_s15 + $0x78] sm:$0xf0]  ;;  %4834 = vmatpush.bf16.msra.mxu3 %v6263_v24 }
 0x568   : > { %v6207_v46 = vor.u32 %v6834_v25, %v6204_v15  ;;  %v6434_v25 = vld [vmem:[%s10390_s15 + $0x240] sm:$0xf]  ;;  %v6893_v15 = vld [vmem:[%s10390_s15 + $0x244] sm:$0xf0] }
 0x569   : > { %v3982_v48 = vsub.f32 %v6929_v35, %v3978_v59  ;;  %4756 = vmatpush.bf16.msrb.mxu1 %v6211_v5  ;;  %v6895_v35 = vld [vmem:[%s10390_s15 + $0x254] sm:$0xf0]  ;;  %v6828_v59 = vld [vmem:[%s10390_s15 + $0x44] sm:$0xf]  ;;  %v6435_v6 = vor.u32 %v6893_v15, %v6434_v25  ;;  %v6418_v5 = vld [vmem:[%s10390_s15 + $0x220] sm:$0xf] }
 0x56a   : > { %4819 = vmatpush.bf16.msra.mxu2 %v6207_v46  ;;  %v6443_v37 = vor.u32 %v6895_v35, %v6442_v60  ;;  %v6183_v19 = vor.u32 %v6828_v59, %v6180_v0  ;;  %v6490_v46 = vld [vmem:[%s10390_s15 + $0x2b0] sm:$0xf]  ;;  %v6887_v35 = vld [vmem:[%s10390_s15 + $0x214] sm:$0xf0]  ;;  %v6820_v59 = vld [vmem:[%s10390_s15 + $0x4] sm:$0xf] }
 0x56b   : > { %v3984_v44 = vrot.slane %v3982_v48, 6  ;;  %v6909_v48 = vld [vmem:[%s10390_s15 + $0x2c4] sm:$0xf0]  ;;  %v6148_v0 = vld [vmem:[%s10390_s15 + $0x8] sm:$0xf0] }
 0x56c   : > { %v6499_v42 = vor.u32 %v6909_v48, %v6498_v26  ;;  %v6212_v25 = vld [vmem:[%s10390_s15 + $0x88] sm:$0xf0]  ;;  %v6402_v48 = vld [vmem:[%s10390_s15 + $0x200] sm:$0xf]  ;;  %v6151_v4 = vor.u32 %v6820_v59, %v6148_v0 }
 0x56d   : > { %v3986_v2 = vsel %vm734_vm2, %v3976_v32, %v3984_v44  ;;  %v6255_v32 = vor.u32 %v6846_v22, %v6252_v31  ;;  %v6426_v44 = vld [vmem:[%s10390_s15 + $0x230] sm:$0xf]  ;;  %v6403_v57 = vor.u32 %v6885_v3, %v6402_v48 }
 0x56e   : > { %6141 = vmatmul.msk.f32.vlgmr.msra.gmra.mxu0 %vm2926_vm6, %v3986_v2  ;;  %6143 = vmatmul.msk.f32.vlgmr.msra.gmra.mxu1 %vm2926_vm6, %v3986_v2  ;;  %v6427_v2 = vor.u32 %v6891_v45, %v6426_v44  ;;  %v6410_v22 = vld [vmem:[%s10390_s15 + $0x210] sm:$0xf]  ;;  %v6901_v44 = vld [vmem:[%s10390_s15 + $0x284] sm:$0xf0] }
 0x56f   : > { %4791 = vmatpush.bf16.msra.mxu0 %v6459_v10  ;;  %4805 = vmatpush.bf16.msra.mxu1 %v6523_v23  ;;  %v6491_v10 = vor.u32 %v6907_v51, %v6490_v46  ;;  %v6482_v23 = vld [vmem:[%s10390_s15 + $0x2a0] sm:$0xf]  ;;  %v6411_v26 = vor.u32 %v6887_v35, %v6410_v22 }
 0x570   : > { %4820 = vmatpush.bf16.msra.mxu2 %v6199_v49  ;;  %4835 = vmatpush.bf16.msra.mxu3 %v6255_v32  ;;  %v6905_v49 = vld [vmem:[%s10390_s15 + $0x2a4] sm:$0xf0] }
 0x573   : > { %4792 = vmatpush.bf16.msra.mxu0 %v6451_v28  ;;  %4806 = vmatpush.bf16.msra.mxu1 %v6515_v20  ;;  %v6156_v28 = vld [vmem:[%s10390_s15 + $0x18] sm:$0xf0]  ;;  %v6419_v20 = vor.u32 %v6889_v14, %v6418_v5 }
 0x574   : > { %4821 = vmatpush.bf16.msra.mxu2 %v6191_v18  ;;  %4836 = vmatpush.bf16.msra.mxu3 %v6247_v17  ;;  %v6483_v18 = vor.u32 %v6905_v49, %v6482_v23  ;;  %v6159_v32 = vor.u32 %v6822_v27, %v6156_v28  ;;  %v6898_v49 = vld [vmem:[%s10390_s15 + $0x274] sm:$0xf] }
 0x575   : > { %v6914_v28 = vld [vmem:[%s10390_s15 + $0x2f4] sm:$0xf] }
 0x577   : > { %4793 = vmatpush.bf16.msra.mxu0 %v6443_v37  ;;  %4807 = vmatpush.bf16.msra.mxu1 %v6507_v54  ;;  %v6223_v54 = vor.u32 %v6838_v33, %v6220_v30 }
 0x578   : > { %4822 = vmatpush.bf16.msra.mxu2 %v6183_v19  ;;  %4837 = vmatpush.bf16.msra.mxu3 %v6239_v50 }
 0x57b   : > { %4794 = vmatpush.bf16.msra.mxu0 %v6435_v6  ;;  %4808 = vmatpush.bf16.msra.mxu1 %v6499_v42  ;;  %v6475_v6 = vor.u32 %v6903_v36, %v6474_v55  ;;  %v6215_v42 = vor.u32 %v6836_v16, %v6212_v25 }
 0x57c   : > { %4823 = vmatpush.bf16.msra.mxu2 %v6175_v43  ;;  %4838 = vmatpush.bf16.msra.mxu3 %v6231_v52  ;;  %v6466_v43 = vld [vmem:[%s10390_s15 + $0x280] sm:$0xf] }
 0x57d   : > { %v6467_v11 = vor.u32 %v6901_v44, %v6466_v43  ;;  %v6452_v43 = vld [vmem:[%s10390_s15 + $0x268] sm:$0xf0] }
 0x57f   : > { %4795 = vmatpush.bf16.msra.mxu0 %v6427_v2  ;;  %4809 = vmatpush.bf16.msra.mxu1 %v6491_v10 }
 0x580   : > { %4824 = vmatpush.bf16.msra.mxu2 %v6167_v13  ;;  %4839 = vmatpush.bf16.msra.mxu3 %v6223_v54 }
 0x583   : > { %4796 = vmatpush.bf16.msra.mxu0 %v6419_v20  ;;  %4810 = vmatpush.bf16.msra.mxu1 %v6483_v18 }
 0x584   : > { %4825 = vmatpush.bf16.msra.mxu2 %v6159_v32  ;;  %4840 = vmatpush.bf16.msra.mxu3 %v6215_v42  ;;  %v6896_v42 = vld [vmem:[%s10390_s15 + $0x264] sm:$0xf] }
 0x587   : > { %4797 = vmatpush.bf16.msra.mxu0 %v6411_v26  ;;  %4811 = vmatpush.bf16.msra.mxu1 %v6475_v6 }
 0x588   : > { %4826 = vmatpush.bf16.msra.mxu2 %v6151_v4  ;;  %v6396_v4 = vld [vmem:[%s10390_s15 + $0x1f8] sm:$0xf0] }
 0x58b   : > { %4798 = vmatpush.bf16.msra.mxu0 %v6403_v57  ;;  %4812 = vmatpush.bf16.msra.mxu1 %v6467_v11  ;;  %v6399_v11 = vor.u32 %v6882_v8, %v6396_v4  ;;  %v6428_v4 = vld [vmem:[%s10390_s15 + $0x238] sm:$0xf0] }
 0x5eb   : > { %v4014_v24 = vpop.f32.mrf.mxu0  ;;  %v4034_v41 = vpop.f32.mrf.mxu1 }
 0x5ec   : > { %4055 = vst [vmem:[#allocation1] sm:$0xff] %v4014_v24  ;;  %v4039_v29 = vrot.slane %v4034_v41, 7 }
 0x5ed   : > { %4056 = vst [vmem:[#allocation1 + $0x9] sm:$0xff] %v4034_v41 }
 0x5ee   : > { %v4040_v31 = vsel %vm1014_vm7, %v4014_v24, %v4039_v29  ;;  %v4041_v60 = vsel %vm708_vm0, %v4014_v24, %v4039_v29  ;;  %v6460_v24 = vld [vmem:[%s10390_s15 + $0x278] sm:$0xf0] }
 0x5ef   : > { %v4042_v37 = vrot.slane %v4041_v60, 1  ;;  %v4043_v1 = vperm.slane %v4040_v31, 0  ;;  %v4044_v19 = vperm.slane %v4040_v31, 1  ;;  %v6524_v29 = vld [vmem:[%s10390_s15 + $0x2f8] sm:$0xf0]  ;;  %v6463_v20 = vor.u32 %v6898_v49, %v6460_v24 }
 0x5f0   : > { %v6527_v22 = vor.u32 %v6914_v28, %v6524_v29  ;;  %v6894_v49 = vld [vmem:[%s10390_s15 + $0x254] sm:$0xf]  ;;  %v6444_v24 = vld [vmem:[%s10390_s15 + $0x258] sm:$0xf0] }
 0x5f1   : > { %v4045_v15 = vperm.slane %v4042_v37, 0  ;;  %v4046_v17 = vperm.slane %v4042_v37, 1  ;;  %v4051_v45 = vmul.f32 %v4043_v1, %v9662_v47  ;;  %v4052_v46 = vmul.f32 %v4044_v19, %v9674_v38 }
 0x5f3   : > { %v4053_v7 = vmul.f32 %v4045_v15, %v9668_v63  ;;  %v4054_v21 = vmul.f32 %v4046_v17, %v9683_v40  ;;  %v6866_v15 = vld [vmem:[%s10390_s15 + $0x174] sm:$0xf]  ;;  %v6332_v17 = vld [vmem:[%s10390_s15 + $0x178] sm:$0xf0] }
 0x5f4   : > { %v4058_v50 = vld [vmem:[#allocation1 + $0x2] ss:$9 sm:$0xff] }
 0x5f5   : > { %v4060_v51 = vld [vmem:[#allocation1 + $0x3] ss:$9 sm:$0xff]  ;;  %v4061_v63 = vperm.slane %v4058_v50, 0  ;;  %v4062_v58 = vperm.slane %v4058_v50, 1 }
 0x5f6   : > { %v4063_v40 = vperm.slane %v4060_v51, 0  ;;  %v4064_v61 = vperm.slane %v4060_v51, 1  ;;  %v6516_v51 = vld [vmem:[%s10390_s15 + $0x2e8] sm:$0xf0] }
 0x5f7   : > { %v4069_v2 = vadd.f32 %v4061_v63, %v4051_v45  ;;  %v4070_v5 = vadd.f32 %v4062_v58, %v4052_v46 }
 0x5f8   : > { %v4071_v10 = vadd.f32 %v4063_v40, %v4053_v7  ;;  %v4072_v13 = vadd.f32 %v4064_v61, %v4054_v21  ;;  %v6335_v61 = vor.u32 %v6866_v15, %v6332_v17 }
 0x5f9   : > { %v4073_v14 = vmul.f32 0.01, %v4069_v2  ;;  %v4074_v47 = vmul.f32 0.01, %v4070_v5 }
 0x5fa   : > { %v4075_v23 = vmul.f32 0.01, %v4071_v10  ;;  %v4076_v38 = vmul.f32 0.01, %v4072_v13 }
 0x5fb   : > { %v10109_v41 = vmax.f32 %v4069_v2, %v4073_v14  ;;  %v10111_v52 = vmax.f32 %v4070_v5, %v4074_v47  ;;  %v6864_v2 = vld [vmem:[%s10390_s15 + $0x164] sm:$0xf]  ;;  %v6324_v5 = vld [vmem:[%s10390_s15 + $0x168] sm:$0xf0]  ;;  %v6455_v14 = vor.u32 %v6896_v42, %v6452_v43  ;;  %v6519_v47 = vor.u32 %v6912_v56, %v6516_v51  ;;  %v6300_v51 = vld [vmem:[%s10390_s15 + $0x138] sm:$0xf0] }
 0x5fc   : > { %v10113_v27 = vmax.f32 %v4071_v10, %v4075_v23  ;;  %v10121_v33 = vmax.f32 %v4072_v13, %v4076_v38  ;;  %v6880_v23 = vld [vmem:[%s10390_s15 + $0x1e4] sm:$0xf]  ;;  %v6388_v38 = vld [vmem:[%s10390_s15 + $0x1e8] sm:$0xf0] }
 0x5fd   : > { %v4119_v30 = vpack.c.bf16 %v10111_v52, %v10109_v41  ;;  %v4085_v31 = vrot.slane %v10109_v41, 7  ;;  %v4086_v60 = vrot.slane %v10111_v52, 7  ;;  %v4101_v44 = vrot.slane %v10109_v41, 1  ;;  %v6910_v41 = vld [vmem:[%s10390_s15 + $0x2d4] sm:$0xf] }
 0x5fe   : > { %v4120_v18 = vpack.c.bf16 %v10121_v33, %v10113_v27  ;;  %v4087_v55 = vrot.slane %v10113_v27, 7  ;;  %v4089_v36 = vrot.slane %v10121_v33, 7  ;;  %v4102_v45 = vrot.slane %v10113_v27, 1  ;;  %v6862_v27 = vld [vmem:[%s10390_s15 + $0x154] sm:$0xf] }
 0x5ff   : > { %v4135_v32 = vunpack.c.l.b16 %v4119_v30  ;;  %v4136_v35 = vunpack.c.h.b16 %v4119_v30  ;;  %v4095_v59 = vsel %vm1014_vm7, 0.0, %v4085_v31  ;;  %v4096_v0 = vsel %vm1014_vm7, 0.0, %v4086_v60 }
 0x600   : > { %v4137_v37 = vunpack.c.l.b16 %v4120_v18  ;;  %v4138_v54 = vunpack.c.h.b16 %v4120_v18  ;;  %v4088_v1 = vsel %vm1014_vm7, %v4085_v31, %v4087_v55  ;;  %v4090_v19 = vsel %vm1014_vm7, %v4086_v60, %v4089_v36  ;;  %v6878_v31 = vld [vmem:[%s10390_s15 + $0x1d4] sm:$0xf]  ;;  %v6380_v60 = vld [vmem:[%s10390_s15 + $0x1d8] sm:$0xf0]  ;;  %v6892_v55 = vld [vmem:[%s10390_s15 + $0x244] sm:$0xf] }
 0x601   : > { %v4097_v16 = vsel %vm7780_vm10, 0.0, %v4095_v59  ;;  %v4098_v25 = vsel %vm7780_vm10, 0.0, %v4096_v0  ;;  %v4099_v3 = vsel %vm7786_vm11, 0.0, %v4088_v1  ;;  %v4100_v6 = vsel %vm7786_vm11, 0.0, %v4090_v19  ;;  %v6436_v36 = vld [vmem:[%s10390_s15 + $0x248] sm:$0xf0] }
 0x602   : > { %v10145_v26 = vpack.c.b16 %v4137_v37, %v4135_v32  ;;  %v10147_v48 = vpack.c.b16 %v4138_v54, %v4136_v35  ;;  %v4117_v7 = vpack.c.bf16 %v4098_v25, %v4097_v16  ;;  %v4118_v21 = vpack.c.bf16 %v4100_v6, %v4099_v3  ;;  %v6908_v37 = vld [vmem:[%s10390_s15 + $0x2c4] sm:$0xf]  ;;  %v6500_v54 = vld [vmem:[%s10390_s15 + $0x2c8] sm:$0xf0]  ;;  %v6890_v6 = vld [vmem:[%s10390_s15 + $0x234] sm:$0xf] }
 0x603   : > { %v4104_v46 = vrot.slane %v10111_v52, 1  ;;  %v4105_v50 = vrot.slane %v10121_v33, 1  ;;  %v6508_v52 = vld [vmem:[%s10390_s15 + $0x2d8] sm:$0xf0]  ;;  %v4103_v28 = vsel %vm1140_vm12, %v4101_v44, %v4102_v45  ;;  %v4111_v33 = vsel %vm1140_vm12, %v4102_v45, 0.0 }
 0x604   : > { %4771 = vmatmul.bf16.vlgmr.msrb.gmra.mxu2 %v10145_v26  ;;  %4785 = vmatmul.bf16.vlgmr.msrb.gmra.mxu3 %v10147_v48  ;;  %v4125_v57 = vunpack.c.l.b16 %v4117_v7  ;;  %v4127_v63 = vunpack.c.l.b16 %v4118_v21  ;;  %v4126_v58 = vunpack.c.h.b16 %v4117_v7  ;;  %v4128_v40 = vunpack.c.h.b16 %v4118_v21  ;;  %v6860_v16 = vld [vmem:[%s10390_s15 + $0x144] sm:$0xf]  ;;  %v6308_v25 = vld [vmem:[%s10390_s15 + $0x148] sm:$0xf0]  ;;  %v6906_v7 = vld [vmem:[%s10390_s15 + $0x2b4] sm:$0xf] }
 0x605   : > { %4875 = vmatpush.bf16.msrb.mxu2 %v6463_v20  ;;  %4889 = vmatpush.bf16.msrb.mxu3 %v6527_v22  ;;  %v4106_v29 = vsel %vm1140_vm12, %v4104_v46, %v4105_v50  ;;  %v4112_v30 = vsel %vm1140_vm12, %v4105_v50, 0.0  ;;  %v6327_v20 = vor.u32 %v6864_v2, %v6324_v5  ;;  %v6391_v18 = vor.u32 %v6880_v23, %v6388_v38  ;;  %v6316_v22 = vld [vmem:[%s10390_s15 + $0x158] sm:$0xf0]  ;;  %v6876_v3 = vld [vmem:[%s10390_s15 + $0x1c4] sm:$0xf] }
 0x606   : > { %v10183_v10 = vpack.c.b16 %v4127_v63, %v4125_v57  ;;  %v10185_v13 = vpack.c.b16 %v4128_v40, %v4126_v58  ;;  %v6447_v32 = vor.u32 %v6894_v49, %v6444_v24  ;;  %v6511_v35 = vor.u32 %v6910_v41, %v6508_v52  ;;  %v6492_v21 = vld [vmem:[%s10390_s15 + $0x2b8] sm:$0xf0]  ;;  %v6858_v50 = vld [vmem:[%s10390_s15 + $0x134] sm:$0xf]  ;;  %v6888_v2 = vld [vmem:[%s10390_s15 + $0x224] sm:$0xf] }
 0x607   : > { %v4113_v59 = vsel %vm7979_vm13, 0.0, %v4103_v28  ;;  %v4114_v0 = vsel %vm7979_vm13, 0.0, %v4106_v29  ;;  %v4115_v1 = vsel %vm8070_vm14, 0.0, %v4111_v33  ;;  %v4116_v19 = vsel %vm8070_vm14, 0.0, %v4112_v30  ;;  %v6874_v57 = vld [vmem:[%s10390_s15 + $0x1b4] sm:$0xf] }
 0x608   : > { %4743 = vmatmul.bf16.vlgmr.msrb.gmra.mxu0 %v10183_v10  ;;  %4757 = vmatmul.bf16.vlgmr.msrb.gmra.mxu1 %v10185_v13  ;;  %v6319_v15 = vor.u32 %v6862_v27, %v6316_v22  ;;  %v6383_v17 = vor.u32 %v6878_v31, %v6380_v60  ;;  %v6439_v62 = vor.u32 %v6892_v55, %v6436_v36  ;;  %v6420_v5 = vld [vmem:[%s10390_s15 + $0x228] sm:$0xf0]  ;;  %v6856_v24 = vld [vmem:[%s10390_s15 + $0x124] sm:$0xf]  ;;  %v6886_v29 = vld [vmem:[%s10390_s15 + $0x214] sm:$0xf] }
 0x609   : > { %4847 = vmatpush.bf16.msrb.mxu0 %v6335_v61  ;;  %4861 = vmatpush.bf16.msrb.mxu1 %v6399_v11  ;;  %v6503_v8 = vor.u32 %v6908_v37, %v6500_v54  ;;  %v4121_v42 = vpack.c.bf16 %v4114_v0, %v4113_v59  ;;  %v4122_v43 = vpack.c.bf16 %v4116_v19, %v4115_v1  ;;  %v6364_v11 = vld [vmem:[%s10390_s15 + $0x1b8] sm:$0xf0]  ;;  %v6872_v27 = vld [vmem:[%s10390_s15 + $0x1a4] sm:$0xf]  ;;  %v6356_v28 = vld [vmem:[%s10390_s15 + $0x1a8] sm:$0xf0] }
 0x60a   : > { %4876 = vmatpush.bf16.msrb.mxu2 %v6455_v14  ;;  %4890 = vmatpush.bf16.msrb.mxu3 %v6519_v47  ;;  %v6311_v56 = vor.u32 %v6860_v16, %v6308_v25  ;;  %v6375_v44 = vor.u32 %v6876_v3, %v6372_v9  ;;  %v6431_v45 = vor.u32 %v6890_v6, %v6428_v4  ;;  %v6904_v14 = vld [vmem:[%s10390_s15 + $0x2a4] sm:$0xf]  ;;  %v6484_v47 = vld [vmem:[%s10390_s15 + $0x2a8] sm:$0xf0]  ;;  %v6412_v33 = vld [vmem:[%s10390_s15 + $0x218] sm:$0xf0] }
 0x60b   : > { %v6495_v46 = vor.u32 %v6906_v7, %v6492_v21  ;;  %v4145_v63 = vunpack.c.l.b16 %v4121_v42  ;;  %v4147_v58 = vunpack.c.l.b16 %v4122_v43  ;;  %v4146_v40 = vunpack.c.h.b16 %v4121_v42  ;;  %v6902_v30 = vld [vmem:[%s10390_s15 + $0x294] sm:$0xf]  ;;  %v6284_v60 = vld [vmem:[%s10390_s15 + $0x118] sm:$0xf0]  ;;  %v6884_v37 = vld [vmem:[%s10390_s15 + $0x204] sm:$0xf] }
 0x60c   : > { %v4148_v61 = vunpack.c.h.b16 %v4122_v43  ;;  %v6303_v23 = vor.u32 %v6858_v50, %v6300_v51  ;;  %v6367_v38 = vor.u32 %v6874_v57, %v6364_v11  ;;  %v6423_v49 = vor.u32 %v6888_v2, %v6420_v5  ;;  %v6854_v31 = vld [vmem:[%s10390_s15 + $0x114] sm:$0xf]  ;;  %v6348_v36 = vld [vmem:[%s10390_s15 + $0x198] sm:$0xf0]  ;;  %v6404_v54 = vld [vmem:[%s10390_s15 + $0x208] sm:$0xf0] }
 0x60d   : > { %4848 = vmatpush.bf16.msrb.mxu0 %v6327_v20  ;;  %4862 = vmatpush.bf16.msrb.mxu1 %v6391_v18  ;;  %v6487_v52 = vor.u32 %v6904_v14, %v6484_v47  ;;  %v6476_v20 = vld [vmem:[%s10390_s15 + $0x298] sm:$0xf0]  ;;  %v6359_v22 = vor.u32 %v6872_v27, %v6356_v28  ;;  %v6870_v55 = vld [vmem:[%s10390_s15 + $0x194] sm:$0xf]  ;;  %v6900_v59 = vld [vmem:[%s10390_s15 + $0x284] sm:$0xf]  ;;  %v6287_v1 = vor.u32 %v6854_v31, %v6284_v60 }
 0x60e   : > { %4877 = vmatpush.bf16.msrb.mxu2 %v6447_v32  ;;  %4891 = vmatpush.bf16.msrb.mxu3 %v6511_v35  ;;  %v4150_v41 = vpack.c.b16 %v4148_v61, %v4146_v40  ;;  %v6415_v32 = vor.u32 %v6886_v29, %v6412_v33  ;;  %v6479_v35 = vor.u32 %v6902_v30, %v6476_v20  ;;  %v6468_v0 = vld [vmem:[%s10390_s15 + $0x288] sm:$0xf0] }
 0x60f   : > { %v6351_v19 = vor.u32 %v6870_v55, %v6348_v36  ;;  %v6407_v16 = vor.u32 %v6884_v37, %v6404_v54  ;;  %v6471_v25 = vor.u32 %v6900_v59, %v6468_v0  ;;  %v6340_v3 = vld [vmem:[%s10390_s15 + $0x188] sm:$0xf0] }
 0x611   : > { %4849 = vmatpush.bf16.msrb.mxu0 %v6319_v15  ;;  %4863 = vmatpush.bf16.msrb.mxu1 %v6383_v17  ;;  %v6852_v15 = vld [vmem:[%s10390_s15 + $0x104] sm:$0xf]  ;;  %v6276_v17 = vld [vmem:[%s10390_s15 + $0x108] sm:$0xf0] }
 0x612   : > { %4878 = vmatpush.bf16.msrb.mxu2 %v6439_v62  ;;  %4892 = vmatpush.bf16.msrb.mxu3 %v6503_v8  ;;  %v6868_v62 = vld [vmem:[%s10390_s15 + $0x184] sm:$0xf]  ;;  %v6279_v9 = vor.u32 %v6852_v15, %v6276_v17  ;;  %v4249_v8 = vld [vmem:[%s10391_s16] sm:$0x3] }
 0x613   : > { %v6343_v6 = vor.u32 %v6868_v62, %v6340_v3  ;;  %v4251_v4 = vperm.slane %v4249_v8, 0 }
 0x614   : > { %4827 = vmatmul.bf16.vlgmr.msra.gmra.mxu2 %v10183_v10  ;;  %4841 = vmatmul.bf16.vlgmr.msra.gmra.mxu3 %v10185_v13  ;;  %v6292_v10 = vld [vmem:[%s10390_s15 + $0x128] sm:$0xf0]  ;;  %v4149_v13 = vpack.c.b16 %v4147_v58, %v4145_v63 }
 0x615   : > { %4850 = vmatpush.bf16.msrb.mxu0 %v6311_v56  ;;  %4864 = vmatpush.bf16.msrb.mxu1 %v6375_v44  ;;  %v6295_v18 = vor.u32 %v6856_v24, %v6292_v10 }
 0x616   : > { %4879 = vmatpush.bf16.msrb.mxu2 %v6431_v45  ;;  %4893 = vmatpush.bf16.msrb.mxu3 %v6495_v46 }
 0x618   : > { %4799 = vmatmul.bf16.vlgmr.msra.gmra.mxu0 %v4149_v13  ;;  %4813 = vmatmul.bf16.vlgmr.msra.gmra.mxu1 %v4150_v41 }
 0x619   : > { %4851 = vmatpush.bf16.msrb.mxu0 %v6303_v23  ;;  %4865 = vmatpush.bf16.msrb.mxu1 %v6367_v38  ;;  %v4252_v38 = vperm.slane %v4249_v8, 1 }
 0x61a   : > { %4880 = vmatpush.bf16.msrb.mxu2 %v6423_v49  ;;  %4894 = vmatpush.bf16.msrb.mxu3 %v6487_v52 }
 0x61d   : > { %4852 = vmatpush.bf16.msrb.mxu0 %v6295_v18  ;;  %4866 = vmatpush.bf16.msrb.mxu1 %v6359_v22 }
 0x61e   : > { %4881 = vmatpush.bf16.msrb.mxu2 %v6415_v32  ;;  %4895 = vmatpush.bf16.msrb.mxu3 %v6479_v35 }
 0x621   : > { %4853 = vmatpush.bf16.msrb.mxu0 %v6287_v1  ;;  %4867 = vmatpush.bf16.msrb.mxu1 %v6351_v19 }
 0x622   : > { %4882 = vmatpush.bf16.msrb.mxu2 %v6407_v16  ;;  %4896 = vmatpush.bf16.msrb.mxu3 %v6471_v25 }
 0x625   : > { %4883 = vmatmul.bf16.vlgmr.msrb.gmra.mxu2 %v4149_v13  ;;  %4897 = vmatmul.bf16.vlgmr.msrb.gmra.mxu3 %v4150_v41 }
 0x626   : > { %4854 = vmatpush.bf16.msrb.mxu0 %v6279_v9  ;;  %4868 = vmatpush.bf16.msrb.mxu1 %v6343_v6 }
 0x629   : > { %4855 = vmatmul.bf16.vlgmr.msrb.gmra.mxu0 %v10145_v26  ;;  %4869 = vmatmul.bf16.vlgmr.msrb.gmra.mxu1 %v10147_v48 }
 0x685   : > { %v4744_v7 = vpop.f32.mrf.mxu0  ;;  %v4758_v21 = vpop.f32.mrf.mxu1 }
 0x686   : > { %v4745_v56 = vadd.f32 %v4744_v7, %v4251_v4 }
 0x687   : > { %v4772_v42 = vpop.f32.mrf.mxu2  ;;  %v4786_v43 = vpop.f32.mrf.mxu3 }
 0x688   : > { %v4759_v44 = vadd.f32 %v4758_v21, %v4745_v56 }
 0x68a   : > { %v4773_v57 = vadd.f32 %v4772_v42, %v4759_v44 }
 0x68c   : > { %v4787_v63 = vadd.f32 %v4786_v43, %v4773_v57 }
 0x68d   : > { %v4746_v45 = vpop.f32.mrf.mxu0  ;;  %v4760_v46 = vpop.f32.mrf.mxu1 }
 0x68e   : > { %v4747_v26 = vadd.f32 %v4746_v45, %v4251_v4 }
 0x68f   : > { %v4774_v50 = vpop.f32.mrf.mxu2  ;;  %v4788_v51 = vpop.f32.mrf.mxu3 }
 0x690   : > { %v4761_v48 = vadd.f32 %v4760_v46, %v4747_v26 }
 0x692   : > { %v4775_v5 = vadd.f32 %v4774_v50, %v4761_v48 }
 0x694   : > { %v4789_v23 = vadd.f32 %v4788_v51, %v4775_v5 }
 0x695   : > { %v4800_v58 = vpop.f32.mrf.mxu0  ;;  %v4814_v40 = vpop.f32.mrf.mxu1 }
 0x696   : > { %v4801_v61 = vadd.f32 %v4800_v58, %v4787_v63 }
 0x697   : > { %v4828_v11 = vpop.f32.mrf.mxu2  ;;  %v4842_v2 = vpop.f32.mrf.mxu3 }
 0x698   : > { %v4815_v14 = vadd.f32 %v4814_v40, %v4801_v61  ;;  %v4829_v27 = vadd.f32 %v4828_v11, %v4252_v38 }
 0x69a   : > { %v4903_v47 = vadd.f32 %v4815_v14, %v8812_v53  ;;  %v4843_v29 = vadd.f32 %v4842_v2, %v4829_v27 }
 0x69c   : > { %4907 = vst [vmem:[%s10362_s25] sm:$0xff] %v4903_v47 }
 0x69d   : > { %v4802_v49 = vpop.f32.mrf.mxu0  ;;  %v4816_v24 = vpop.f32.mrf.mxu1 }
 0x69e   : > { %v4803_v10 = vadd.f32 %v4802_v49, %v4789_v23 }
 0x69f   : > { %v4830_v13 = vpop.f32.mrf.mxu2  ;;  %v4844_v52 = vpop.f32.mrf.mxu3 }
 0x6a0   : > { %v4817_v41 = vadd.f32 %v4816_v24, %v4803_v10  ;;  %v4831_v53 = vadd.f32 %v4830_v13, %v4252_v38 }
 0x6a2   : > { %v4905_v28 = vadd.f32 %v4817_v41, %v8818_v39  ;;  %v4845_v32 = vadd.f32 %v4844_v52, %v4831_v53 }
 0x6a4   : > { %4909 = vst [vmem:[%s10362_s25 + $0x10] sm:$0xff] %v4905_v28 }
 0x6a6   : > { %v4856_v33 = vpop.f32.mrf.mxu0  ;;  %v4870_v30 = vpop.f32.mrf.mxu1 }
 0x6a7   : > { %v4857_v20 = vadd.f32 %v4856_v33, %v4843_v29 }
 0x6a8   : > { %v4884_v18 = vpop.f32.mrf.mxu2  ;;  %v4898_v31 = vpop.f32.mrf.mxu3 }
 0x6a9   : > { %v4871_v22 = vadd.f32 %v4870_v30, %v4857_v20 }
 0x6ab   : > { %v4885_v60 = vadd.f32 %v4884_v18, %v4871_v22 }
 0x6ad   : > { %v4899_v35 = vadd.f32 %v4898_v31, %v4885_v60 }
 0x6ae   : > { %v4858_v55 = vpop.f32.mrf.mxu0  ;;  %v4872_v54 = vpop.f32.mrf.mxu1 }
 0x6af   : > { %v4904_v36 = vadd.f32 %v4899_v35, %v8876_v12  ;;  %v4859_v37 = vadd.f32 %v4858_v55, %v4845_v32 }
 0x6b0   : > { %v4886_v59 = vpop.f32.mrf.mxu2  ;;  %v4900_v1 = vpop.f32.mrf.mxu3 }
 0x6b1   : > { %4908 = vst [vmem:[%s10362_s25 + $0x8] sm:$0xff] %v4904_v36  ;;  %v4873_v39 = vadd.f32 %v4872_v54, %v4859_v37 }
 0x6b3   : > { %v4887_v0 = vadd.f32 %v4886_v59, %v4873_v39 }
 0x6b5   : > { %v4901_v19 = vadd.f32 %v4900_v1, %v4887_v0 }
 0x6b7   : > { %v4906_v16 = vadd.f32 %v4901_v19, %v8882_v34 }
 0x6b9   : > { %4910 = vst [vmem:[%s10362_s25 + $0x18] sm:$0xff] %v4906_v16 }
 0x6ba PF: > { %s27_s24 = sadd.s32 1, %s6976_s24  }
 0x6bb   : > { %p24_p4 = scmp.ge.s32.totalorder %s27_s24, 4  }
 0x6bd   :  { %26 = sbr.rel (!%p24_p4) target bundleno = 3 (0x3), region = 124 }

</bundles_post_ra>
